<compile_context>
chip_gen: v7x
topology: tpu7x:2x2x1
jax: 0.10.0
libtpu: 0.0.40
codegen_flags: <defaults>
</compile_context>

<pallas_src>
import jax
import jax.numpy as jnp
from jax import lax
from jax.experimental import pallas as pl
from jax.experimental.pallas import tpu as pltpu

EPS = 1e-5     # PyTorch / InPlaceABN BatchNorm eps
SLOPE = 0.01   # InPlaceABN leaky_relu slope
N_TAPS = 27


# ----------------------------------------------------------------------------
# Pallas kernels + wrapper
# ----------------------------------------------------------------------------
@jax.jit
def conv3d_abn(x, weight, gamma, beta):
    """x: (N, Cin, D, H, W); weight: (Cout, Cin, 3, 3, 3); gamma/beta: (Cout,)."""
    N, Cin, D, H, W = x.shape
    Cout = weight.shape[0]
    assert weight.shape[1:] == (Cin, 3, 3, 3)

    f32, bf16 = jnp.float32, jnp.bfloat16
    Dp, Hp, Wp = D + 2, H + 2, W + 2          # zero-padded spatial extents
    plane = Hp * Wp
    P = Dp * plane                            # padded flat spatial per image
    halo = plane + Wp + 1                     # max |tap offset|
    TL = -(-P // 128) * 128                   # per-image lane tile, mult of 128
    Ph = TL + 2 * halo                        # haloed per-image input lanes
    Cinp = -(-Cin // 8) * 8                   # pad channel rows to sublane tile
    Cp = -(-Cout // 8) * 8
    inv_count = 1.0 / float(N * D * H * W)    # BN population per channel

    # ------------- wrapper layout plumbing (pads + casts only) ---------------
    # input: (N, Cinp, Ph) bf16, per-image lanes = [halo 0s | padded vol | 0s | halo 0s]
    xh = jnp.pad(x.astype(f32),
                 ((0, 0), (0, Cinp - Cin), (1, 1), (1, 1), (1, 1)))
    xh = xh.reshape(N, Cinp, P)
    xh = jnp.pad(xh, ((0, 0), (0, 0), (halo, halo + TL - P))).astype(bf16)

    # weights -> (27, Cp, Cinp) bf16 ; tap t = (kd*3 + kh)*3 + kw
    w27 = jnp.transpose(weight.astype(f32), (2, 3, 4, 0, 1)).reshape(N_TAPS, Cout, Cin)
    w27 = jnp.pad(w27, ((0, 0), (0, Cp - Cout), (0, Cinp - Cin))).astype(bf16)

    # validity mask over the TL output lanes (interior of the padded volume)
    dv = (jnp.arange(Dp) >= 1) & (jnp.arange(Dp) <= D)
    hv = (jnp.arange(Hp) >= 1) & (jnp.arange(Hp) <= H)
    wv = (jnp.arange(Wp) >= 1) & (jnp.arange(Wp) <= W)
    valid = (dv[:, None, None] & hv[None, :, None] & wv[None, None, :]).reshape(P)
    mask = jnp.pad(valid.astype(f32), (0, TL - P)).reshape(1, TL)

    # ------------- pass 1: conv (bf16 MXU, f32 acc) + BN partial sums --------
    def conv_stats_kernel(x_ref, w_ref, m_ref, conv_ref, s1_ref, s2_ref):
        acc = jnp.zeros((Cp, TL), f32)
        # 27 per-tap accumulating matmuls on statically shifted windows of the
        # haloed slab (no im2col patch scratch, no full-width stores).
        for t in range(N_TAPS):
            kd, kh, kw = t // 9, (t // 3) % 3, t % 3
            off = halo + (kd - 1) * plane + (kh - 1) * Wp + (kw - 1)
            acc = acc + jnp.dot(w_ref[t], x_ref[0, :, off:off + TL],
                                preferred_element_type=jnp.float32)
        conv_ref[0] = acc
        # per-tile (per-image) BN partial sums over valid lanes only
        cm = acc * m_ref[...]                                   # (Cp, TL)
        s1_ref[0] = jnp.sum(cm, axis=1, keepdims=True)          # (Cp, 1)
        s2_ref[0] = jnp.sum(cm * acc, axis=1, keepdims=True)    # (Cp, 1)

    conv_slab, s1p, s2p = pl.pallas_call(
        conv_stats_kernel,
        grid=(N,),
        in_specs=[pl.BlockSpec((1, Cinp, Ph), lambda n: (n, 0, 0)),
                  pl.BlockSpec((N_TAPS, Cp, Cinp), lambda n: (0, 0, 0)),
                  pl.BlockSpec((1, TL), lambda n: (0, 0))],
        out_specs=(pl.BlockSpec((1, Cp, TL), lambda n: (n, 0, 0)),
                   pl.BlockSpec((1, Cp, 1), lambda n: (n, 0, 0)),
                   pl.BlockSpec((1, Cp, 1), lambda n: (n, 0, 0))),
        out_shape=(jax.ShapeDtypeStruct((N, Cp, TL), f32),
                   jax.ShapeDtypeStruct((N, Cp, 1), f32),
                   jax.ShapeDtypeStruct((N, Cp, 1), f32)),
        compiler_params=pltpu.CompilerParams(
            dimension_semantics=("parallel",),          # both v7x TensorCores
            vmem_limit_bytes=32 * 1024 * 1024),         # explicit, fits all gens
        cost_estimate=pl.CostEstimate(
            flops=int(2 * N_TAPS * Cin * Cout * N * D * H * W),
            transcendentals=0,
            bytes_accessed=int(xh.size * 2 + w27.size * 2 + mask.size * 4
                               + N * Cp * TL * 4 + 2 * N * Cp * 4)),
    )(xh, w27, mask)

    # ------------- finalize (tiny, plain JAX): cross-tile stats reduction ----
    s1 = jnp.sum(s1p[..., 0], axis=0)                   # (Cp,)
    s2 = jnp.sum(s2p[..., 0], axis=0)
    mean = s1 * inv_count
    var = jnp.maximum(s2 * inv_count - mean * mean, 0.0)  # clamp: cancellation guard
    g = jnp.pad(gamma.astype(f32), (0, Cp - Cout), constant_values=1.0)
    b = jnp.pad(beta.astype(f32), (0, Cp - Cout))
    scale_v = g * lax.rsqrt(var + EPS)
    shift_v = b - mean * scale_v
    scale = scale_v.reshape(Cp, 1)
    shift = shift_v.reshape(Cp, 1)

    # ------------- pass 2: apply hoisted BN affine + leaky_relu (in place) ---
    def bn_act_kernel(conv_ref, scale_ref, shift_ref, o_ref):
        z = conv_ref[0] * scale_ref[...] + shift_ref[...]
        o_ref[0] = jnp.where(z >= 0, z, SLOPE * z)

    act = pl.pallas_call(
        bn_act_kernel,
        grid=(N,),
        in_specs=[pl.BlockSpec((1, Cp, TL), lambda n: (n, 0, 0)),
                  pl.BlockSpec((Cp, 1), lambda n: (0, 0)),
                  pl.BlockSpec((Cp, 1), lambda n: (0, 0))],
        out_specs=pl.BlockSpec((1, Cp, TL), lambda n: (n, 0, 0)),
        out_shape=jax.ShapeDtypeStruct((N, Cp, TL), f32),
        input_output_aliases={0: 0},                     # "in-place" ABN
        compiler_params=pltpu.CompilerParams(
            dimension_semantics=("parallel",),
            vmem_limit_bytes=32 * 1024 * 1024),
        cost_estimate=pl.CostEstimate(
            flops=int(3 * N * Cp * TL),
            transcendentals=0,
            bytes_accessed=int(2 * N * Cp * TL * 4 + 2 * Cp * 4)),
    )(conv_slab, scale, shift)

    # wrapper-side extraction of the valid interior (slice + reshape only,
    # no transposes: the kernel already emits N-major, channel-second layout)
    out = act[:, :Cout, :P].reshape(N, Cout, Dp, Hp, Wp)
    return out[:, :, 1:D + 1, 1:H + 1, 1:W + 1]


# ----------------------------------------------------------------------------
# Pure-JAX reference (correctness check)
# ----------------------------------------------------------------------------
def _ref_forward(x, w, gamma, beta):
    y = lax.conv_general_dilated(
        x, w, window_strides=(1, 1, 1), padding=[(1, 1)] * 3,
        dimension_numbers=("NCDHW", "OIDHW", "NCDHW"))
    m = jnp.mean(y, axis=(0, 2, 3, 4), keepdims=True)
    v = jnp.mean((y - m) ** 2, axis=(0, 2, 3, 4), keepdims=True)
    z = (y - m) * lax.rsqrt(v + EPS) * gamma.reshape(1, -1, 1, 1, 1) \
        + beta.reshape(1, -1, 1, 1, 1)
    return jnp.where(z >= 0, z, SLOPE * z)


if __name__ == "__main__":
    key = jax.random.PRNGKey(0)
    kx, kw, kg, kb = jax.random.split(key, 4)

    N, Cin, Cout, D, H, W = 2, 4, 4, 8, 8, 8
    x = jax.random.normal(kx, (N, Cin, D, H, W), jnp.float32)
    w = 0.1 * jax.random.normal(kw, (Cout, Cin, 3, 3, 3), jnp.float32)
    gamma = 1.0 + 0.1 * jax.random.normal(kg, (Cout,), jnp.float32)
    beta = 0.1 * jax.random.normal(kb, (Cout,), jnp.float32)

    out = jax.block_until_ready(conv3d_abn(x, w, gamma, beta))
    assert out.shape == (N, Cout, D, H, W)

    # matched-precision reference (inputs rounded to bf16, like the MXU
    # operands; accumulation / BN / activation in f32) -> tight tolerance
    ref_m = jax.block_until_ready(_ref_forward(
        x.astype(jnp.bfloat16).astype(jnp.float32),
        w.astype(jnp.bfloat16).astype(jnp.float32), gamma, beta))
    err_m = float(jnp.max(jnp.abs(out - ref_m)))
    assert jnp.allclose(out, ref_m, atol=2e-3, rtol=2e-3), \
        f"matched-precision max abs err = {err_m}"

    # loose sanity check vs. the pure-f32 reference (bf16-operand MXU drift)
    ref_f = jax.block_until_ready(_ref_forward(x, w, gamma, beta))
    err_f = float(jnp.max(jnp.abs(out - ref_f)))
    assert err_f < 1e-1, f"f32-reference max abs err = {err_f}"

    print("KERNEL_OK")
</pallas_src>

<mosaic_0001>
module attributes {stable_mosaic.version = 11 : i64} {
  func.func @conv_stats_kernel(%arg0: i32, %arg1: memref<1x8x1246xbf16, #tpu.memory_space<vmem>>, %arg2: memref<27x8x8xbf16, #tpu.memory_space<vmem>>, %arg3: memref<1x1024xf32, #tpu.memory_space<vmem>>, %arg4: memref<1x8x1024xf32, #tpu.memory_space<vmem>>, %arg5: memref<1x8x1xf32, #tpu.memory_space<vmem>>, %arg6: memref<1x8x1xf32, #tpu.memory_space<vmem>>) attributes {dimension_semantics = [#tpu.dimension_semantics<parallel>], iteration_bounds = array<i64: 2>, scalar_prefetch = 0 : i64, scratch_operands = 0 : i64, tpu.core_type = #tpu.core_type<tc>, window_params = [{transform_indices = @transform_0, window_bounds = array<i64: 1, 8, 1246>}, {pipeline_mode = #tpu.pipeline_mode<synchronous>, transform_indices = @transform_1, window_bounds = array<i64: 27, 8, 8>}, {pipeline_mode = #tpu.pipeline_mode<synchronous>, transform_indices = @transform_2, window_bounds = array<i64: 1, 1024>}, {transform_indices = @transform_3, window_bounds = array<i64: 1, 8, 1024>}, {transform_indices = @transform_4, window_bounds = array<i64: 1, 8, 1>}, {transform_indices = @transform_5, window_bounds = array<i64: 1, 8, 1>}]} {
    %cst = arith.constant 0.000000e+00 : f32
    %0 = vector.broadcast %cst : f32 to vector<8x1024xf32>
    %c0 = arith.constant 0 : index
    %c0_0 = arith.constant 0 : index
    %c0_1 = arith.constant 0 : index
    %1 = vector.load %arg2[%c0, %c0_0, %c0_1] : memref<27x8x8xbf16, #tpu.memory_space<vmem>>, vector<1x8x8xbf16>
    %2 = vector.shape_cast %1 : vector<1x8x8xbf16> to vector<8x8xbf16>
    %c0_2 = arith.constant 0 : index
    %c0_3 = arith.constant 0 : index
    %c0_4 = arith.constant 0 : index
    %3 = vector.load %arg1[%c0_2, %c0_3, %c0_4] : memref<1x8x1246xbf16, #tpu.memory_space<vmem>>, vector<1x8x1024xbf16>
    %4 = vector.shape_cast %3 : vector<1x8x1024xbf16> to vector<8x1024xbf16>
    %cst_5 = arith.constant dense<0.000000e+00> : vector<8x1024xf32>
    %5 = tpu.matmul %2, %4, %cst_5 {dimension_numbers = #tpu.dot_dimension_numbers<[1], [0], [0], [1], [0, 0, 1, 1], [], []>} : vector<8x8xbf16>, vector<8x1024xbf16>, vector<8x1024xf32> -> vector<8x1024xf32>
    %6 = arith.addf %0, %5 : vector<8x1024xf32>
    %c1 = arith.constant 1 : index
    %c0_6 = arith.constant 0 : index
    %c0_7 = arith.constant 0 : index
    %7 = vector.load %arg2[%c1, %c0_6, %c0_7] : memref<27x8x8xbf16, #tpu.memory_space<vmem>>, vector<1x8x8xbf16>
    %8 = vector.shape_cast %7 : vector<1x8x8xbf16> to vector<8x8xbf16>
    %c0_8 = arith.constant 0 : index
    %c0_9 = arith.constant 0 : index
    %c1_10 = arith.constant 1 : index
    %9 = vector.load %arg1[%c0_8, %c0_9, %c1_10] : memref<1x8x1246xbf16, #tpu.memory_space<vmem>>, vector<1x8x1024xbf16>
    %10 = vector.shape_cast %9 : vector<1x8x1024xbf16> to vector<8x1024xbf16>
    %cst_11 = arith.constant dense<0.000000e+00> : vector<8x1024xf32>
    %11 = tpu.matmul %8, %10, %cst_11 {dimension_numbers = #tpu.dot_dimension_numbers<[1], [0], [0], [1], [0, 0, 1, 1], [], []>} : vector<8x8xbf16>, vector<8x1024xbf16>, vector<8x1024xf32> -> vector<8x1024xf32>
    %12 = arith.addf %6, %11 : vector<8x1024xf32>
    %c2 = arith.constant 2 : index
    %c0_12 = arith.constant 0 : index
    %c0_13 = arith.constant 0 : index
    %13 = vector.load %arg2[%c2, %c0_12, %c0_13] : memref<27x8x8xbf16, #tpu.memory_space<vmem>>, vector<1x8x8xbf16>
    %14 = vector.shape_cast %13 : vector<1x8x8xbf16> to vector<8x8xbf16>
    %c0_14 = arith.constant 0 : index
    %c0_15 = arith.constant 0 : index
    %c2_16 = arith.constant 2 : index
    %15 = vector.load %arg1[%c0_14, %c0_15, %c2_16] : memref<1x8x1246xbf16, #tpu.memory_space<vmem>>, vector<1x8x1024xbf16>
    %16 = vector.shape_cast %15 : vector<1x8x1024xbf16> to vector<8x1024xbf16>
    %cst_17 = arith.constant dense<0.000000e+00> : vector<8x1024xf32>
    %17 = tpu.matmul %14, %16, %cst_17 {dimension_numbers = #tpu.dot_dimension_numbers<[1], [0], [0], [1], [0, 0, 1, 1], [], []>} : vector<8x8xbf16>, vector<8x1024xbf16>, vector<8x1024xf32> -> vector<8x1024xf32>
    %18 = arith.addf %12, %17 : vector<8x1024xf32>
    %c3 = arith.constant 3 : index
    %c0_18 = arith.constant 0 : index
    %c0_19 = arith.constant 0 : index
    %19 = vector.load %arg2[%c3, %c0_18, %c0_19] : memref<27x8x8xbf16, #tpu.memory_space<vmem>>, vector<1x8x8xbf16>
    %20 = vector.shape_cast %19 : vector<1x8x8xbf16> to vector<8x8xbf16>
    %c0_20 = arith.constant 0 : index
    %c0_21 = arith.constant 0 : index
    %c10 = arith.constant 10 : index
    %21 = vector.load %arg1[%c0_20, %c0_21, %c10] : memref<1x8x1246xbf16, #tpu.memory_space<vmem>>, vector<1x8x1024xbf16>
    %22 = vector.shape_cast %21 : vector<1x8x1024xbf16> to vector<8x1024xbf16>
    %cst_22 = arith.constant dense<0.000000e+00> : vector<8x1024xf32>
    %23 = tpu.matmul %20, %22, %cst_22 {dimension_numbers = #tpu.dot_dimension_numbers<[1], [0], [0], [1], [0, 0, 1, 1], [], []>} : vector<8x8xbf16>, vector<8x1024xbf16>, vector<8x1024xf32> -> vector<8x1024xf32>
    %24 = arith.addf %18, %23 : vector<8x1024xf32>
    %c4 = arith.constant 4 : index
    %c0_23 = arith.constant 0 : index
    %c0_24 = arith.constant 0 : index
    %25 = vector.load %arg2[%c4, %c0_23, %c0_24] : memref<27x8x8xbf16, #tpu.memory_space<vmem>>, vector<1x8x8xbf16>
    %26 = vector.shape_cast %25 : vector<1x8x8xbf16> to vector<8x8xbf16>
    %c0_25 = arith.constant 0 : index
    %c0_26 = arith.constant 0 : index
    %c11 = arith.constant 11 : index
    %27 = vector.load %arg1[%c0_25, %c0_26, %c11] : memref<1x8x1246xbf16, #tpu.memory_space<vmem>>, vector<1x8x1024xbf16>
    %28 = vector.shape_cast %27 : vector<1x8x1024xbf16> to vector<8x1024xbf16>
    %cst_27 = arith.constant dense<0.000000e+00> : vector<8x1024xf32>
    %29 = tpu.matmul %26, %28, %cst_27 {dimension_numbers = #tpu.dot_dimension_numbers<[1], [0], [0], [1], [0, 0, 1, 1], [], []>} : vector<8x8xbf16>, vector<8x1024xbf16>, vector<8x1024xf32> -> vector<8x1024xf32>
    %30 = arith.addf %24, %29 : vector<8x1024xf32>
    %c5 = arith.constant 5 : index
    %c0_28 = arith.constant 0 : index
    %c0_29 = arith.constant 0 : index
    %31 = vector.load %arg2[%c5, %c0_28, %c0_29] : memref<27x8x8xbf16, #tpu.memory_space<vmem>>, vector<1x8x8xbf16>
    %32 = vector.shape_cast %31 : vector<1x8x8xbf16> to vector<8x8xbf16>
    %c0_30 = arith.constant 0 : index
    %c0_31 = arith.constant 0 : index
    %c12 = arith.constant 12 : index
    %33 = vector.load %arg1[%c0_30, %c0_31, %c12] : memref<1x8x1246xbf16, #tpu.memory_space<vmem>>, vector<1x8x1024xbf16>
    %34 = vector.shape_cast %33 : vector<1x8x1024xbf16> to vector<8x1024xbf16>
    %cst_32 = arith.constant dense<0.000000e+00> : vector<8x1024xf32>
    %35 = tpu.matmul %32, %34, %cst_32 {dimension_numbers = #tpu.dot_dimension_numbers<[1], [0], [0], [1], [0, 0, 1, 1], [], []>} : vector<8x8xbf16>, vector<8x1024xbf16>, vector<8x1024xf32> -> vector<8x1024xf32>
    %36 = arith.addf %30, %35 : vector<8x1024xf32>
    %c6 = arith.constant 6 : index
    %c0_33 = arith.constant 0 : index
    %c0_34 = arith.constant 0 : index
    %37 = vector.load %arg2[%c6, %c0_33, %c0_34] : memref<27x8x8xbf16, #tpu.memory_space<vmem>>, vector<1x8x8xbf16>
    %38 = vector.shape_cast %37 : vector<1x8x8xbf16> to vector<8x8xbf16>
    %c0_35 = arith.constant 0 : index
    %c0_36 = arith.constant 0 : index
    %c20 = arith.constant 20 : index
    %39 = vector.load %arg1[%c0_35, %c0_36, %c20] : memref<1x8x1246xbf16, #tpu.memory_space<vmem>>, vector<1x8x1024xbf16>
    %40 = vector.shape_cast %39 : vector<1x8x1024xbf16> to vector<8x1024xbf16>
    %cst_37 = arith.constant dense<0.000000e+00> : vector<8x1024xf32>
    %41 = tpu.matmul %38, %40, %cst_37 {dimension_numbers = #tpu.dot_dimension_numbers<[1], [0], [0], [1], [0, 0, 1, 1], [], []>} : vector<8x8xbf16>, vector<8x1024xbf16>, vector<8x1024xf32> -> vector<8x1024xf32>
    %42 = arith.addf %36, %41 : vector<8x1024xf32>
    %c7 = arith.constant 7 : index
    %c0_38 = arith.constant 0 : index
    %c0_39 = arith.constant 0 : index
    %43 = vector.load %arg2[%c7, %c0_38, %c0_39] : memref<27x8x8xbf16, #tpu.memory_space<vmem>>, vector<1x8x8xbf16>
    %44 = vector.shape_cast %43 : vector<1x8x8xbf16> to vector<8x8xbf16>
    %c0_40 = arith.constant 0 : index
    %c0_41 = arith.constant 0 : index
    %c21 = arith.constant 21 : index
    %45 = vector.load %arg1[%c0_40, %c0_41, %c21] : memref<1x8x1246xbf16, #tpu.memory_space<vmem>>, vector<1x8x1024xbf16>
    %46 = vector.shape_cast %45 : vector<1x8x1024xbf16> to vector<8x1024xbf16>
    %cst_42 = arith.constant dense<0.000000e+00> : vector<8x1024xf32>
    %47 = tpu.matmul %44, %46, %cst_42 {dimension_numbers = #tpu.dot_dimension_numbers<[1], [0], [0], [1], [0, 0, 1, 1], [], []>} : vector<8x8xbf16>, vector<8x1024xbf16>, vector<8x1024xf32> -> vector<8x1024xf32>
    %48 = arith.addf %42, %47 : vector<8x1024xf32>
    %c8 = arith.constant 8 : index
    %c0_43 = arith.constant 0 : index
    %c0_44 = arith.constant 0 : index
    %49 = vector.load %arg2[%c8, %c0_43, %c0_44] : memref<27x8x8xbf16, #tpu.memory_space<vmem>>, vector<1x8x8xbf16>
    %50 = vector.shape_cast %49 : vector<1x8x8xbf16> to vector<8x8xbf16>
    %c0_45 = arith.constant 0 : index
    %c0_46 = arith.constant 0 : index
    %c22 = arith.constant 22 : index
    %51 = vector.load %arg1[%c0_45, %c0_46, %c22] : memref<1x8x1246xbf16, #tpu.memory_space<vmem>>, vector<1x8x1024xbf16>
    %52 = vector.shape_cast %51 : vector<1x8x1024xbf16> to vector<8x1024xbf16>
    %cst_47 = arith.constant dense<0.000000e+00> : vector<8x1024xf32>
    %53 = tpu.matmul %50, %52, %cst_47 {dimension_numbers = #tpu.dot_dimension_numbers<[1], [0], [0], [1], [0, 0, 1, 1], [], []>} : vector<8x8xbf16>, vector<8x1024xbf16>, vector<8x1024xf32> -> vector<8x1024xf32>
    %54 = arith.addf %48, %53 : vector<8x1024xf32>
    %c9 = arith.constant 9 : index
    %c0_48 = arith.constant 0 : index
    %c0_49 = arith.constant 0 : index
    %55 = vector.load %arg2[%c9, %c0_48, %c0_49] : memref<27x8x8xbf16, #tpu.memory_space<vmem>>, vector<1x8x8xbf16>
    %56 = vector.shape_cast %55 : vector<1x8x8xbf16> to vector<8x8xbf16>
    %c0_50 = arith.constant 0 : index
    %c0_51 = arith.constant 0 : index
    %c100 = arith.constant 100 : index
    %57 = vector.load %arg1[%c0_50, %c0_51, %c100] : memref<1x8x1246xbf16, #tpu.memory_space<vmem>>, vector<1x8x1024xbf16>
    %58 = vector.shape_cast %57 : vector<1x8x1024xbf16> to vector<8x1024xbf16>
    %cst_52 = arith.constant dense<0.000000e+00> : vector<8x1024xf32>
    %59 = tpu.matmul %56, %58, %cst_52 {dimension_numbers = #tpu.dot_dimension_numbers<[1], [0], [0], [1], [0, 0, 1, 1], [], []>} : vector<8x8xbf16>, vector<8x1024xbf16>, vector<8x1024xf32> -> vector<8x1024xf32>
    %60 = arith.addf %54, %59 : vector<8x1024xf32>
    %c10_53 = arith.constant 10 : index
    %c0_54 = arith.constant 0 : index
    %c0_55 = arith.constant 0 : index
    %61 = vector.load %arg2[%c10_53, %c0_54, %c0_55] : memref<27x8x8xbf16, #tpu.memory_space<vmem>>, vector<1x8x8xbf16>
    %62 = vector.shape_cast %61 : vector<1x8x8xbf16> to vector<8x8xbf16>
    %c0_56 = arith.constant 0 : index
    %c0_57 = arith.constant 0 : index
    %c101 = arith.constant 101 : index
    %63 = vector.load %arg1[%c0_56, %c0_57, %c101] : memref<1x8x1246xbf16, #tpu.memory_space<vmem>>, vector<1x8x1024xbf16>
    %64 = vector.shape_cast %63 : vector<1x8x1024xbf16> to vector<8x1024xbf16>
    %cst_58 = arith.constant dense<0.000000e+00> : vector<8x1024xf32>
    %65 = tpu.matmul %62, %64, %cst_58 {dimension_numbers = #tpu.dot_dimension_numbers<[1], [0], [0], [1], [0, 0, 1, 1], [], []>} : vector<8x8xbf16>, vector<8x1024xbf16>, vector<8x1024xf32> -> vector<8x1024xf32>
    %66 = arith.addf %60, %65 : vector<8x1024xf32>
    %c11_59 = arith.constant 11 : index
    %c0_60 = arith.constant 0 : index
    %c0_61 = arith.constant 0 : index
    %67 = vector.load %arg2[%c11_59, %c0_60, %c0_61] : memref<27x8x8xbf16, #tpu.memory_space<vmem>>, vector<1x8x8xbf16>
    %68 = vector.shape_cast %67 : vector<1x8x8xbf16> to vector<8x8xbf16>
    %c0_62 = arith.constant 0 : index
    %c0_63 = arith.constant 0 : index
    %c102 = arith.constant 102 : index
    %69 = vector.load %arg1[%c0_62, %c0_63, %c102] : memref<1x8x1246xbf16, #tpu.memory_space<vmem>>, vector<1x8x1024xbf16>
    %70 = vector.shape_cast %69 : vector<1x8x1024xbf16> to vector<8x1024xbf16>
    %cst_64 = arith.constant dense<0.000000e+00> : vector<8x1024xf32>
    %71 = tpu.matmul %68, %70, %cst_64 {dimension_numbers = #tpu.dot_dimension_numbers<[1], [0], [0], [1], [0, 0, 1, 1], [], []>} : vector<8x8xbf16>, vector<8x1024xbf16>, vector<8x1024xf32> -> vector<8x1024xf32>
    %72 = arith.addf %66, %71 : vector<8x1024xf32>
    %c12_65 = arith.constant 12 : index
    %c0_66 = arith.constant 0 : index
    %c0_67 = arith.constant 0 : index
    %73 = vector.load %arg2[%c12_65, %c0_66, %c0_67] : memref<27x8x8xbf16, #tpu.memory_space<vmem>>, vector<1x8x8xbf16>
    %74 = vector.shape_cast %73 : vector<1x8x8xbf16> to vector<8x8xbf16>
    %c0_68 = arith.constant 0 : index
    %c0_69 = arith.constant 0 : index
    %c110 = arith.constant 110 : index
    %75 = vector.load %arg1[%c0_68, %c0_69, %c110] : memref<1x8x1246xbf16, #tpu.memory_space<vmem>>, vector<1x8x1024xbf16>
    %76 = vector.shape_cast %75 : vector<1x8x1024xbf16> to vector<8x1024xbf16>
    %cst_70 = arith.constant dense<0.000000e+00> : vector<8x1024xf32>
    %77 = tpu.matmul %74, %76, %cst_70 {dimension_numbers = #tpu.dot_dimension_numbers<[1], [0], [0], [1], [0, 0, 1, 1], [], []>} : vector<8x8xbf16>, vector<8x1024xbf16>, vector<8x1024xf32> -> vector<8x1024xf32>
    %78 = arith.addf %72, %77 : vector<8x1024xf32>
    %c13 = arith.constant 13 : index
    %c0_71 = arith.constant 0 : index
    %c0_72 = arith.constant 0 : index
    %79 = vector.load %arg2[%c13, %c0_71, %c0_72] : memref<27x8x8xbf16, #tpu.memory_space<vmem>>, vector<1x8x8xbf16>
    %80 = vector.shape_cast %79 : vector<1x8x8xbf16> to vector<8x8xbf16>
    %c0_73 = arith.constant 0 : index
    %c0_74 = arith.constant 0 : index
    %c111 = arith.constant 111 : index
    %81 = vector.load %arg1[%c0_73, %c0_74, %c111] : memref<1x8x1246xbf16, #tpu.memory_space<vmem>>, vector<1x8x1024xbf16>
    %82 = vector.shape_cast %81 : vector<1x8x1024xbf16> to vector<8x1024xbf16>
    %cst_75 = arith.constant dense<0.000000e+00> : vector<8x1024xf32>
    %83 = tpu.matmul %80, %82, %cst_75 {dimension_numbers = #tpu.dot_dimension_numbers<[1], [0], [0], [1], [0, 0, 1, 1], [], []>} : vector<8x8xbf16>, vector<8x1024xbf16>, vector<8x1024xf32> -> vector<8x1024xf32>
    %84 = arith.addf %78, %83 : vector<8x1024xf32>
    %c14 = arith.constant 14 : index
    %c0_76 = arith.constant 0 : index
    %c0_77 = arith.constant 0 : index
    %85 = vector.load %arg2[%c14, %c0_76, %c0_77] : memref<27x8x8xbf16, #tpu.memory_space<vmem>>, vector<1x8x8xbf16>
    %86 = vector.shape_cast %85 : vector<1x8x8xbf16> to vector<8x8xbf16>
    %c0_78 = arith.constant 0 : index
    %c0_79 = arith.constant 0 : index
    %c112 = arith.constant 112 : index
    %87 = vector.load %arg1[%c0_78, %c0_79, %c112] : memref<1x8x1246xbf16, #tpu.memory_space<vmem>>, vector<1x8x1024xbf16>
    %88 = vector.shape_cast %87 : vector<1x8x1024xbf16> to vector<8x1024xbf16>
    %cst_80 = arith.constant dense<0.000000e+00> : vector<8x1024xf32>
    %89 = tpu.matmul %86, %88, %cst_80 {dimension_numbers = #tpu.dot_dimension_numbers<[1], [0], [0], [1], [0, 0, 1, 1], [], []>} : vector<8x8xbf16>, vector<8x1024xbf16>, vector<8x1024xf32> -> vector<8x1024xf32>
    %90 = arith.addf %84, %89 : vector<8x1024xf32>
    %c15 = arith.constant 15 : index
    %c0_81 = arith.constant 0 : index
    %c0_82 = arith.constant 0 : index
    %91 = vector.load %arg2[%c15, %c0_81, %c0_82] : memref<27x8x8xbf16, #tpu.memory_space<vmem>>, vector<1x8x8xbf16>
    %92 = vector.shape_cast %91 : vector<1x8x8xbf16> to vector<8x8xbf16>
    %c0_83 = arith.constant 0 : index
    %c0_84 = arith.constant 0 : index
    %c120 = arith.constant 120 : index
    %93 = vector.load %arg1[%c0_83, %c0_84, %c120] : memref<1x8x1246xbf16, #tpu.memory_space<vmem>>, vector<1x8x1024xbf16>
    %94 = vector.shape_cast %93 : vector<1x8x1024xbf16> to vector<8x1024xbf16>
    %cst_85 = arith.constant dense<0.000000e+00> : vector<8x1024xf32>
    %95 = tpu.matmul %92, %94, %cst_85 {dimension_numbers = #tpu.dot_dimension_numbers<[1], [0], [0], [1], [0, 0, 1, 1], [], []>} : vector<8x8xbf16>, vector<8x1024xbf16>, vector<8x1024xf32> -> vector<8x1024xf32>
    %96 = arith.addf %90, %95 : vector<8x1024xf32>
    %c16 = arith.constant 16 : index
    %c0_86 = arith.constant 0 : index
    %c0_87 = arith.constant 0 : index
    %97 = vector.load %arg2[%c16, %c0_86, %c0_87] : memref<27x8x8xbf16, #tpu.memory_space<vmem>>, vector<1x8x8xbf16>
    %98 = vector.shape_cast %97 : vector<1x8x8xbf16> to vector<8x8xbf16>
    %c0_88 = arith.constant 0 : index
    %c0_89 = arith.constant 0 : index
    %c121 = arith.constant 121 : index
    %99 = vector.load %arg1[%c0_88, %c0_89, %c121] : memref<1x8x1246xbf16, #tpu.memory_space<vmem>>, vector<1x8x1024xbf16>
    %100 = vector.shape_cast %99 : vector<1x8x1024xbf16> to vector<8x1024xbf16>
    %cst_90 = arith.constant dense<0.000000e+00> : vector<8x1024xf32>
    %101 = tpu.matmul %98, %100, %cst_90 {dimension_numbers = #tpu.dot_dimension_numbers<[1], [0], [0], [1], [0, 0, 1, 1], [], []>} : vector<8x8xbf16>, vector<8x1024xbf16>, vector<8x1024xf32> -> vector<8x1024xf32>
    %102 = arith.addf %96, %101 : vector<8x1024xf32>
    %c17 = arith.constant 17 : index
    %c0_91 = arith.constant 0 : index
    %c0_92 = arith.constant 0 : index
    %103 = vector.load %arg2[%c17, %c0_91, %c0_92] : memref<27x8x8xbf16, #tpu.memory_space<vmem>>, vector<1x8x8xbf16>
    %104 = vector.shape_cast %103 : vector<1x8x8xbf16> to vector<8x8xbf16>
    %c0_93 = arith.constant 0 : index
    %c0_94 = arith.constant 0 : index
    %c122 = arith.constant 122 : index
    %105 = vector.load %arg1[%c0_93, %c0_94, %c122] : memref<1x8x1246xbf16, #tpu.memory_space<vmem>>, vector<1x8x1024xbf16>
    %106 = vector.shape_cast %105 : vector<1x8x1024xbf16> to vector<8x1024xbf16>
    %cst_95 = arith.constant dense<0.000000e+00> : vector<8x1024xf32>
    %107 = tpu.matmul %104, %106, %cst_95 {dimension_numbers = #tpu.dot_dimension_numbers<[1], [0], [0], [1], [0, 0, 1, 1], [], []>} : vector<8x8xbf16>, vector<8x1024xbf16>, vector<8x1024xf32> -> vector<8x1024xf32>
    %108 = arith.addf %102, %107 : vector<8x1024xf32>
    %c18 = arith.constant 18 : index
    %c0_96 = arith.constant 0 : index
    %c0_97 = arith.constant 0 : index
    %109 = vector.load %arg2[%c18, %c0_96, %c0_97] : memref<27x8x8xbf16, #tpu.memory_space<vmem>>, vector<1x8x8xbf16>
    %110 = vector.shape_cast %109 : vector<1x8x8xbf16> to vector<8x8xbf16>
    %c0_98 = arith.constant 0 : index
    %c0_99 = arith.constant 0 : index
    %c200 = arith.constant 200 : index
    %111 = vector.load %arg1[%c0_98, %c0_99, %c200] : memref<1x8x1246xbf16, #tpu.memory_space<vmem>>, vector<1x8x1024xbf16>
    %112 = vector.shape_cast %111 : vector<1x8x1024xbf16> to vector<8x1024xbf16>
    %cst_100 = arith.constant dense<0.000000e+00> : vector<8x1024xf32>
    %113 = tpu.matmul %110, %112, %cst_100 {dimension_numbers = #tpu.dot_dimension_numbers<[1], [0], [0], [1], [0, 0, 1, 1], [], []>} : vector<8x8xbf16>, vector<8x1024xbf16>, vector<8x1024xf32> -> vector<8x1024xf32>
    %114 = arith.addf %108, %113 : vector<8x1024xf32>
    %c19 = arith.constant 19 : index
    %c0_101 = arith.constant 0 : index
    %c0_102 = arith.constant 0 : index
    %115 = vector.load %arg2[%c19, %c0_101, %c0_102] : memref<27x8x8xbf16, #tpu.memory_space<vmem>>, vector<1x8x8xbf16>
    %116 = vector.shape_cast %115 : vector<1x8x8xbf16> to vector<8x8xbf16>
    %c0_103 = arith.constant 0 : index
    %c0_104 = arith.constant 0 : index
    %c201 = arith.constant 201 : index
    %117 = vector.load %arg1[%c0_103, %c0_104, %c201] : memref<1x8x1246xbf16, #tpu.memory_space<vmem>>, vector<1x8x1024xbf16>
    %118 = vector.shape_cast %117 : vector<1x8x1024xbf16> to vector<8x1024xbf16>
    %cst_105 = arith.constant dense<0.000000e+00> : vector<8x1024xf32>
    %119 = tpu.matmul %116, %118, %cst_105 {dimension_numbers = #tpu.dot_dimension_numbers<[1], [0], [0], [1], [0, 0, 1, 1], [], []>} : vector<8x8xbf16>, vector<8x1024xbf16>, vector<8x1024xf32> -> vector<8x1024xf32>
    %120 = arith.addf %114, %119 : vector<8x1024xf32>
    %c20_106 = arith.constant 20 : index
    %c0_107 = arith.constant 0 : index
    %c0_108 = arith.constant 0 : index
    %121 = vector.load %arg2[%c20_106, %c0_107, %c0_108] : memref<27x8x8xbf16, #tpu.memory_space<vmem>>, vector<1x8x8xbf16>
    %122 = vector.shape_cast %121 : vector<1x8x8xbf16> to vector<8x8xbf16>
    %c0_109 = arith.constant 0 : index
    %c0_110 = arith.constant 0 : index
    %c202 = arith.constant 202 : index
    %123 = vector.load %arg1[%c0_109, %c0_110, %c202] : memref<1x8x1246xbf16, #tpu.memory_space<vmem>>, vector<1x8x1024xbf16>
    %124 = vector.shape_cast %123 : vector<1x8x1024xbf16> to vector<8x1024xbf16>
    %cst_111 = arith.constant dense<0.000000e+00> : vector<8x1024xf32>
    %125 = tpu.matmul %122, %124, %cst_111 {dimension_numbers = #tpu.dot_dimension_numbers<[1], [0], [0], [1], [0, 0, 1, 1], [], []>} : vector<8x8xbf16>, vector<8x1024xbf16>, vector<8x1024xf32> -> vector<8x1024xf32>
    %126 = arith.addf %120, %125 : vector<8x1024xf32>
    %c21_112 = arith.constant 21 : index
    %c0_113 = arith.constant 0 : index
    %c0_114 = arith.constant 0 : index
    %127 = vector.load %arg2[%c21_112, %c0_113, %c0_114] : memref<27x8x8xbf16, #tpu.memory_space<vmem>>, vector<1x8x8xbf16>
    %128 = vector.shape_cast %127 : vector<1x8x8xbf16> to vector<8x8xbf16>
    %c0_115 = arith.constant 0 : index
    %c0_116 = arith.constant 0 : index
    %c210 = arith.constant 210 : index
    %129 = vector.load %arg1[%c0_115, %c0_116, %c210] : memref<1x8x1246xbf16, #tpu.memory_space<vmem>>, vector<1x8x1024xbf16>
    %130 = vector.shape_cast %129 : vector<1x8x1024xbf16> to vector<8x1024xbf16>
    %cst_117 = arith.constant dense<0.000000e+00> : vector<8x1024xf32>
    %131 = tpu.matmul %128, %130, %cst_117 {dimension_numbers = #tpu.dot_dimension_numbers<[1], [0], [0], [1], [0, 0, 1, 1], [], []>} : vector<8x8xbf16>, vector<8x1024xbf16>, vector<8x1024xf32> -> vector<8x1024xf32>
    %132 = arith.addf %126, %131 : vector<8x1024xf32>
    %c22_118 = arith.constant 22 : index
    %c0_119 = arith.constant 0 : index
    %c0_120 = arith.constant 0 : index
    %133 = vector.load %arg2[%c22_118, %c0_119, %c0_120] : memref<27x8x8xbf16, #tpu.memory_space<vmem>>, vector<1x8x8xbf16>
    %134 = vector.shape_cast %133 : vector<1x8x8xbf16> to vector<8x8xbf16>
    %c0_121 = arith.constant 0 : index
    %c0_122 = arith.constant 0 : index
    %c211 = arith.constant 211 : index
    %135 = vector.load %arg1[%c0_121, %c0_122, %c211] : memref<1x8x1246xbf16, #tpu.memory_space<vmem>>, vector<1x8x1024xbf16>
    %136 = vector.shape_cast %135 : vector<1x8x1024xbf16> to vector<8x1024xbf16>
    %cst_123 = arith.constant dense<0.000000e+00> : vector<8x1024xf32>
    %137 = tpu.matmul %134, %136, %cst_123 {dimension_numbers = #tpu.dot_dimension_numbers<[1], [0], [0], [1], [0, 0, 1, 1], [], []>} : vector<8x8xbf16>, vector<8x1024xbf16>, vector<8x1024xf32> -> vector<8x1024xf32>
    %138 = arith.addf %132, %137 : vector<8x1024xf32>
    %c23 = arith.constant 23 : index
    %c0_124 = arith.constant 0 : index
    %c0_125 = arith.constant 0 : index
    %139 = vector.load %arg2[%c23, %c0_124, %c0_125] : memref<27x8x8xbf16, #tpu.memory_space<vmem>>, vector<1x8x8xbf16>
    %140 = vector.shape_cast %139 : vector<1x8x8xbf16> to vector<8x8xbf16>
    %c0_126 = arith.constant 0 : index
    %c0_127 = arith.constant 0 : index
    %c212 = arith.constant 212 : index
    %141 = vector.load %arg1[%c0_126, %c0_127, %c212] : memref<1x8x1246xbf16, #tpu.memory_space<vmem>>, vector<1x8x1024xbf16>
    %142 = vector.shape_cast %141 : vector<1x8x1024xbf16> to vector<8x1024xbf16>
    %cst_128 = arith.constant dense<0.000000e+00> : vector<8x1024xf32>
    %143 = tpu.matmul %140, %142, %cst_128 {dimension_numbers = #tpu.dot_dimension_numbers<[1], [0], [0], [1], [0, 0, 1, 1], [], []>} : vector<8x8xbf16>, vector<8x1024xbf16>, vector<8x1024xf32> -> vector<8x1024xf32>
    %144 = arith.addf %138, %143 : vector<8x1024xf32>
    %c24 = arith.constant 24 : index
    %c0_129 = arith.constant 0 : index
    %c0_130 = arith.constant 0 : index
    %145 = vector.load %arg2[%c24, %c0_129, %c0_130] : memref<27x8x8xbf16, #tpu.memory_space<vmem>>, vector<1x8x8xbf16>
    %146 = vector.shape_cast %145 : vector<1x8x8xbf16> to vector<8x8xbf16>
    %c0_131 = arith.constant 0 : index
    %c0_132 = arith.constant 0 : index
    %c220 = arith.constant 220 : index
    %147 = vector.load %arg1[%c0_131, %c0_132, %c220] : memref<1x8x1246xbf16, #tpu.memory_space<vmem>>, vector<1x8x1024xbf16>
    %148 = vector.shape_cast %147 : vector<1x8x1024xbf16> to vector<8x1024xbf16>
    %cst_133 = arith.constant dense<0.000000e+00> : vector<8x1024xf32>
    %149 = tpu.matmul %146, %148, %cst_133 {dimension_numbers = #tpu.dot_dimension_numbers<[1], [0], [0], [1], [0, 0, 1, 1], [], []>} : vector<8x8xbf16>, vector<8x1024xbf16>, vector<8x1024xf32> -> vector<8x1024xf32>
    %150 = arith.addf %144, %149 : vector<8x1024xf32>
    %c25 = arith.constant 25 : index
    %c0_134 = arith.constant 0 : index
    %c0_135 = arith.constant 0 : index
    %151 = vector.load %arg2[%c25, %c0_134, %c0_135] : memref<27x8x8xbf16, #tpu.memory_space<vmem>>, vector<1x8x8xbf16>
    %152 = vector.shape_cast %151 : vector<1x8x8xbf16> to vector<8x8xbf16>
    %c0_136 = arith.constant 0 : index
    %c0_137 = arith.constant 0 : index
    %c221 = arith.constant 221 : index
    %153 = vector.load %arg1[%c0_136, %c0_137, %c221] : memref<1x8x1246xbf16, #tpu.memory_space<vmem>>, vector<1x8x1024xbf16>
    %154 = vector.shape_cast %153 : vector<1x8x1024xbf16> to vector<8x1024xbf16>
    %cst_138 = arith.constant dense<0.000000e+00> : vector<8x1024xf32>
    %155 = tpu.matmul %152, %154, %cst_138 {dimension_numbers = #tpu.dot_dimension_numbers<[1], [0], [0], [1], [0, 0, 1, 1], [], []>} : vector<8x8xbf16>, vector<8x1024xbf16>, vector<8x1024xf32> -> vector<8x1024xf32>
    %156 = arith.addf %150, %155 : vector<8x1024xf32>
    %c26 = arith.constant 26 : index
    %c0_139 = arith.constant 0 : index
    %c0_140 = arith.constant 0 : index
    %157 = vector.load %arg2[%c26, %c0_139, %c0_140] : memref<27x8x8xbf16, #tpu.memory_space<vmem>>, vector<1x8x8xbf16>
    %158 = vector.shape_cast %157 : vector<1x8x8xbf16> to vector<8x8xbf16>
    %c0_141 = arith.constant 0 : index
    %c0_142 = arith.constant 0 : index
    %c222 = arith.constant 222 : index
    %159 = vector.load %arg1[%c0_141, %c0_142, %c222] : memref<1x8x1246xbf16, #tpu.memory_space<vmem>>, vector<1x8x1024xbf16>
    %160 = vector.shape_cast %159 : vector<1x8x1024xbf16> to vector<8x1024xbf16>
    %cst_143 = arith.constant dense<0.000000e+00> : vector<8x1024xf32>
    %161 = tpu.matmul %158, %160, %cst_143 {dimension_numbers = #tpu.dot_dimension_numbers<[1], [0], [0], [1], [0, 0, 1, 1], [], []>} : vector<8x8xbf16>, vector<8x1024xbf16>, vector<8x1024xf32> -> vector<8x1024xf32>
    %162 = arith.addf %156, %161 : vector<8x1024xf32>
    %c0_144 = arith.constant 0 : index
    %c0_145 = arith.constant 0 : index
    %c0_146 = arith.constant 0 : index
    %163 = vector.load %arg4[%c0_144, %c0_145, %c0_146] : memref<1x8x1024xf32, #tpu.memory_space<vmem>>, vector<1x8x1024xf32>
    %164 = vector.shape_cast %163 : vector<1x8x1024xf32> to vector<8x1024xf32>
    %165 = vector.shape_cast %162 : vector<8x1024xf32> to vector<1x8x1024xf32>
    tpu.vector_store %arg4[%c0_144, %c0_145, %c0_146], %165 {strides = array<i32>} : memref<1x8x1024xf32, #tpu.memory_space<vmem>>, vector<1x8x1024xf32>,
    %c0_147 = arith.constant 0 : index
    %c0_148 = arith.constant 0 : index
    %166 = vector.load %arg3[%c0_147, %c0_148] : memref<1x1024xf32, #tpu.memory_space<vmem>>, vector<1x1024xf32>
    %167 = vector.broadcast %166 : vector<1x1024xf32> to vector<8x1024xf32>
    %168 = arith.mulf %162, %167 : vector<8x1024xf32>
    %cst_149 = arith.constant dense<0.000000e+00> : vector<8xf32>
    %169 = vector.multi_reduction <add>, %168, %cst_149 [1] : vector<8x1024xf32> to vector<8xf32>
    %170 = vector.shape_cast %169 : vector<8xf32> to vector<8x1xf32>
    %c0_150 = arith.constant 0 : index
    %c0_151 = arith.constant 0 : index
    %c0_152 = arith.constant 0 : index
    %171 = vector.load %arg5[%c0_150, %c0_151, %c0_152] : memref<1x8x1xf32, #tpu.memory_space<vmem>>, vector<1x8x1xf32>
    %172 = vector.shape_cast %171 : vector<1x8x1xf32> to vector<8x1xf32>
    %173 = vector.shape_cast %170 : vector<8x1xf32> to vector<1x8x1xf32>
    tpu.vector_store %arg5[%c0_150, %c0_151, %c0_152], %173 {strides = array<i32>} : memref<1x8x1xf32, #tpu.memory_space<vmem>>, vector<1x8x1xf32>,
    %174 = arith.mulf %168, %162 : vector<8x1024xf32>
    %cst_153 = arith.constant dense<0.000000e+00> : vector<8xf32>
    %175 = vector.multi_reduction <add>, %174, %cst_153 [1] : vector<8x1024xf32> to vector<8xf32>
    %176 = vector.shape_cast %175 : vector<8xf32> to vector<8x1xf32>
    %c0_154 = arith.constant 0 : index
    %c0_155 = arith.constant 0 : index
    %c0_156 = arith.constant 0 : index
    %177 = vector.load %arg6[%c0_154, %c0_155, %c0_156] : memref<1x8x1xf32, #tpu.memory_space<vmem>>, vector<1x8x1xf32>
    %178 = vector.shape_cast %177 : vector<1x8x1xf32> to vector<8x1xf32>
    %179 = vector.shape_cast %176 : vector<8x1xf32> to vector<1x8x1xf32>
    tpu.vector_store %arg6[%c0_154, %c0_155, %c0_156], %179 {strides = array<i32>} : memref<1x8x1xf32, #tpu.memory_space<vmem>>, vector<1x8x1xf32>,
    return
  }
  func.func @transform_0(%arg0: i32) -> (i32, i32, i32) {
    %c0_i32 = arith.constant 0 : i32
    %c0_i32_0 = arith.constant 0 : i32
    %c0_i32_1 = arith.constant 0 : i32
    return %arg0, %c0_i32, %c0_i32_0 : i32, i32, i32
  }
  func.func @transform_1(%arg0: i32) -> (i32, i32, i32) {
    %c0_i32 = arith.constant 0 : i32
    %c0_i32_0 = arith.constant 0 : i32
    %c0_i32_1 = arith.constant 0 : i32
    %c0_i32_2 = arith.constant 0 : i32
    return %c0_i32, %c0_i32_0, %c0_i32_1 : i32, i32, i32
  }
  func.func @transform_2(%arg0: i32) -> (i32, i32) {
    %c0_i32 = arith.constant 0 : i32
    %c0_i32_0 = arith.constant 0 : i32
    %c0_i32_1 = arith.constant 0 : i32
    return %c0_i32, %c0_i32_0 : i32, i32
  }
  func.func @transform_3(%arg0: i32) -> (i32, i32, i32) {
    %c0_i32 = arith.constant 0 : i32
    %c0_i32_0 = arith.constant 0 : i32
    %c0_i32_1 = arith.constant 0 : i32
    return %arg0, %c0_i32, %c0_i32_0 : i32, i32, i32
  }
  func.func @transform_4(%arg0: i32) -> (i32, i32, i32) {
    %c0_i32 = arith.constant 0 : i32
    %c0_i32_0 = arith.constant 0 : i32
    %c0_i32_1 = arith.constant 0 : i32
    return %arg0, %c0_i32, %c0_i32_0 : i32, i32, i32
  }
  func.func @transform_5(%arg0: i32) -> (i32, i32, i32) {
    %c0_i32 = arith.constant 0 : i32
    %c0_i32_0 = arith.constant 0 : i32
    %c0_i32_1 = arith.constant 0 : i32
    return %arg0, %c0_i32, %c0_i32_0 : i32, i32, i32
  }
}

module attributes {stable_mosaic.version = 11 : i64} {
  func.func @bn_act_kernel(%arg0: i32, %arg1: memref<1x8x1024xf32, #tpu.memory_space<vmem>>, %arg2: memref<8x1xf32, #tpu.memory_space<vmem>>, %arg3: memref<8x1xf32, #tpu.memory_space<vmem>>, %arg4: memref<1x8x1024xf32, #tpu.memory_space<vmem>>) attributes {dimension_semantics = [#tpu.dimension_semantics<parallel>], iteration_bounds = array<i64: 2>, scalar_prefetch = 0 : i64, scratch_operands = 0 : i64, tpu.core_type = #tpu.core_type<tc>, window_params = [{transform_indices = @transform_0, window_bounds = array<i64: 1, 8, 1024>}, {pipeline_mode = #tpu.pipeline_mode<synchronous>, transform_indices = @transform_1, window_bounds = array<i64: 8, 1>}, {pipeline_mode = #tpu.pipeline_mode<synchronous>, transform_indices = @transform_2, window_bounds = array<i64: 8, 1>}, {transform_indices = @transform_3, window_bounds = array<i64: 1, 8, 1024>}]} {
    %c0 = arith.constant 0 : index
    %c0_0 = arith.constant 0 : index
    %c0_1 = arith.constant 0 : index
    %0 = vector.load %arg1[%c0, %c0_0, %c0_1] : memref<1x8x1024xf32, #tpu.memory_space<vmem>>, vector<1x8x1024xf32>
    %1 = vector.shape_cast %0 : vector<1x8x1024xf32> to vector<8x1024xf32>
    %c0_2 = arith.constant 0 : index
    %c0_3 = arith.constant 0 : index
    %2 = vector.load %arg2[%c0_2, %c0_3] : memref<8x1xf32, #tpu.memory_space<vmem>>, vector<8x1xf32>
    %3 = vector.broadcast %2 : vector<8x1xf32> to vector<8x1024xf32>
    %4 = arith.mulf %1, %3 : vector<8x1024xf32>
    %c0_4 = arith.constant 0 : index
    %c0_5 = arith.constant 0 : index
    %5 = vector.load %arg3[%c0_4, %c0_5] : memref<8x1xf32, #tpu.memory_space<vmem>>, vector<8x1xf32>
    %6 = vector.broadcast %5 : vector<8x1xf32> to vector<8x1024xf32>
    %7 = arith.addf %4, %6 : vector<8x1024xf32>
    %cst = arith.constant 0.000000e+00 : f32
    %8 = vector.broadcast %cst : f32 to vector<8x1024xf32>
    %9 = arith.cmpf oge, %7, %8 : vector<8x1024xf32>
    %cst_6 = arith.constant 0.00999999977 : f32
    %10 = vector.broadcast %cst_6 : f32 to vector<8x1024xf32>
    %11 = arith.mulf %10, %7 : vector<8x1024xf32>
    %12 = arith.select %9, %7, %11 : vector<8x1024xi1>, vector<8x1024xf32>
    %c0_7 = arith.constant 0 : index
    %c0_8 = arith.constant 0 : index
    %c0_9 = arith.constant 0 : index
    %13 = vector.load %arg4[%c0_7, %c0_8, %c0_9] : memref<1x8x1024xf32, #tpu.memory_space<vmem>>, vector<1x8x1024xf32>
    %14 = vector.shape_cast %13 : vector<1x8x1024xf32> to vector<8x1024xf32>
    %15 = vector.shape_cast %12 : vector<8x1024xf32> to vector<1x8x1024xf32>
    tpu.vector_store %arg4[%c0_7, %c0_8, %c0_9], %15 {strides = array<i32>} : memref<1x8x1024xf32, #tpu.memory_space<vmem>>, vector<1x8x1024xf32>,
    return
  }
  func.func @transform_0(%arg0: i32) -> (i32, i32, i32) {
    %c0_i32 = arith.constant 0 : i32
    %c0_i32_0 = arith.constant 0 : i32
    %c0_i32_1 = arith.constant 0 : i32
    return %arg0, %c0_i32, %c0_i32_0 : i32, i32, i32
  }
  func.func @transform_1(%arg0: i32) -> (i32, i32) {
    %c0_i32 = arith.constant 0 : i32
    %c0_i32_0 = arith.constant 0 : i32
    %c0_i32_1 = arith.constant 0 : i32
    return %c0_i32, %c0_i32_0 : i32, i32
  }
  func.func @transform_2(%arg0: i32) -> (i32, i32) {
    %c0_i32 = arith.constant 0 : i32
    %c0_i32_0 = arith.constant 0 : i32
    %c0_i32_1 = arith.constant 0 : i32
    return %c0_i32, %c0_i32_0 : i32, i32
  }
  func.func @transform_3(%arg0: i32) -> (i32, i32, i32) {
    %c0_i32 = arith.constant 0 : i32
    %c0_i32_0 = arith.constant 0 : i32
    %c0_i32_1 = arith.constant 0 : i32
    return %arg0, %c0_i32, %c0_i32_0 : i32, i32, i32
  }
}

</mosaic_0001>

<bundles_post_ra>
// kernel: conv3d_abn.3
= control target key start
LH: loop header
LB: loop body
LE: loop exit
PB: predicated region body
PF: predicated region fallthrough
CT: control target
= control target key end

     0   :  { %s346_s12 = smov 0   ;;  %s384_s0 = inlined_call_operand.vmem [shape: f32[2,8,1024], index: 0, kind: input, shape index: {}, may-alias: {0,3}]   ;;  %s385_s1 = inlined_call_operand.vmem [shape: f32[8,1], index: 1, kind: input, shape index: {}]   ;;  %s386_s2 = inlined_call_operand.vmem [shape: f32[8,1], index: 2, kind: input, shape index: {}]   ;;  %s387_s3 = inlined_call_operand.vmem [shape: f32[2,8,1024], index: 3, kind: output, shape index: {}, may-alias: {0,3}]  }
   0x1 LB: > { %s294_s13 = sadd.s32 4294967295, %s323_s12   ;;  %p298_p0 = scmp.ge.s32.totalorder %s323_s12, 1  ;;  %s323_s12 = sphi %s346_s12, %s13_s12  }
   0x2   : > { %p137_p1 = scmp.lt.s32.totalorder %s323_s12, 3 }
   0x4   : > { %p138_p2 = pnand %p298_p0, %p137_p1 }
   0x5   : > { %v179_v0 = vld [vmem:[%s385_s1] sm:$0xff] (!%p138_p2)  ;;  %v325_v1 = vmov (!%p138_p2), 0   ;;  %p161_p3 = scmp.lt.s32.totalorder (!%p138_p2), %s294_s13, 1 }
   0x6   : > { %141 = sbr.rel (%p138_p2) target bundleno = 151 (0x97), region = 32  ;;  %316 = vset.pattern.permute.xlu0 (!%p138_p2), %v325_v1  ;;  %v193_v2 = vld [vmem:[%s386_s2] sm:$0xff] (!%p138_p2) }
   0x7   : > { %182 = vperm.xlu0 (!%p138_p2), %316, %v179_v0  }
   0xb   : > { %196 = vperm.xlu0 (!%p138_p2), %316, %v193_v2  }
   0xd   : > { %s389_s13 = smov (!%p161_p3, %s294_s13), 1 }
   0xe   : > { %s305_s18 = sshll.u32 %s389_s13, 6 }
   0xf   : > { %s165_s21 = scalar_lea.vmem %s384_s0, %s305_s18  ;;  %s170_s24 = scalar_lea.vmem %s387_s3, %s305_s18 }
  0x10   : > { %v171_v3 = vld [vmem:[%s165_s21] sm:$0xff]  ;;  %v172_v4 = vld [vmem:[%s165_s21 + $0x8] sm:$0xff]  ;;  %v173_v6 = vld [vmem:[%s165_s21 + $0x10] sm:$0xff] }
  0x11   : > { %v174_v7 = vld [vmem:[%s165_s21 + $0x18] sm:$0xff]  ;;  %v175_v8 = vld [vmem:[%s165_s21 + $0x20] sm:$0xff]  ;;  %v176_v9 = vld [vmem:[%s165_s21 + $0x28] sm:$0xff] }
  0x12   : > { %v177_v10 = vld [vmem:[%s165_s21 + $0x30] sm:$0xff]  ;;  %v178_v11 = vld [vmem:[%s165_s21 + $0x38] sm:$0xff] }
  0x86   : > { %v183_v5 = vpop.permute.xlu0 %182 }
  0x87   : > { %v185_v12 = vmul.f32 %v183_v5, %v171_v3  ;;  %v186_v13 = vmul.f32 %v183_v5, %v172_v4  ;;  %v187_v14 = vmul.f32 %v183_v5, %v173_v6  ;;  %v188_v15 = vmul.f32 %v183_v5, %v174_v7 }
  0x88   : > { %v189_v17 = vmul.f32 %v183_v5, %v175_v8  ;;  %v190_v18 = vmul.f32 %v183_v5, %v176_v9  ;;  %v191_v19 = vmul.f32 %v183_v5, %v177_v10  ;;  %v192_v20 = vmul.f32 %v183_v5, %v178_v11 }
  0x8a   : > { %v197_v16 = vpop.permute.xlu0 %196 }
  0x8b   : > { %v199_v21 = vadd.f32 %v197_v16, %v185_v12  ;;  %v200_v22 = vadd.f32 %v197_v16, %v186_v13  ;;  %v201_v23 = vadd.f32 %v197_v16, %v187_v14  ;;  %v202_v24 = vadd.f32 %v197_v16, %v188_v15 }
  0x8c   : > { %v203_v25 = vadd.f32 %v197_v16, %v189_v17  ;;  %v204_v26 = vadd.f32 %v197_v16, %v190_v18  ;;  %v205_v27 = vadd.f32 %v197_v16, %v191_v19  ;;  %v206_v28 = vadd.f32 %v197_v16, %v192_v20 }
  0x8d   : > { %vm207_vm0 = vcmp.ge.f32.partialorder %v199_v21, 0.0  ;;  %vm208_vm1 = vcmp.ge.f32.partialorder %v200_v22, 0.0  ;;  %vm209_vm2 = vcmp.ge.f32.partialorder %v201_v23, 0.0  ;;  %vm210_vm3 = vcmp.ge.f32.partialorder %v202_v24, 0.0 }
  0x8e   : > { %vm211_vm4 = vcmp.ge.f32.partialorder %v203_v25, 0.0  ;;  %vm212_vm5 = vcmp.ge.f32.partialorder %v204_v26, 0.0  ;;  %vm213_vm6 = vcmp.ge.f32.partialorder %v205_v27, 0.0  ;;  %vm214_vm7 = vcmp.ge.f32.partialorder %v206_v28, 0.0 }
  0x8f   : > { %v215_v29 = vmul.f32 0.01, %v199_v21  ;;  %v216_v30 = vmul.f32 0.01, %v200_v22  ;;  %v217_v31 = vmul.f32 0.01, %v201_v23 }
  0x90   : > { %v218_v32 = vmul.f32 0.01, %v202_v24  ;;  %v219_v33 = vmul.f32 0.01, %v203_v25  ;;  %v220_v34 = vmul.f32 0.01, %v204_v26 }
  0x91   : > { %v221_v35 = vmul.f32 0.01, %v205_v27  ;;  %v222_v36 = vmul.f32 0.01, %v206_v28  ;;  %v223_v37 = vsel %vm207_vm0, %v199_v21, %v215_v29  ;;  %v224_v38 = vsel %vm208_vm1, %v200_v22, %v216_v30 }
  0x92   : > { %v225_v39 = vsel %vm209_vm2, %v201_v23, %v217_v31  ;;  %v226_v40 = vsel %vm210_vm3, %v202_v24, %v218_v32  ;;  %v227_v41 = vsel %vm211_vm4, %v203_v25, %v219_v33  ;;  %v228_v42 = vsel %vm212_vm5, %v204_v26, %v220_v34  ;;  %231 = vst [vmem:[%s170_s24] sm:$0xff] %v223_v37 }
  0x93   : > { %232 = vst [vmem:[%s170_s24 + $0x8] sm:$0xff] %v224_v38  ;;  %v229_v43 = vsel %vm213_vm6, %v205_v27, %v221_v35  ;;  %v230_v44 = vsel %vm214_vm7, %v206_v28, %v222_v36  ;;  %233 = vst [vmem:[%s170_s24 + $0x10] sm:$0xff] %v225_v39 }
  0x94   : > { %234 = vst [vmem:[%s170_s24 + $0x18] sm:$0xff] %v226_v40  ;;  %235 = vst [vmem:[%s170_s24 + $0x20] sm:$0xff] %v227_v41 }
  0x95   : > { %236 = vst [vmem:[%s170_s24 + $0x28] sm:$0xff] %v228_v42  ;;  %237 = vst [vmem:[%s170_s24 + $0x30] sm:$0xff] %v229_v43 }
  0x96   : > { %238 = vst [vmem:[%s170_s24 + $0x38] sm:$0xff] %v230_v44 }
  0x97 PF: > { %s13_s12 = sadd.s32 1, %s323_s12  }
  0x98   : > { %p10_p4 = scmp.ge.s32.totalorder %s13_s12, 4  }
  0x9a   :  { %12 = sbr.rel (!%p10_p4) target bundleno = 1 (0x1), region = 62 }

// kernel: conv3d_abn.2
= control target key start
LH: loop header
LB: loop body
LE: loop exit
PB: predicated region body
PF: predicated region fallthrough
CT: control target
= control target key end

     0   :  { %s7430_s18 = smov 0   ;;  %s8652_s0 = inlined_call_operand.vmem [shape: bf16[2,8,1246], index: 0, kind: input, shape index: {}]   ;;  %s8653_s1 = inlined_call_operand.vmem [shape: bf16[27,8,8], index: 1, kind: input, shape index: {}]   ;;  %s8654_s2 = inlined_call_operand.vmem [shape: f32[1,1024], index: 2, kind: input, shape index: {}]   ;;  %s8655_s3 = inlined_call_operand.vmem [shape: f32[2,8,1024], index: 3, kind: output, shape index: {0}]   ;;  %s8656_s4 = inlined_call_operand.vmem [shape: f32[2,8,1], index: 4, kind: output, shape index: {1}]   ;;  %s8657_s5 = inlined_call_operand.vmem [shape: f32[2,8,1], index: 5, kind: output, shape index: {2}]  }
   0x1 LB: > { %s6621_s19 = sadd.s32 4294967295, %s7371_s18   ;;  %p6625_p0 = scmp.ge.s32.totalorder %s7371_s18, 1  ;;  %s7371_s18 = sphi %s7430_s18, %s16_s18  }
   0x2   : > { %p192_p1 = scmp.lt.s32.totalorder %s7371_s18, 3 }
   0x4   : > { %p193_p2 = pnand %p6625_p0, %p192_p1 }
   0x5   : > { %p228_p3 = scmp.lt.s32.totalorder (!%p193_p2), %s6621_s19, 1  ;;  %v7373_v0 = vmov (!%p193_p2), 0   ;;  %s7374_s24 = smov (!%p193_p2), 127   ;;  %vm296_vm0 = vcmask (!%p193_p2), 1039360   ;;  %vm309_vm1 = vcmask (!%p193_p2), 1043456   ;;  %vm305_vm2 = vcmask (!%p193_p2), 64512  }
   0x6   : > { %196 = sbr.rel (%p193_p2) target bundleno = 967 (0x3c7), region = 32  ;;  %366 = vmatprep.mubr.bf16.mxu0 (!%p193_p2), %v7373_v0  ;;  %407 = vmatprep.mubr.bf16.mxu1 (!%p193_p2), %v7373_v0  ;;  %s7375_s25 = smov (!%p193_p2), 126   ;;  %v6631_v23 = vld [vmem:[%s8653_s1 + $0x4] sm:$0xf] (!%p193_p2)  ;;  %v247_v43 = vld [vmem:[%s8653_s1] sm:$0xf] (!%p193_p2) }
   0x7   : > { %s7376_s26 = smov (!%p193_p2), 118   ;;  %s7377_s27 = smov (!%p193_p2), 117   ;;  %vm709_vm3 = vcmask (!%p193_p2), 1031168   ;;  %v6657_v63 = vld [vmem:[%s8653_s1 + $0x8] sm:$0xf] (!%p193_p2)  ;;  %vm937_vm4 = vcmask (!%p193_p2), 965632  }
   0x8   : > { %s7378_s28 = smov (!%p193_p2), 116   ;;  %s7379_s29 = smov (!%p193_p2), 108   ;;  %vm1165_vm5 = vcmask (!%p193_p2), 957440   ;;  %vm1393_vm6 = vcmask (!%p193_p2), 949248   ;;  %vm1621_vm7 = vcmask (!%p193_p2), 883712   ;;  %vm1849_vm8 = vcmask (!%p193_p2), 875520  }
   0x9   : > { %s7380_s30 = smov (!%p193_p2), 107   ;;  %s7381_s8 = smov (!%p193_p2), 106   ;;  %vm2077_vm9 = vcmask (!%p193_p2), 867328   ;;  %vm2305_vm10 = vcmask (!%p193_p2), 228352   ;;  %vm2533_vm11 = vcmask (!%p193_p2), 220160   ;;  %vm2761_vm12 = vcmask (!%p193_p2), 211968  }
   0xa   : > { %s7382_s11 = smov (!%p193_p2), 28   ;;  %s7383_s14 = smov (!%p193_p2), 27   ;;  %vm2989_vm13 = vcmask (!%p193_p2), 146432   ;;  %vm3217_vm14 = vcmask (!%p193_p2), 138240   ;;  %vm3445_vm15 = vcmask (!%p193_p2), 130048  }
   0xb   : > { %s7384_s17 = smov (!%p193_p2), 26   ;;  %s7385_s22 = smov (!%p193_p2), 18  }
   0xc   : > { %s7388_s9 = smov (!%p193_p2), 8   ;;  %s7389_s12 = smov (!%p193_p2), 7  }
   0xd   : > { %s8659_s19 = smov (!%p228_p3, %s6621_s19), 1  ;;  %s7390_s15 = smov 6  }
   0xe   : > { %s7310_s20 = smul.u32 40, %s8659_s19  ;;  %s7395_s7 = smov 45  }
   0xf   : > { %s7396_s10 = smov 44   ;;  %s7397_s13 = smov 36  }
  0x10   : > { %s7444_s23 = scalar_lea.vmem %s8652_s0, %s7310_s20  ;;  %s7391_s20 = smov 56  }
  0x11   : > { %v249_v1 = vld [vmem:[%s7444_s23 + $0x8] sm:$0xff]  ;;  %v248_v2 = vld [vmem:[%s7444_s23] sm:$0xff]  ;;  %v250_v7 = vld [vmem:[%s7444_s23 + $0x10] sm:$0xff]  ;;  %s7398_s16 = smov 35   ;;  %s7399_s21 = smov 34  }
  0x12   : > { %v7450_v3 = vcombine.low %v249_v1, %v249_v1  ;;  %v7452_v4 = vcombine.low %v248_v2, %v248_v2  ;;  %v7456_v5 = vcombine.high %v249_v1, %v249_v1  ;;  %v7458_v6 = vcombine.high %v248_v2, %v248_v2  ;;  %v251_v10 = vld [vmem:[%s7444_s23 + $0x18] sm:$0xff]  ;;  %v7477_v13 = vld [vmem:[%s7444_s23 + $0x20] ss:$0 sps:$4 sm:$0xff]  }
  0x13   : > { %v7463_v8 = vcombine.high %v250_v7, %v250_v7  ;;  %v7465_v9 = vcombine.low %v250_v7, %v250_v7  ;;  %v7470_v11 = vcombine.high %v251_v10, %v251_v10  ;;  %v7472_v12 = vcombine.low %v251_v10, %v251_v10 }
  0x14   : > { %282 = vrot.lane.b32.xlu1 %v7450_v3, %s7374_s24  ;;  %278 = vrot.lane.b32.xlu0 %v7452_v4, %s7374_s24  ;;  %v502_v36 = vsel %vm309_vm1, %v7452_v4, 0  ;;  %v508_v40 = vsel %vm309_vm1, %v7450_v3, 0 }
  0x15   : > { %v514_v44 = vsel %vm309_vm1, %v7465_v9, 0  ;;  %v520_v48 = vsel %vm309_vm1, %v7472_v12, 0 }
  0x18   : > { %284 = vrot.lane.b32.xlu1 %v7456_v5, %s7374_s24  ;;  %280 = vrot.lane.b32.xlu0 %v7458_v6, %s7374_s24 }
  0x1c   : > { %288 = vrot.lane.b32.xlu1 %v7463_v8, %s7374_s24  ;;  %286 = vrot.lane.b32.xlu0 %v7465_v9, %s7374_s24 }
  0x20   : > { %292 = vrot.lane.b32.xlu1 %v7470_v11, %s7374_s24  ;;  %290 = vrot.lane.b32.xlu0 %v7472_v12, %s7374_s24 }
  0x24   : > { %691 = vrot.lane.b32.xlu1 %v7452_v4, %s7375_s25  ;;  %294 = vrot.lane.b32.xlu0 %v7477_v13, %s7374_s24 }
  0x28   : > { %695 = vrot.lane.b32.xlu1 %v7450_v3, %s7375_s25  ;;  %693 = vrot.lane.b32.xlu0 %v7458_v6, %s7375_s25 }
  0x2c   : > { %699 = vrot.lane.b32.xlu1 %v7465_v9, %s7375_s25  ;;  %697 = vrot.lane.b32.xlu0 %v7456_v5, %s7375_s25 }
  0x30   : > { %703 = vrot.lane.b32.xlu1 %v7472_v12, %s7375_s25  ;;  %701 = vrot.lane.b32.xlu0 %v7463_v8, %s7375_s25 }
  0x34   : > { %707 = vrot.lane.b32.xlu1 %v7477_v13, %s7375_s25  ;;  %705 = vrot.lane.b32.xlu0 %v7470_v11, %s7375_s25 }
  0x38   : > { %921 = vrot.lane.b32.xlu1 %v7458_v6, %s7376_s26  ;;  %919 = vrot.lane.b32.xlu0 %v7452_v4, %s7376_s26 }
  0x3c   : > { %925 = vrot.lane.b32.xlu1 %v7456_v5, %s7376_s26  ;;  %923 = vrot.lane.b32.xlu0 %v7450_v3, %s7376_s26 }
  0x40   : > { %929 = vrot.lane.b32.xlu1 %v7463_v8, %s7376_s26  ;;  %927 = vrot.lane.b32.xlu0 %v7465_v9, %s7376_s26 }
  0x44   : > { %933 = vrot.lane.b32.xlu1 %v7470_v11, %s7376_s26  ;;  %931 = vrot.lane.b32.xlu0 %v7472_v12, %s7376_s26 }
  0x48   : > { %1147 = vrot.lane.b32.xlu1 %v7452_v4, %s7377_s27  ;;  %935 = vrot.lane.b32.xlu0 %v7477_v13, %s7376_s26  ;;  %s7386_s26 = smov 17  }
  0x4c   : > { %1151 = vrot.lane.b32.xlu1 %v7450_v3, %s7377_s27  ;;  %1149 = vrot.lane.b32.xlu0 %v7458_v6, %s7377_s27 }
  0x50   : > { %1155 = vrot.lane.b32.xlu1 %v7465_v9, %s7377_s27  ;;  %1153 = vrot.lane.b32.xlu0 %v7456_v5, %s7377_s27 }
  0x54   : > { %1159 = vrot.lane.b32.xlu1 %v7472_v12, %s7377_s27  ;;  %1157 = vrot.lane.b32.xlu0 %v7463_v8, %s7377_s27 }
  0x58   : > { %1163 = vrot.lane.b32.xlu1 %v7477_v13, %s7377_s27  ;;  %1161 = vrot.lane.b32.xlu0 %v7470_v11, %s7377_s27 }
  0x5c   : > { %1377 = vrot.lane.b32.xlu1 %v7458_v6, %s7378_s28  ;;  %1375 = vrot.lane.b32.xlu0 %v7452_v4, %s7378_s28 }
  0x60   : > { %1381 = vrot.lane.b32.xlu1 %v7456_v5, %s7378_s28  ;;  %1379 = vrot.lane.b32.xlu0 %v7450_v3, %s7378_s28 }
  0x64   : > { %1385 = vrot.lane.b32.xlu1 %v7463_v8, %s7378_s28  ;;  %1383 = vrot.lane.b32.xlu0 %v7465_v9, %s7378_s28 }
  0x68   : > { %1389 = vrot.lane.b32.xlu1 %v7470_v11, %s7378_s28  ;;  %1387 = vrot.lane.b32.xlu0 %v7472_v12, %s7378_s28 }
  0x6c   : > { %1603 = vrot.lane.b32.xlu1 %v7452_v4, %s7379_s29  ;;  %1391 = vrot.lane.b32.xlu0 %v7477_v13, %s7378_s28 }
  0x70   : > { %1607 = vrot.lane.b32.xlu1 %v7450_v3, %s7379_s29  ;;  %1605 = vrot.lane.b32.xlu0 %v7458_v6, %s7379_s29 }
  0x74   : > { %1611 = vrot.lane.b32.xlu1 %v7465_v9, %s7379_s29  ;;  %1609 = vrot.lane.b32.xlu0 %v7456_v5, %s7379_s29 }
  0x78   : > { %1615 = vrot.lane.b32.xlu1 %v7472_v12, %s7379_s29  ;;  %1613 = vrot.lane.b32.xlu0 %v7463_v8, %s7379_s29 }
  0x7c   : > { %1619 = vrot.lane.b32.xlu1 %v7477_v13, %s7379_s29  ;;  %1617 = vrot.lane.b32.xlu0 %v7470_v11, %s7379_s29  ;;  %s7387_s29 = smov 16  }
  0x80   : > { %1833 = vrot.lane.b32.xlu1 %v7458_v6, %s7380_s30  ;;  %1831 = vrot.lane.b32.xlu0 %v7452_v4, %s7380_s30 }
  0x84   : > { %1837 = vrot.lane.b32.xlu1 %v7456_v5, %s7380_s30  ;;  %1835 = vrot.lane.b32.xlu0 %v7450_v3, %s7380_s30 }
  0x86   : > { %v283_v14 = vpop.permute.xlu1 %282  ;;  %v279_v15 = vpop.permute.xlu0 %278 }
  0x88   : > { %1841 = vrot.lane.b32.xlu1 %v7463_v8, %s7380_s30  ;;  %1839 = vrot.lane.b32.xlu0 %v7465_v9, %s7380_s30 }
  0x8a   : > { %v285_v16 = vpop.permute.xlu1 %284  ;;  %v281_v17 = vpop.permute.xlu0 %280 }
  0x8b   : > { %v298_v18 = vsel %vm296_vm0, %v281_v17, %v283_v14  ;;  %v297_v19 = vsel %vm296_vm0, %v279_v15, %v281_v17  ;;  %v299_v24 = vsel %vm296_vm0, %v283_v14, %v285_v16 }
  0x8c   : > { %1845 = vrot.lane.b32.xlu1 %v7470_v11, %s7380_s30  ;;  %1843 = vrot.lane.b32.xlu0 %v7472_v12, %s7380_s30  ;;  %v311_v20 = vsel %vm309_vm1, %v297_v19, 0  ;;  %v317_v26 = vsel %vm309_vm1, %v299_v24, 0 }
  0x8d   : > { %6641 = vmatprep.subr.msk.bf16.mxu0 %vm309_vm1, %v298_v18 }
  0x8e   : > { %335 = vmatpush1.bf16.msra.mxu0 %v311_v20  ;;  %v289_v21 = vpop.permute.xlu1 %288  ;;  %v287_v22 = vpop.permute.xlu0 %286 }
  0x8f   : > { %v300_v25 = vsel %vm296_vm0, %v285_v16, %v287_v22  ;;  %v301_v27 = vsel %vm296_vm0, %v287_v22, %v289_v21 }
  0x90   : > { %2059 = vrot.lane.b32.xlu1 %v7452_v4, %s7381_s8  ;;  %1847 = vrot.lane.b32.xlu0 %v7477_v13, %s7380_s30  ;;  %v323_v31 = vsel %vm309_vm1, %v301_v27, 0 }
  0x91   : > { %6642 = vmatmul.mubr.msk.bf16.vlgmr.msra.gmra.mrb[0].mxu0 %vm305_vm2, %v6631_v23  ;;  %6643 = vmatprep.subr.msk.bf16.mxu1 %vm309_vm1, %v300_v25 }
  0x92   : > { %376 = vmatpush1.bf16.msra.mxu1 %v317_v26  ;;  %v293_v28 = vpop.permute.xlu1 %292  ;;  %v291_v29 = vpop.permute.xlu0 %290  ;;  %448 = vmatprep.mubr.bf16.mxu0 %v7373_v0 }
  0x93   : > { %v302_v30 = vsel %vm296_vm0, %v289_v21, %v291_v29  ;;  %v303_v32 = vsel %vm296_vm0, %v291_v29, %v293_v28 }
  0x94   : > { %2063 = vrot.lane.b32.xlu1 %v7450_v3, %s7381_s8  ;;  %2061 = vrot.lane.b32.xlu0 %v7458_v6, %s7381_s8  ;;  %v329_v37 = vsel %vm309_vm1, %v303_v32, 0 }
  0x95   : > { %6644 = vmatmul.mubr.msk.bf16.vlgmr.msra.gmra.mrb[0].mxu1 %vm305_vm2, %v6631_v23  ;;  %6645 = vmatprep.subr.msk.bf16.mxu0 %vm309_vm1, %v302_v30  ;;  %v6666_v30 = vld [vmem:[%s8653_s1 + $0xc] sm:$0xf] }
  0x96   : > { %417 = vmatpush1.bf16.msra.mxu0 %v323_v31  ;;  %v692_v33 = vpop.permute.xlu1 %691  ;;  %v295_v34 = vpop.permute.xlu0 %294  ;;  %489 = vmatprep.mubr.bf16.mxu1 %v7373_v0 }
  0x97   : > { %v304_v35 = vsel %vm296_vm0, %v293_v28, %v295_v34  ;;  %6649 = vmatprep.subr.msk.bf16.mxu0 %vm309_vm1, %v7458_v6  ;;  %vm3901_vm0 = vcmask 56320  }
  0x98   : > { %2067 = vrot.lane.b32.xlu1 %v7465_v9, %s7381_s8  ;;  %2065 = vrot.lane.b32.xlu0 %v7456_v5, %s7381_s8 }
  0x99   : > { %6646 = vmatmul.mubr.msk.bf16.vlgmr.msra.gmra.mrb[4].mxu0 %vm305_vm2, %v6631_v23  ;;  %6647 = vmatprep.subr.msk.bf16.mxu1 %vm309_vm1, %v304_v35 }
  0x9a   : > { %458 = vmatpush1.bf16.msra.mxu1 %v329_v37  ;;  %v696_v38 = vpop.permute.xlu1 %695  ;;  %v694_v39 = vpop.permute.xlu0 %693  ;;  %526 = vmatpush1.bf16.msra.mxu0 %v502_v36 }
  0x9b   : > { %557 = vmatprep.mubr.bf16.mxu0 %v7373_v0  ;;  %6651 = vmatprep.subr.msk.bf16.mxu1 %vm309_vm1, %v7456_v5  ;;  %v711_v45 = vsel %vm709_vm3, %v694_v39, %v696_v38  ;;  %v710_v49 = vsel %vm709_vm3, %v692_v33, %v694_v39 }
  0x9c   : > { %2071 = vrot.lane.b32.xlu1 %v7472_v12, %s7381_s8  ;;  %2069 = vrot.lane.b32.xlu0 %v7463_v8, %s7381_s8  ;;  %v722_v53 = vsel %vm309_vm1, %v710_v49, 0 }
  0x9d   : > { %6648 = vmatmul.mubr.msk.bf16.vlgmr.msra.gmra.mrb[4].mxu1 %vm305_vm2, %v6631_v23  ;;  %6653 = vmatprep.subr.msk.bf16.mxu0 %vm309_vm1, %v7463_v8 }
  0x9e   : > { %v700_v41 = vpop.permute.xlu1 %699  ;;  %v698_v42 = vpop.permute.xlu0 %697  ;;  %567 = vmatpush1.bf16.msra.mxu1 %v508_v40  ;;  %598 = vmatprep.mubr.bf16.mxu1 %v7373_v0 }
  0x9f   : > { %6655 = vmatprep.subr.msk.bf16.mxu1 %vm309_vm1, %v7470_v11  ;;  %v713_v50 = vsel %vm709_vm3, %v698_v42, %v700_v41  ;;  %v712_v54 = vsel %vm709_vm3, %v696_v38, %v698_v42 }
  0xa0   : > { %2075 = vrot.lane.b32.xlu1 %v7477_v13, %s7381_s8  ;;  %2073 = vrot.lane.b32.xlu0 %v7470_v11, %s7381_s8  ;;  %v728_v58 = vsel %vm309_vm1, %v712_v54, 0 }
  0xa1   : > { %6650 = vmatmul.mubr.msk.bf16.vlgmr.msra.gmra.mrb[0].mxu0 %vm305_vm2, %v247_v43 }
  0xa2   : > { %608 = vmatpush1.bf16.msra.mxu0 %v514_v44  ;;  %v704_v46 = vpop.permute.xlu1 %703  ;;  %v702_v47 = vpop.permute.xlu0 %701  ;;  %639 = vmatprep.mubr.bf16.mxu0 %v7373_v0 }
  0xa3   : > { %6658 = vmatprep.subr.msk.bf16.mxu0 %vm309_vm1, %v711_v45  ;;  %v715_v55 = vsel %vm709_vm3, %v702_v47, %v704_v46  ;;  %v714_v59 = vsel %vm709_vm3, %v700_v41, %v702_v47 }
  0xa4   : > { %2289 = vrot.lane.b32.xlu1 %v7458_v6, %s7382_s11  ;;  %2287 = vrot.lane.b32.xlu0 %v7452_v4, %s7382_s11  ;;  %v734_v2 = vsel %vm309_vm1, %v714_v59, 0 }
  0xa5   : > { %6652 = vmatmul.mubr.msk.bf16.vlgmr.msra.gmra.mrb[0].mxu1 %vm305_vm2, %v247_v43 }
  0xa6   : > { %649 = vmatpush1.bf16.msra.mxu1 %v520_v48  ;;  %v708_v51 = vpop.permute.xlu1 %707  ;;  %v706_v52 = vpop.permute.xlu0 %705  ;;  %680 = vmatprep.mubr.bf16.mxu1 %v7373_v0 }
  0xa7   : > { %6660 = vmatprep.subr.msk.bf16.mxu1 %vm309_vm1, %v713_v50  ;;  %v717_v60 = vsel %vm709_vm3, %v706_v52, %v708_v51  ;;  %v716_v7 = vsel %vm709_vm3, %v704_v46, %v706_v52  ;;  %v6675_v51 = vld [vmem:[%s8653_s1 + $0x10] sm:$0xf]  ;;  %vm4129_vm3 = vcmask 48128  }
  0xa8   : > { %2293 = vrot.lane.b32.xlu1 %v7456_v5, %s7382_s11  ;;  %2291 = vrot.lane.b32.xlu0 %v7450_v3, %s7382_s11  ;;  %v740_v16 = vsel %vm309_vm1, %v716_v7, 0 }
  0xa9   : > { %6654 = vmatmul.mubr.msk.bf16.vlgmr.msra.gmra.mrb[4].mxu0 %vm305_vm2, %v247_v43 }
  0xaa   : > { %746 = vmatpush1.bf16.msra.mxu0 %v722_v53  ;;  %v922_v56 = vpop.permute.xlu1 %921  ;;  %v920_v57 = vpop.permute.xlu0 %919  ;;  %777 = vmatprep.mubr.bf16.mxu0 %v7373_v0 }
  0xab   : > { %6662 = vmatprep.subr.msk.bf16.mxu0 %vm309_vm1, %v715_v55  ;;  %v938_v17 = vsel %vm937_vm4, %v920_v57, %v922_v56 }
  0xac   : > { %2297 = vrot.lane.b32.xlu1 %v7463_v8, %s7382_s11  ;;  %2295 = vrot.lane.b32.xlu0 %v7465_v9, %s7382_s11  ;;  %v950_v21 = vsel %vm309_vm1, %v938_v17, 0  ;;  %v6684_v17 = vld [vmem:[%s8653_s1 + $0x14] sm:$0xf] }
  0xad   : > { %6656 = vmatmul.mubr.msk.bf16.vlgmr.msra.gmra.mrb[4].mxu1 %vm305_vm2, %v247_v43 }
  0xae   : > { %787 = vmatpush1.bf16.msra.mxu1 %v728_v58  ;;  %v926_v61 = vpop.permute.xlu1 %925  ;;  %v924_v62 = vpop.permute.xlu0 %923  ;;  %818 = vmatprep.mubr.bf16.mxu1 %v7373_v0 }
  0xaf   : > { %6664 = vmatprep.subr.msk.bf16.mxu1 %vm309_vm1, %v717_v60  ;;  %v939_v1 = vsel %vm937_vm4, %v922_v56, %v924_v62  ;;  %v940_v22 = vsel %vm937_vm4, %v924_v62, %v926_v61 }
  0xb0   : > { %2301 = vrot.lane.b32.xlu1 %v7470_v11, %s7382_s11  ;;  %2299 = vrot.lane.b32.xlu0 %v7472_v12, %s7382_s11  ;;  %v956_v26 = vsel %vm309_vm1, %v940_v22, 0 }
  0xb1   : > { %6659 = vmatmul.mubr.msk.bf16.vlgmr.msra.gmra.mrb[0].mxu0 %vm305_vm2, %v6657_v63 }
  0xb2   : > { %828 = vmatpush1.bf16.msra.mxu0 %v734_v2  ;;  %v930_v10 = vpop.permute.xlu1 %929  ;;  %v928_v14 = vpop.permute.xlu0 %927  ;;  %859 = vmatprep.mubr.bf16.mxu0 %v7373_v0 }
  0xb3   : > { %6667 = vmatprep.subr.msk.bf16.mxu0 %vm309_vm1, %v939_v1  ;;  %v941_v15 = vsel %vm937_vm4, %v926_v61, %v928_v14  ;;  %v942_v27 = vsel %vm937_vm4, %v928_v14, %v930_v10 }
  0xb4   : > { %2515 = vrot.lane.b32.xlu1 %v7452_v4, %s7383_s14  ;;  %2303 = vrot.lane.b32.xlu0 %v7477_v13, %s7382_s11  ;;  %v962_v32 = vsel %vm309_vm1, %v942_v27, 0 }
  0xb5   : > { %6661 = vmatmul.mubr.msk.bf16.vlgmr.msra.gmra.mrb[0].mxu1 %vm305_vm2, %v6657_v63 }
  0xb6   : > { %869 = vmatpush1.bf16.msra.mxu1 %v740_v16  ;;  %v934_v18 = vpop.permute.xlu1 %933  ;;  %v932_v19 = vpop.permute.xlu0 %931  ;;  %900 = vmatprep.mubr.bf16.mxu1 %v7373_v0 }
  0xb7   : > { %6669 = vmatprep.subr.msk.bf16.mxu1 %vm309_vm1, %v941_v15  ;;  %v943_v20 = vsel %vm937_vm4, %v930_v10, %v932_v19  ;;  %v944_v33 = vsel %vm937_vm4, %v932_v19, %v934_v18 }
  0xb8   : > { %2519 = vrot.lane.b32.xlu1 %v7450_v3, %s7383_s14  ;;  %2517 = vrot.lane.b32.xlu0 %v7458_v6, %s7383_s14  ;;  %v968_v37 = vsel %vm309_vm1, %v944_v33, 0 }
  0xb9   : > { %6663 = vmatmul.mubr.msk.bf16.vlgmr.msra.gmra.mrb[4].mxu0 %vm305_vm2, %v6657_v63 }
  0xba   : > { %974 = vmatpush1.bf16.msra.mxu0 %v950_v21  ;;  %v1148_v23 = vpop.permute.xlu1 %1147  ;;  %v936_v24 = vpop.permute.xlu0 %935  ;;  %1005 = vmatprep.mubr.bf16.mxu0 %v7373_v0 }
  0xbb   : > { %6671 = vmatprep.subr.msk.bf16.mxu0 %vm309_vm1, %v943_v20  ;;  %v945_v25 = vsel %vm937_vm4, %v934_v18, %v936_v24  ;;  %vm4385_vm4 = vcmask 457728  }
  0xbc   : > { %2523 = vrot.lane.b32.xlu1 %v7465_v9, %s7383_s14  ;;  %2521 = vrot.lane.b32.xlu0 %v7456_v5, %s7383_s14 }
  0xbd   : > { %6665 = vmatmul.mubr.msk.bf16.vlgmr.msra.gmra.mrb[4].mxu1 %vm305_vm2, %v6657_v63 }
  0xbe   : > { %1015 = vmatpush1.bf16.msra.mxu1 %v956_v26  ;;  %v1152_v28 = vpop.permute.xlu1 %1151  ;;  %v1150_v29 = vpop.permute.xlu0 %1149  ;;  %1046 = vmatprep.mubr.bf16.mxu1 %v7373_v0 }
  0xbf   : > { %6673 = vmatprep.subr.msk.bf16.mxu1 %vm309_vm1, %v945_v25  ;;  %v1167_v31 = vsel %vm1165_vm5, %v1150_v29, %v1152_v28  ;;  %v1166_v38 = vsel %vm1165_vm5, %v1148_v23, %v1150_v29 }
  0xc0   : > { %2527 = vrot.lane.b32.xlu1 %v7472_v12, %s7383_s14  ;;  %2525 = vrot.lane.b32.xlu0 %v7463_v8, %s7383_s14  ;;  %v1178_v42 = vsel %vm309_vm1, %v1166_v38, 0  ;;  %v6693_v38 = vld [vmem:[%s8653_s1 + $0x18] sm:$0xf] }
  0xc1   : > { %6668 = vmatmul.mubr.msk.bf16.vlgmr.msra.gmra.mrb[0].mxu0 %vm305_vm2, %v6666_v30 }
  0xc2   : > { %1056 = vmatpush1.bf16.msra.mxu0 %v962_v32  ;;  %v1156_v34 = vpop.permute.xlu1 %1155  ;;  %v1154_v35 = vpop.permute.xlu0 %1153  ;;  %1087 = vmatprep.mubr.bf16.mxu0 %v7373_v0 }
  0xc3   : > { %6676 = vmatprep.subr.msk.bf16.mxu0 %vm309_vm1, %v1167_v31  ;;  %v1169_v36 = vsel %vm1165_vm5, %v1154_v35, %v1156_v34  ;;  %v1168_v43 = vsel %vm1165_vm5, %v1152_v28, %v1154_v35 }
  0xc4   : > { %2531 = vrot.lane.b32.xlu1 %v7477_v13, %s7383_s14  ;;  %2529 = vrot.lane.b32.xlu0 %v7470_v11, %s7383_s14  ;;  %v1184_v47 = vsel %vm309_vm1, %v1168_v43, 0 }
  0xc5   : > { %6670 = vmatmul.mubr.msk.bf16.vlgmr.msra.gmra.mrb[0].mxu1 %vm305_vm2, %v6666_v30 }
  0xc6   : > { %1097 = vmatpush1.bf16.msra.mxu1 %v968_v37  ;;  %v1160_v39 = vpop.permute.xlu1 %1159  ;;  %v1158_v40 = vpop.permute.xlu0 %1157  ;;  %1128 = vmatprep.mubr.bf16.mxu1 %v7373_v0 }
  0xc7   : > { %6678 = vmatprep.subr.msk.bf16.mxu1 %vm309_vm1, %v1169_v36  ;;  %v1171_v41 = vsel %vm1165_vm5, %v1158_v40, %v1160_v39  ;;  %v1170_v48 = vsel %vm1165_vm5, %v1156_v34, %v1158_v40 }
  0xc8   : > { %2745 = vrot.lane.b32.xlu1 %v7458_v6, %s7384_s17  ;;  %2743 = vrot.lane.b32.xlu0 %v7452_v4, %s7384_s17  ;;  %v1190_v52 = vsel %vm309_vm1, %v1170_v48, 0 }
  0xc9   : > { %6672 = vmatmul.mubr.msk.bf16.vlgmr.msra.gmra.mrb[4].mxu0 %vm305_vm2, %v6666_v30 }
  0xca   : > { %1202 = vmatpush1.bf16.msra.mxu0 %v1178_v42  ;;  %v1164_v44 = vpop.permute.xlu1 %1163  ;;  %v1162_v45 = vpop.permute.xlu0 %1161  ;;  %1233 = vmatprep.mubr.bf16.mxu0 %v7373_v0 }
  0xcb   : > { %6680 = vmatprep.subr.msk.bf16.mxu0 %vm309_vm1, %v1171_v41  ;;  %v1173_v46 = vsel %vm1165_vm5, %v1162_v45, %v1164_v44  ;;  %v1172_v53 = vsel %vm1165_vm5, %v1160_v39, %v1162_v45  ;;  %vm4613_vm5 = vcmask 449536  }
  0xcc   : > { %2749 = vrot.lane.b32.xlu1 %v7456_v5, %s7384_s17  ;;  %2747 = vrot.lane.b32.xlu0 %v7450_v3, %s7384_s17  ;;  %v1196_v57 = vsel %vm309_vm1, %v1172_v53, 0 }
  0xcd   : > { %6674 = vmatmul.mubr.msk.bf16.vlgmr.msra.gmra.mrb[4].mxu1 %vm305_vm2, %v6666_v30 }
  0xce   : > { %1243 = vmatpush1.bf16.msra.mxu1 %v1184_v47  ;;  %v1378_v49 = vpop.permute.xlu1 %1377  ;;  %v1376_v50 = vpop.permute.xlu0 %1375  ;;  %1274 = vmatprep.mubr.bf16.mxu1 %v7373_v0 }
  0xcf   : > { %6682 = vmatprep.subr.msk.bf16.mxu1 %vm309_vm1, %v1173_v46  ;;  %v1394_v58 = vsel %vm1393_vm6, %v1376_v50, %v1378_v49 }
  0xd0   : > { %2753 = vrot.lane.b32.xlu1 %v7463_v8, %s7384_s17  ;;  %2751 = vrot.lane.b32.xlu0 %v7465_v9, %s7384_s17  ;;  %v1406_v62 = vsel %vm309_vm1, %v1394_v58, 0  ;;  %v6702_v58 = vld [vmem:[%s8653_s1 + $0x1c] sm:$0xf] }
  0xd1   : > { %6677 = vmatmul.mubr.msk.bf16.vlgmr.msra.gmra.mrb[0].mxu0 %vm305_vm2, %v6675_v51 }
  0xd2   : > { %1284 = vmatpush1.bf16.msra.mxu0 %v1190_v52  ;;  %v1382_v54 = vpop.permute.xlu1 %1381  ;;  %v1380_v55 = vpop.permute.xlu0 %1379  ;;  %1315 = vmatprep.mubr.bf16.mxu0 %v7373_v0 }
  0xd3   : > { %v1395_v56 = vsel %vm1393_vm6, %v1378_v49, %v1380_v55  ;;  %v1396_v63 = vsel %vm1393_vm6, %v1380_v55, %v1382_v54 }
  0xd4   : > { %2757 = vrot.lane.b32.xlu1 %v7470_v11, %s7384_s17  ;;  %2755 = vrot.lane.b32.xlu0 %v7472_v12, %s7384_s17  ;;  %v1412_v10 = vsel %vm309_vm1, %v1396_v63, 0 }
  0xd5   : > { %6679 = vmatmul.mubr.msk.bf16.vlgmr.msra.gmra.mrb[0].mxu1 %vm305_vm2, %v6675_v51  ;;  %6685 = vmatprep.subr.msk.bf16.mxu0 %vm309_vm1, %v1395_v56 }
  0xd6   : > { %1325 = vmatpush1.bf16.msra.mxu1 %v1196_v57  ;;  %v1386_v59 = vpop.permute.xlu1 %1385  ;;  %v1384_v60 = vpop.permute.xlu0 %1383  ;;  %1356 = vmatprep.mubr.bf16.mxu1 %v7373_v0 }
  0xd7   : > { %v1397_v61 = vsel %vm1393_vm6, %v1382_v54, %v1384_v60  ;;  %v1398_v14 = vsel %vm1393_vm6, %v1384_v60, %v1386_v59 }
  0xd8   : > { %2971 = vrot.lane.b32.xlu1 %v7452_v4, %s7385_s22  ;;  %2759 = vrot.lane.b32.xlu0 %v7477_v13, %s7384_s17  ;;  %v1418_v19 = vsel %vm309_vm1, %v1398_v14, 0  ;;  %s6629_s17 = sshll.u32 %s8659_s19, 3 }
  0xd9   : > { %6681 = vmatmul.mubr.msk.bf16.vlgmr.msra.gmra.mrb[4].mxu0 %vm305_vm2, %v6675_v51  ;;  %6687 = vmatprep.subr.msk.bf16.mxu1 %vm309_vm1, %v1397_v61  ;;  %s245_s25 = scalar_lea.vmem %s8657_s5, %s6629_s17 }
  0xda   : > { %1430 = vmatpush1.bf16.msra.mxu0 %v1406_v62  ;;  %v1390_v1 = vpop.permute.xlu1 %1389  ;;  %v1388_v2 = vpop.permute.xlu0 %1387  ;;  %1461 = vmatprep.mubr.bf16.mxu0 %v7373_v0 }
  0xdb   : > { %v1399_v7 = vsel %vm1393_vm6, %v1386_v59, %v1388_v2  ;;  %v1400_v20 = vsel %vm1393_vm6, %v1388_v2, %v1390_v1 }
  0xdc   : > { %2975 = vrot.lane.b32.xlu1 %v7450_v3, %s7385_s22  ;;  %2973 = vrot.lane.b32.xlu0 %v7458_v6, %s7385_s22  ;;  %v1424_v24 = vsel %vm309_vm1, %v1400_v20, 0 }
  0xdd   : > { %6683 = vmatmul.mubr.msk.bf16.vlgmr.msra.gmra.mrb[4].mxu1 %vm305_vm2, %v6675_v51  ;;  %6689 = vmatprep.subr.msk.bf16.mxu0 %vm309_vm1, %v1399_v7 }
  0xde   : > { %1471 = vmatpush1.bf16.msra.mxu1 %v1412_v10  ;;  %v1604_v15 = vpop.permute.xlu1 %1603  ;;  %v1392_v16 = vpop.permute.xlu0 %1391  ;;  %1502 = vmatprep.mubr.bf16.mxu1 %v7373_v0 }
  0xdf   : > { %v1401_v18 = vsel %vm1393_vm6, %v1390_v1, %v1392_v16  ;;  %vm4841_vm6 = vcmask 441344  }
  0xe0   : > { %2979 = vrot.lane.b32.xlu1 %v7465_v9, %s7385_s22  ;;  %2977 = vrot.lane.b32.xlu0 %v7456_v5, %s7385_s22 }
  0xe1   : > { %6686 = vmatmul.mubr.msk.bf16.vlgmr.msra.gmra.mrb[0].mxu0 %vm305_vm2, %v6684_v17  ;;  %6691 = vmatprep.subr.msk.bf16.mxu1 %vm309_vm1, %v1401_v18 }
  0xe2   : > { %1512 = vmatpush1.bf16.msra.mxu0 %v1418_v19  ;;  %v1608_v21 = vpop.permute.xlu1 %1607  ;;  %v1606_v22 = vpop.permute.xlu0 %1605  ;;  %1543 = vmatprep.mubr.bf16.mxu0 %v7373_v0 }
  0xe3   : > { %v1623_v23 = vsel %vm1621_vm7, %v1606_v22, %v1608_v21  ;;  %v1622_v25 = vsel %vm1621_vm7, %v1604_v15, %v1606_v22 }
  0xe4   : > { %2983 = vrot.lane.b32.xlu1 %v7472_v12, %s7385_s22  ;;  %2981 = vrot.lane.b32.xlu0 %v7463_v8, %s7385_s22  ;;  %v1634_v29 = vsel %vm309_vm1, %v1622_v25, 0 }
  0xe5   : > { %6688 = vmatmul.mubr.msk.bf16.vlgmr.msra.gmra.mrb[0].mxu1 %vm305_vm2, %v6684_v17  ;;  %6694 = vmatprep.subr.msk.bf16.mxu0 %vm309_vm1, %v1623_v23 }
  0xe6   : > { %1553 = vmatpush1.bf16.msra.mxu1 %v1424_v24  ;;  %v1612_v26 = vpop.permute.xlu1 %1611  ;;  %v1610_v27 = vpop.permute.xlu0 %1609  ;;  %1584 = vmatprep.mubr.bf16.mxu1 %v7373_v0  ;;  %v6711_v24 = vld [vmem:[%s8653_s1 + $0x20] sm:$0xf] }
  0xe7   : > { %v1625_v28 = vsel %vm1621_vm7, %v1610_v27, %v1612_v26  ;;  %v1624_v30 = vsel %vm1621_vm7, %v1608_v21, %v1610_v27 }
  0xe8   : > { %2987 = vrot.lane.b32.xlu1 %v7477_v13, %s7385_s22  ;;  %2985 = vrot.lane.b32.xlu0 %v7470_v11, %s7385_s22  ;;  %v1640_v34 = vsel %vm309_vm1, %v1624_v30, 0  ;;  %s241_s22 = scalar_lea.vmem %s8656_s4, %s6629_s17 }
  0xe9   : > { %6690 = vmatmul.mubr.msk.bf16.vlgmr.msra.gmra.mrb[4].mxu0 %vm305_vm2, %v6684_v17  ;;  %6696 = vmatprep.subr.msk.bf16.mxu1 %vm309_vm1, %v1625_v28 }
  0xea   : > { %1658 = vmatpush1.bf16.msra.mxu0 %v1634_v29  ;;  %v1616_v31 = vpop.permute.xlu1 %1615  ;;  %v1614_v32 = vpop.permute.xlu0 %1613  ;;  %1689 = vmatprep.mubr.bf16.mxu0 %v7373_v0 }
  0xeb   : > { %v1627_v33 = vsel %vm1621_vm7, %v1614_v32, %v1616_v31  ;;  %v1626_v35 = vsel %vm1621_vm7, %v1612_v26, %v1614_v32 }
  0xec   : > { %3201 = vrot.lane.b32.xlu1 %v7458_v6, %s7386_s26  ;;  %3199 = vrot.lane.b32.xlu0 %v7452_v4, %s7386_s26  ;;  %v1646_v40 = vsel %vm309_vm1, %v1626_v35, 0 }
  0xed   : > { %6692 = vmatmul.mubr.msk.bf16.vlgmr.msra.gmra.mrb[4].mxu1 %vm305_vm2, %v6684_v17  ;;  %6698 = vmatprep.subr.msk.bf16.mxu0 %vm309_vm1, %v1627_v33 }
  0xee   : > { %1699 = vmatpush1.bf16.msra.mxu1 %v1640_v34  ;;  %v1620_v36 = vpop.permute.xlu1 %1619  ;;  %v1618_v37 = vpop.permute.xlu0 %1617  ;;  %1730 = vmatprep.mubr.bf16.mxu1 %v7373_v0 }
  0xef   : > { %v1629_v39 = vsel %vm1621_vm7, %v1618_v37, %v1620_v36  ;;  %v1628_v41 = vsel %vm1621_vm7, %v1616_v31, %v1618_v37  ;;  %vm5069_vm7 = vcmask 375808  }
  0xf0   : > { %3205 = vrot.lane.b32.xlu1 %v7456_v5, %s7386_s26  ;;  %3203 = vrot.lane.b32.xlu0 %v7450_v3, %s7386_s26  ;;  %v1652_v44 = vsel %vm309_vm1, %v1628_v41, 0 }
  0xf1   : > { %6695 = vmatmul.mubr.msk.bf16.vlgmr.msra.gmra.mrb[0].mxu0 %vm305_vm2, %v6693_v38  ;;  %6700 = vmatprep.subr.msk.bf16.mxu1 %vm309_vm1, %v1629_v39 }
  0xf2   : > { %1740 = vmatpush1.bf16.msra.mxu0 %v1646_v40  ;;  %v1834_v42 = vpop.permute.xlu1 %1833  ;;  %v1832_v43 = vpop.permute.xlu0 %1831  ;;  %1771 = vmatprep.mubr.bf16.mxu0 %v7373_v0 }
  0xf3   : > { %v1850_v45 = vsel %vm1849_vm8, %v1832_v43, %v1834_v42  ;;  %v6720_v43 = vld [vmem:[%s8653_s1 + $0x24] sm:$0xf] }
  0xf4   : > { %3209 = vrot.lane.b32.xlu1 %v7463_v8, %s7386_s26  ;;  %3207 = vrot.lane.b32.xlu0 %v7465_v9, %s7386_s26  ;;  %v1862_v49 = vsel %vm309_vm1, %v1850_v45, 0 }
  0xf5   : > { %6697 = vmatmul.mubr.msk.bf16.vlgmr.msra.gmra.mrb[0].mxu1 %vm305_vm2, %v6693_v38 }
  0xf6   : > { %1781 = vmatpush1.bf16.msra.mxu1 %v1652_v44  ;;  %v1838_v46 = vpop.permute.xlu1 %1837  ;;  %v1836_v47 = vpop.permute.xlu0 %1835  ;;  %1812 = vmatprep.mubr.bf16.mxu1 %v7373_v0 }
  0xf7   : > { %v1851_v48 = vsel %vm1849_vm8, %v1834_v42, %v1836_v47  ;;  %v1852_v50 = vsel %vm1849_vm8, %v1836_v47, %v1838_v46 }
  0xf8   : > { %3213 = vrot.lane.b32.xlu1 %v7470_v11, %s7386_s26  ;;  %3211 = vrot.lane.b32.xlu0 %v7472_v12, %s7386_s26  ;;  %v1868_v54 = vsel %vm309_vm1, %v1852_v50, 0 }
  0xf9   : > { %6703 = vmatprep.subr.msk.bf16.mxu0 %vm309_vm1, %v1851_v48  ;;  %6699 = vmatmul.mubr.msk.bf16.vlgmr.msra.gmra.mrb[4].mxu0 %vm305_vm2, %v6693_v38 }
  0xfa   : > { %1886 = vmatpush1.bf16.msra.mxu0 %v1862_v49  ;;  %v1842_v51 = vpop.permute.xlu1 %1841  ;;  %v1840_v52 = vpop.permute.xlu0 %1839  ;;  %1917 = vmatprep.mubr.bf16.mxu0 %v7373_v0 }
  0xfb   : > { %v1853_v53 = vsel %vm1849_vm8, %v1838_v46, %v1840_v52  ;;  %v1854_v55 = vsel %vm1849_vm8, %v1840_v52, %v1842_v51 }
  0xfc   : > { %3427 = vrot.lane.b32.xlu1 %v7452_v4, %s7387_s29  ;;  %3215 = vrot.lane.b32.xlu0 %v7477_v13, %s7386_s26  ;;  %v1874_v60 = vsel %vm309_vm1, %v1854_v55, 0  ;;  %s7393_s26 = smov 54  }
  0xfd   : > { %6705 = vmatprep.subr.msk.bf16.mxu1 %vm309_vm1, %v1853_v53  ;;  %6701 = vmatmul.mubr.msk.bf16.vlgmr.msra.gmra.mrb[4].mxu1 %vm305_vm2, %v6693_v38 }
  0xfe   : > { %1927 = vmatpush1.bf16.msra.mxu1 %v1868_v54  ;;  %v1846_v56 = vpop.permute.xlu1 %1845  ;;  %v1844_v57 = vpop.permute.xlu0 %1843  ;;  %1958 = vmatprep.mubr.bf16.mxu1 %v7373_v0 }
  0xff   : > { %v1855_v59 = vsel %vm1849_vm8, %v1842_v51, %v1844_v57  ;;  %v1856_v61 = vsel %vm1849_vm8, %v1844_v57, %v1846_v56 }
 0x100   : > { %3431 = vrot.lane.b32.xlu1 %v7450_v3, %s7387_s29  ;;  %3429 = vrot.lane.b32.xlu0 %v7458_v6, %s7387_s29  ;;  %v1880_v2 = vsel %vm309_vm1, %v1856_v61, 0 }
 0x101   : > { %6707 = vmatprep.subr.msk.bf16.mxu0 %vm309_vm1, %v1855_v59  ;;  %6704 = vmatmul.mubr.msk.bf16.vlgmr.msra.gmra.mrb[0].mxu0 %vm305_vm2, %v6702_v58 }
 0x102   : > { %1968 = vmatpush1.bf16.msra.mxu0 %v1874_v60  ;;  %v2060_v62 = vpop.permute.xlu1 %2059  ;;  %v1848_v63 = vpop.permute.xlu0 %1847  ;;  %1999 = vmatprep.mubr.bf16.mxu0 %v7373_v0 }
 0x103   : > { %v1857_v1 = vsel %vm1849_vm8, %v1846_v56, %v1848_v63  ;;  %vm5297_vm8 = vcmask 367616  }
 0x104   : > { %3435 = vrot.lane.b32.xlu1 %v7465_v9, %s7387_s29  ;;  %3433 = vrot.lane.b32.xlu0 %v7456_v5, %s7387_s29 }
 0x105   : > { %6709 = vmatprep.subr.msk.bf16.mxu1 %vm309_vm1, %v1857_v1  ;;  %6706 = vmatmul.mubr.msk.bf16.vlgmr.msra.gmra.mrb[0].mxu1 %vm305_vm2, %v6702_v58 }
 0x106   : > { %2009 = vmatpush1.bf16.msra.mxu1 %v1880_v2  ;;  %v2064_v7 = vpop.permute.xlu1 %2063  ;;  %v2062_v10 = vpop.permute.xlu0 %2061  ;;  %2040 = vmatprep.mubr.bf16.mxu1 %v7373_v0  ;;  %v7364_v2 = vld [vmem:[%s7444_s23 + $0x20] ss:$0 sps:$4 sm:$0xff]  }
 0x107   : > { %v2078_v14 = vsel %vm2077_vm9, %v2060_v62, %v2062_v10  ;;  %v2079_v15 = vsel %vm2077_vm9, %v2062_v10, %v2064_v7  ;;  %v6729_v62 = vld [vmem:[%s8653_s1 + $0x28] sm:$0xf] }
 0x108   : > { %3439 = vrot.lane.b32.xlu1 %v7472_v12, %s7387_s29  ;;  %3437 = vrot.lane.b32.xlu0 %v7463_v8, %s7387_s29  ;;  %v2090_v16 = vsel %vm309_vm1, %v2078_v14, 0 }
 0x109   : > { %6712 = vmatprep.subr.msk.bf16.mxu0 %vm309_vm1, %v2079_v15  ;;  %6708 = vmatmul.mubr.msk.bf16.vlgmr.msra.gmra.mrb[4].mxu0 %vm305_vm2, %v6702_v58 }
 0x10a   : > { %2114 = vmatpush1.bf16.msra.mxu0 %v2090_v16  ;;  %v2068_v17 = vpop.permute.xlu1 %2067  ;;  %v2066_v18 = vpop.permute.xlu0 %2065  ;;  %2145 = vmatprep.mubr.bf16.mxu0 %v7373_v0 }
 0x10b   : > { %v2080_v19 = vsel %vm2077_vm9, %v2064_v7, %v2066_v18  ;;  %v2081_v20 = vsel %vm2077_vm9, %v2066_v18, %v2068_v17 }
 0x10c   : > { %3443 = vrot.lane.b32.xlu1 %v7477_v13, %s7387_s29  ;;  %3441 = vrot.lane.b32.xlu0 %v7470_v11, %s7387_s29  ;;  %v2096_v21 = vsel %vm309_vm1, %v2080_v19, 0  ;;  %s7394_s29 = smov 46  }
 0x10d   : > { %6714 = vmatprep.subr.msk.bf16.mxu1 %vm309_vm1, %v2081_v20  ;;  %6710 = vmatmul.mubr.msk.bf16.vlgmr.msra.gmra.mrb[4].mxu1 %vm305_vm2, %v6702_v58 }
 0x10e   : > { %2155 = vmatpush1.bf16.msra.mxu1 %v2096_v21  ;;  %v2072_v22 = vpop.permute.xlu1 %2071  ;;  %v2070_v23 = vpop.permute.xlu0 %2069  ;;  %2186 = vmatprep.mubr.bf16.mxu1 %v7373_v0 }
 0x10f   : > { %v2082_v25 = vsel %vm2077_vm9, %v2068_v17, %v2070_v23  ;;  %v2083_v26 = vsel %vm2077_vm9, %v2070_v23, %v2072_v22 }
 0x110   : > { %3657 = vrot.lane.b32.xlu1 %v7458_v6, %s7388_s9  ;;  %3655 = vrot.lane.b32.xlu0 %v7452_v4, %s7388_s9  ;;  %v2102_v27 = vsel %vm309_vm1, %v2082_v25, 0 }
 0x111   : > { %6716 = vmatprep.subr.msk.bf16.mxu0 %vm309_vm1, %v2083_v26  ;;  %6713 = vmatmul.mubr.msk.bf16.vlgmr.msra.gmra.mrb[0].mxu0 %vm305_vm2, %v6711_v24  ;;  %v4340_v26 = vld [vmem:[%s7444_s23 + $0xc] sm:$0xff] }
 0x112   : > { %2196 = vmatpush1.bf16.msra.mxu0 %v2102_v27  ;;  %v2076_v28 = vpop.permute.xlu1 %2075  ;;  %v2074_v29 = vpop.permute.xlu0 %2073  ;;  %2227 = vmatprep.mubr.bf16.mxu0 %v7373_v0 }
 0x113   : > { %v2084_v30 = vsel %vm2077_vm9, %v2072_v22, %v2074_v29  ;;  %v2085_v31 = vsel %vm2077_vm9, %v2074_v29, %v2076_v28  ;;  %vm5525_vm9 = vcmask 359424  }
 0x114   : > { %3661 = vrot.lane.b32.xlu1 %v7456_v5, %s7388_s9  ;;  %3659 = vrot.lane.b32.xlu0 %v7450_v3, %s7388_s9  ;;  %v2108_v32 = vsel %vm309_vm1, %v2084_v30, 0 }
 0x115   : > { %6718 = vmatprep.subr.msk.bf16.mxu1 %vm309_vm1, %v2085_v31  ;;  %6715 = vmatmul.mubr.msk.bf16.vlgmr.msra.gmra.mrb[0].mxu1 %vm305_vm2, %v6711_v24 }
 0x116   : > { %2237 = vmatpush1.bf16.msra.mxu1 %v2108_v32  ;;  %v2290_v33 = vpop.permute.xlu1 %2289  ;;  %v2288_v34 = vpop.permute.xlu0 %2287  ;;  %2268 = vmatprep.mubr.bf16.mxu1 %v7373_v0 }
 0x117   : > { %v2306_v35 = vsel %vm2305_vm10, %v2288_v34, %v2290_v33 }
 0x118   : > { %3665 = vrot.lane.b32.xlu1 %v7463_v8, %s7388_s9  ;;  %3663 = vrot.lane.b32.xlu0 %v7465_v9, %s7388_s9  ;;  %v2318_v39 = vsel %vm309_vm1, %v2306_v35, 0 }
 0x119   : > { %6717 = vmatmul.mubr.msk.bf16.vlgmr.msra.gmra.mrb[4].mxu0 %vm305_vm2, %v6711_v24 }
 0x11a   : > { %v2294_v36 = vpop.permute.xlu1 %2293  ;;  %v2292_v37 = vpop.permute.xlu0 %2291  ;;  %2373 = vmatprep.mubr.bf16.mxu0 %v7373_v0 }
 0x11b   : > { %v2307_v38 = vsel %vm2305_vm10, %v2290_v33, %v2292_v37  ;;  %v2308_v40 = vsel %vm2305_vm10, %v2292_v37, %v2294_v36  ;;  %v4341_v33 = vld [vmem:[%s7444_s23 + $0x14] sm:$0xff] }
 0x11c   : > { %3669 = vrot.lane.b32.xlu1 %v7470_v11, %s7388_s9  ;;  %3667 = vrot.lane.b32.xlu0 %v7472_v12, %s7388_s9  ;;  %v2324_v45 = vsel %vm309_vm1, %v2308_v40, 0 }
 0x11d   : > { %6721 = vmatprep.subr.msk.bf16.mxu0 %vm309_vm1, %v2307_v38  ;;  %6719 = vmatmul.mubr.msk.bf16.vlgmr.msra.gmra.mrb[4].mxu1 %vm305_vm2, %v6711_v24  ;;  %v8040_v38 = vcombine.low %v4341_v33, %v4341_v33 }
 0x11e   : > { %2342 = vmatpush1.bf16.msra.mxu0 %v2318_v39  ;;  %v2298_v41 = vpop.permute.xlu1 %2297  ;;  %v2296_v42 = vpop.permute.xlu0 %2295  ;;  %2414 = vmatprep.mubr.bf16.mxu1 %v7373_v0  ;;  %v8042_v39 = vcombine.high %v4340_v26, %v4340_v26 }
 0x11f   : > { %v2309_v44 = vsel %vm2305_vm10, %v2294_v36, %v2296_v42  ;;  %v2310_v46 = vsel %vm2305_vm10, %v2296_v42, %v2298_v41 }
 0x120   : > { %3883 = vrot.lane.b32.xlu1 %v7452_v4, %s7389_s12  ;;  %3671 = vrot.lane.b32.xlu0 %v7477_v13, %s7388_s9  ;;  %v2330_v13 = vsel %vm309_vm1, %v2310_v46, 0 }
 0x121   : > { %6723 = vmatprep.subr.msk.bf16.mxu1 %vm309_vm1, %v2309_v44  ;;  %6722 = vmatmul.mubr.msk.bf16.vlgmr.msra.gmra.mrb[0].mxu0 %vm305_vm2, %v6720_v43 }
 0x122   : > { %2383 = vmatpush1.bf16.msra.mxu1 %v2324_v45  ;;  %v2302_v47 = vpop.permute.xlu1 %2301  ;;  %v2300_v48 = vpop.permute.xlu0 %2299  ;;  %2455 = vmatprep.mubr.bf16.mxu0 %v7373_v0 }
 0x123   : > { %v2311_v49 = vsel %vm2305_vm10, %v2298_v41, %v2300_v48  ;;  %v2312_v50 = vsel %vm2305_vm10, %v2300_v48, %v2302_v47  ;;  %v4342_v41 = vld [vmem:[%s7444_s23 + $0x1c] sm:$0xff] }
 0x124   : > { %3887 = vrot.lane.b32.xlu1 %v7450_v3, %s7389_s12  ;;  %3885 = vrot.lane.b32.xlu0 %v7458_v6, %s7389_s12  ;;  %v2336_v54 = vsel %vm309_vm1, %v2312_v50, 0  ;;  %v8055_v46 = vcombine.low %v4342_v41, %v4342_v41 }
 0x125   : > { %6725 = vmatprep.subr.msk.bf16.mxu0 %vm309_vm1, %v2311_v49  ;;  %6724 = vmatmul.mubr.msk.bf16.vlgmr.msra.gmra.mrb[0].mxu1 %vm305_vm2, %v6720_v43 }
 0x126   : > { %2424 = vmatpush1.bf16.msra.mxu0 %v2330_v13  ;;  %v2516_v51 = vpop.permute.xlu1 %2515  ;;  %v2304_v52 = vpop.permute.xlu0 %2303  ;;  %2496 = vmatprep.mubr.bf16.mxu1 %v7373_v0 }
 0x127   : > { %v2313_v53 = vsel %vm2305_vm10, %v2302_v47, %v2304_v52  ;;  %v8057_v47 = vcombine.high %v4341_v33, %v4341_v33  ;;  %vm5753_vm10 = vcmask 293888  }
 0x128   : > { %3891 = vrot.lane.b32.xlu1 %v7465_v9, %s7389_s12  ;;  %3889 = vrot.lane.b32.xlu0 %v7456_v5, %s7389_s12 }
 0x129   : > { %6727 = vmatprep.subr.msk.bf16.mxu1 %vm309_vm1, %v2313_v53  ;;  %6726 = vmatmul.mubr.msk.bf16.vlgmr.msra.gmra.mrb[4].mxu0 %vm305_vm2, %v6720_v43  ;;  %v8071_v53 = vld [vmem:[%s7444_s23 + $0x24] ss:$0 sps:$4 sm:$0xff]  }
 0x12a   : > { %2465 = vmatpush1.bf16.msra.mxu1 %v2336_v54  ;;  %v2520_v55 = vpop.permute.xlu1 %2519  ;;  %v2518_v56 = vpop.permute.xlu0 %2517  ;;  %2601 = vmatprep.mubr.bf16.mxu0 %v7373_v0  ;;  %v8073_v54 = vcombine.high %v4342_v41, %v4342_v41 }
 0x12b   : > { %v2534_v57 = vsel %vm2533_vm11, %v2516_v51, %v2518_v56  ;;  %v2535_v58 = vsel %vm2533_vm11, %v2518_v56, %v2520_v55 }
 0x12c   : > { %3895 = vrot.lane.b32.xlu1 %v7472_v12, %s7389_s12  ;;  %3893 = vrot.lane.b32.xlu0 %v7463_v8, %s7389_s12  ;;  %v2546_v59 = vsel %vm309_vm1, %v2534_v57, 0  ;;  %v6747_v57 = vld [vmem:[%s8653_s1 + $0x30] sm:$0xf] }
 0x12d   : > { %6730 = vmatprep.subr.msk.bf16.mxu0 %vm309_vm1, %v2535_v58  ;;  %6728 = vmatmul.mubr.msk.bf16.vlgmr.msra.gmra.mrb[4].mxu1 %vm305_vm2, %v6720_v43 }
 0x12e   : > { %2570 = vmatpush1.bf16.msra.mxu0 %v2546_v59  ;;  %v2524_v60 = vpop.permute.xlu1 %2523  ;;  %v2522_v61 = vpop.permute.xlu0 %2521  ;;  %2642 = vmatprep.mubr.bf16.mxu1 %v7373_v0 }
 0x12f   : > { %v2536_v63 = vsel %vm2533_vm11, %v2520_v55, %v2522_v61  ;;  %v2537_v1 = vsel %vm2533_vm11, %v2522_v61, %v2524_v60 }
 0x130   : > { %3899 = vrot.lane.b32.xlu1 %v7364_v2, %s7389_s12  ;;  %3897 = vrot.lane.b32.xlu0 %v7470_v11, %s7389_s12  ;;  %v2552_v7 = vsel %vm309_vm1, %v2536_v63, 0 }
 0x131   : > { %6732 = vmatprep.subr.msk.bf16.mxu1 %vm309_vm1, %v2537_v1  ;;  %6731 = vmatmul.mubr.msk.bf16.vlgmr.msra.gmra.mrb[0].mxu0 %vm305_vm2, %v6729_v62 }
 0x132   : > { %2611 = vmatpush1.bf16.msra.mxu1 %v2552_v7  ;;  %v2528_v10 = vpop.permute.xlu1 %2527  ;;  %v2526_v14 = vpop.permute.xlu0 %2525  ;;  %2683 = vmatprep.mubr.bf16.mxu0 %v7373_v0 }
 0x133   : > { %v2538_v15 = vsel %vm2533_vm11, %v2524_v60, %v2526_v14  ;;  %v2539_v16 = vsel %vm2533_vm11, %v2526_v14, %v2528_v10 }
 0x134   : > { %4113 = vrot.lane.b32.xlu1 %v7458_v6, %s7390_s15  ;;  %4111 = vrot.lane.b32.xlu0 %v7452_v4, %s7390_s15  ;;  %v2558_v17 = vsel %vm309_vm1, %v2538_v15, 0 }
 0x135   : > { %6734 = vmatprep.subr.msk.bf16.mxu0 %vm309_vm1, %v2539_v16  ;;  %6733 = vmatmul.mubr.msk.bf16.vlgmr.msra.gmra.mrb[0].mxu1 %vm305_vm2, %v6729_v62 }
 0x136   : > { %2652 = vmatpush1.bf16.msra.mxu0 %v2558_v17  ;;  %v2532_v18 = vpop.permute.xlu1 %2531  ;;  %v2530_v19 = vpop.permute.xlu0 %2529  ;;  %2724 = vmatprep.mubr.bf16.mxu1 %v7373_v0 }
 0x137   : > { %v2540_v20 = vsel %vm2533_vm11, %v2528_v10, %v2530_v19  ;;  %v2541_v21 = vsel %vm2533_vm11, %v2530_v19, %v2532_v18  ;;  %vm5981_vm11 = vcmask 285696  }
 0x138   : > { %4117 = vrot.lane.b32.xlu1 %v7456_v5, %s7390_s15  ;;  %4115 = vrot.lane.b32.xlu0 %v7450_v3, %s7390_s15  ;;  %v2564_v4 = vsel %vm309_vm1, %v2540_v20, 0  ;;  %v4339_v3 = vld [vmem:[%s7444_s23 + $0x4] sm:$0xff]  ;;  %s7392_s23 = smov 55  }
 0x139   : > { %6736 = vmatprep.subr.msk.bf16.mxu1 %vm309_vm1, %v2541_v21  ;;  %6735 = vmatmul.mubr.msk.bf16.vlgmr.msra.gmra.mrb[4].mxu0 %vm305_vm2, %v6729_v62  ;;  %v8027_v31 = vcombine.high %v4339_v3, %v4339_v3 }
 0x13a   : > { %2693 = vmatpush1.bf16.msra.mxu1 %v2564_v4  ;;  %v2746_v6 = vpop.permute.xlu1 %2745  ;;  %v2744_v22 = vpop.permute.xlu0 %2743  ;;  %2829 = vmatprep.mubr.bf16.mxu0 %v7373_v0 }
 0x13b   : > { %v2762_v5 = vsel %vm2761_vm12, %v2744_v22, %v2746_v6 }
 0x13c   : > { %4121 = vrot.lane.b32.xlu1 %v7463_v8, %s7390_s15  ;;  %4119 = vrot.lane.b32.xlu0 %v7465_v9, %s7390_s15  ;;  %v8012_v8 = vcombine.low %v4339_v3, %v4339_v3  ;;  %v2774_v9 = vsel %vm309_vm1, %v2762_v5, 0 }
 0x13d   : > { %6737 = vmatmul.mubr.msk.bf16.vlgmr.msra.gmra.mrb[4].mxu1 %vm305_vm2, %v6729_v62 }
 0x13e   : > { %v2750_v23 = vpop.permute.xlu1 %2749  ;;  %v2748_v24 = vpop.permute.xlu0 %2747  ;;  %2870 = vmatprep.mubr.bf16.mxu1 %v7373_v0 }
 0x13f   : > { %v2763_v25 = vsel %vm2761_vm12, %v2746_v6, %v2748_v24  ;;  %v2764_v27 = vsel %vm2761_vm12, %v2748_v24, %v2750_v23 }
 0x140   : > { %4125 = vrot.lane.b32.xlu1 %v7470_v11, %s7390_s15  ;;  %4123 = vrot.lane.b32.xlu0 %v7472_v12, %s7390_s15  ;;  %v6738_v11 = vld [vmem:[%s8653_s1 + $0x2c] sm:$0xf]  ;;  %v8025_v12 = vcombine.low %v4340_v26, %v4340_v26  ;;  %v2780_v32 = vsel %vm309_vm1, %v2764_v27, 0 }
 0x141   : > { %6739 = vmatprep.subr.msk.bf16.mxu0 %vm309_vm1, %v2763_v25 }
 0x142   : > { %2798 = vmatpush1.bf16.msra.mxu0 %v2774_v9  ;;  %v2754_v28 = vpop.permute.xlu1 %2753  ;;  %v2752_v29 = vpop.permute.xlu0 %2751 }
 0x143   : > { %v2765_v30 = vsel %vm2761_vm12, %v2750_v23, %v2752_v29  ;;  %v2766_v34 = vsel %vm2761_vm12, %v2752_v29, %v2754_v28  ;;  %v6756_v23 = vld [vmem:[%s8653_s1 + $0x34] sm:$0xf] }
 0x144   : > { %4367 = vrot.lane.b32.xlu1 %v8012_v8, %s7391_s20  ;;  %4127 = vrot.lane.b32.xlu0 %v7364_v2, %s7390_s15  ;;  %v2786_v40 = vsel %vm309_vm1, %v2766_v34, 0 }
 0x145   : > { %6741 = vmatprep.subr.msk.bf16.mxu1 %vm309_vm1, %v2765_v30  ;;  %6740 = vmatmul.mubr.msk.bf16.vlgmr.msra.gmra.mrb[0].mxu0 %vm305_vm2, %v6738_v11 }
 0x146   : > { %2839 = vmatpush1.bf16.msra.mxu1 %v2780_v32  ;;  %v2758_v35 = vpop.permute.xlu1 %2757  ;;  %v2756_v36 = vpop.permute.xlu0 %2755  ;;  %2911 = vmatprep.mubr.bf16.mxu0 %v7373_v0 }
 0x147   : > { %v2767_v37 = vsel %vm2761_vm12, %v2754_v28, %v2756_v36  ;;  %v2768_v42 = vsel %vm2761_vm12, %v2756_v36, %v2758_v35 }
 0x148   : > { %4371 = vrot.lane.b32.xlu1 %v8025_v12, %s7391_s20  ;;  %4369 = vrot.lane.b32.xlu0 %v8027_v31, %s7391_s20  ;;  %v2792_v48 = vsel %vm309_vm1, %v2768_v42, 0 }
 0x149   : > { %6743 = vmatprep.subr.msk.bf16.mxu0 %vm309_vm1, %v2767_v37  ;;  %6742 = vmatmul.mubr.msk.bf16.vlgmr.msra.gmra.mrb[0].mxu1 %vm305_vm2, %v6738_v11 }
 0x14a   : > { %2880 = vmatpush1.bf16.msra.mxu0 %v2786_v40  ;;  %v2972_v43 = vpop.permute.xlu1 %2971  ;;  %v2760_v44 = vpop.permute.xlu0 %2759  ;;  %2952 = vmatprep.mubr.bf16.mxu1 %v7373_v0 }
 0x14b   : > { %v2769_v45 = vsel %vm2761_vm12, %v2758_v35, %v2760_v44  ;;  %v6765_v44 = vld [vmem:[%s8653_s1 + $0x38] sm:$0xf]  ;;  %vm6209_vm12 = vcmask 277504  }
 0x14c   : > { %4375 = vrot.lane.b32.xlu1 %v8040_v38, %s7391_s20  ;;  %4373 = vrot.lane.b32.xlu0 %v8042_v39, %s7391_s20 }
 0x14d   : > { %6745 = vmatprep.subr.msk.bf16.mxu1 %vm309_vm1, %v2769_v45  ;;  %6744 = vmatmul.mubr.msk.bf16.vlgmr.msra.gmra.mrb[4].mxu0 %vm305_vm2, %v6738_v11 }
 0x14e   : > { %2921 = vmatpush1.bf16.msra.mxu1 %v2792_v48  ;;  %v2976_v49 = vpop.permute.xlu1 %2975  ;;  %v2974_v13 = vpop.permute.xlu0 %2973  ;;  %3057 = vmatprep.mubr.bf16.mxu0 %v7373_v0 }
 0x14f   : > { %v2990_v50 = vsel %vm2989_vm13, %v2972_v43, %v2974_v13  ;;  %v2991_v51 = vsel %vm2989_vm13, %v2974_v13, %v2976_v49 }
 0x150   : > { %4379 = vrot.lane.b32.xlu1 %v8055_v46, %s7391_s20  ;;  %4377 = vrot.lane.b32.xlu0 %v8057_v47, %s7391_s20  ;;  %v3002_v52 = vsel %vm309_vm1, %v2990_v50, 0 }
 0x151   : > { %6748 = vmatprep.subr.msk.bf16.mxu0 %vm309_vm1, %v2991_v51  ;;  %6746 = vmatmul.mubr.msk.bf16.vlgmr.msra.gmra.mrb[4].mxu1 %vm305_vm2, %v6738_v11 }
 0x152   : > { %3026 = vmatpush1.bf16.msra.mxu0 %v3002_v52  ;;  %v2980_v55 = vpop.permute.xlu1 %2979  ;;  %v2978_v56 = vpop.permute.xlu0 %2977  ;;  %3098 = vmatprep.mubr.bf16.mxu1 %v7373_v0 }
 0x153   : > { %v2992_v58 = vsel %vm2989_vm13, %v2976_v49, %v2978_v56  ;;  %v2993_v59 = vsel %vm2989_vm13, %v2978_v56, %v2980_v55 }
 0x154   : > { %4383 = vrot.lane.b32.xlu1 %v8071_v53, %s7391_s20  ;;  %4381 = vrot.lane.b32.xlu0 %v8073_v54, %s7391_s20  ;;  %v3008_v60 = vsel %vm309_vm1, %v2992_v58, 0 }
 0x155   : > { %6750 = vmatprep.subr.msk.bf16.mxu1 %vm309_vm1, %v2993_v59  ;;  %6749 = vmatmul.mubr.msk.bf16.vlgmr.msra.gmra.mrb[0].mxu0 %vm305_vm2, %v6747_v57 }
 0x156   : > { %3067 = vmatpush1.bf16.msra.mxu1 %v3008_v60  ;;  %v2984_v61 = vpop.permute.xlu1 %2983  ;;  %v2982_v62 = vpop.permute.xlu0 %2981  ;;  %3139 = vmatprep.mubr.bf16.mxu0 %v7373_v0 }
 0x157   : > { %v2994_v63 = vsel %vm2989_vm13, %v2980_v55, %v2982_v62  ;;  %v2995_v1 = vsel %vm2989_vm13, %v2982_v62, %v2984_v61 }
 0x158   : > { %4597 = vrot.lane.b32.xlu1 %v8027_v31, %s7392_s23  ;;  %4595 = vrot.lane.b32.xlu0 %v8012_v8, %s7392_s23  ;;  %v3014_v2 = vsel %vm309_vm1, %v2994_v63, 0 }
 0x159   : > { %6752 = vmatprep.subr.msk.bf16.mxu0 %vm309_vm1, %v2995_v1  ;;  %6751 = vmatmul.mubr.msk.bf16.vlgmr.msra.gmra.mrb[0].mxu1 %vm305_vm2, %v6747_v57 }
 0x15a   : > { %3108 = vmatpush1.bf16.msra.mxu0 %v3014_v2  ;;  %v2988_v7 = vpop.permute.xlu1 %2987  ;;  %v2986_v10 = vpop.permute.xlu0 %2985  ;;  %3180 = vmatprep.mubr.bf16.mxu1 %v7373_v0 }
 0x15b   : > { %v2996_v14 = vsel %vm2989_vm13, %v2984_v61, %v2986_v10  ;;  %v2997_v15 = vsel %vm2989_vm13, %v2986_v10, %v2988_v7 }
 0x15c   : > { %4601 = vrot.lane.b32.xlu1 %v8042_v39, %s7392_s23  ;;  %4599 = vrot.lane.b32.xlu0 %v8025_v12, %s7392_s23  ;;  %v3020_v16 = vsel %vm309_vm1, %v2996_v14, 0 }
 0x15d   : > { %6754 = vmatprep.subr.msk.bf16.mxu1 %vm309_vm1, %v2997_v15  ;;  %6753 = vmatmul.mubr.msk.bf16.vlgmr.msra.gmra.mrb[4].mxu0 %vm305_vm2, %v6747_v57 }
 0x15e   : > { %3149 = vmatpush1.bf16.msra.mxu1 %v3020_v16  ;;  %v3202_v17 = vpop.permute.xlu1 %3201  ;;  %v3200_v18 = vpop.permute.xlu0 %3199  ;;  %3285 = vmatprep.mubr.bf16.mxu0 %v7373_v0 }
 0x15f   : > { %v3218_v19 = vsel %vm3217_vm14, %v3200_v18, %v3202_v17 }
 0x160   : > { %4605 = vrot.lane.b32.xlu1 %v8057_v47, %s7392_s23  ;;  %4603 = vrot.lane.b32.xlu0 %v8040_v38, %s7392_s23  ;;  %v3230_v6 = vsel %vm309_vm1, %v3218_v19, 0 }
 0x161   : > { %6755 = vmatmul.mubr.msk.bf16.vlgmr.msra.gmra.mrb[4].mxu1 %vm305_vm2, %v6747_v57 }
 0x162   : > { %v3206_v20 = vpop.permute.xlu1 %3205  ;;  %v3204_v21 = vpop.permute.xlu0 %3203  ;;  %3326 = vmatprep.mubr.bf16.mxu1 %v7373_v0 }
 0x163   : > { %v3219_v4 = vsel %vm3217_vm14, %v3202_v17, %v3204_v21  ;;  %v3220_v22 = vsel %vm3217_vm14, %v3204_v21, %v3206_v20  ;;  %v6774_v17 = vld [vmem:[%s8653_s1 + $0x3c] sm:$0xf] }
 0x164   : > { %4609 = vrot.lane.b32.xlu1 %v8073_v54, %s7392_s23  ;;  %4607 = vrot.lane.b32.xlu0 %v8055_v46, %s7392_s23  ;;  %v3236_v25 = vsel %vm309_vm1, %v3220_v22, 0 }
 0x165   : > { %6757 = vmatprep.subr.msk.bf16.mxu0 %vm309_vm1, %v3219_v4 }
 0x166   : > { %3254 = vmatpush1.bf16.msra.mxu0 %v3230_v6  ;;  %v3210_v3 = vpop.permute.xlu1 %3209  ;;  %v3208_v5 = vpop.permute.xlu0 %3207 }
 0x167   : > { %v3221_v24 = vsel %vm3217_vm14, %v3206_v20, %v3208_v5  ;;  %v3222_v9 = vsel %vm3217_vm14, %v3208_v5, %v3210_v3 }
 0x168   : > { %4823 = vrot.lane.b32.xlu1 %v8012_v8, %s7393_s26  ;;  %4611 = vrot.lane.b32.xlu0 %v8071_v53, %s7392_s23  ;;  %v3242_v29 = vsel %vm309_vm1, %v3222_v9, 0 }
 0x169   : > { %6759 = vmatprep.subr.msk.bf16.mxu1 %vm309_vm1, %v3221_v24  ;;  %6758 = vmatmul.mubr.msk.bf16.vlgmr.msra.gmra.mrb[0].mxu0 %vm305_vm2, %v6756_v23 }
 0x16a   : > { %3295 = vmatpush1.bf16.msra.mxu1 %v3236_v25  ;;  %v3214_v26 = vpop.permute.xlu1 %3213  ;;  %v3212_v27 = vpop.permute.xlu0 %3211  ;;  %3367 = vmatprep.mubr.bf16.mxu0 %v7373_v0 }
 0x16b   : > { %v3223_v28 = vsel %vm3217_vm14, %v3210_v3, %v3212_v27  ;;  %v3224_v11 = vsel %vm3217_vm14, %v3212_v27, %v3214_v26 }
 0x16c   : > { %4827 = vrot.lane.b32.xlu1 %v8025_v12, %s7393_s26  ;;  %4825 = vrot.lane.b32.xlu0 %v8027_v31, %s7393_s26  ;;  %v3248_v34 = vsel %vm309_vm1, %v3224_v11, 0 }
 0x16d   : > { %6761 = vmatprep.subr.msk.bf16.mxu0 %vm309_vm1, %v3223_v28  ;;  %6760 = vmatmul.mubr.msk.bf16.vlgmr.msra.gmra.mrb[0].mxu1 %vm305_vm2, %v6756_v23 }
 0x16e   : > { %3336 = vmatpush1.bf16.msra.mxu0 %v3242_v29  ;;  %v3428_v30 = vpop.permute.xlu1 %3427  ;;  %v3216_v32 = vpop.permute.xlu0 %3215  ;;  %3408 = vmatprep.mubr.bf16.mxu1 %v7373_v0 }
 0x16f   : > { %v3225_v33 = vsel %vm3217_vm14, %v3214_v26, %v3216_v32  ;;  %v6783_v32 = vld [vmem:[%s8653_s1 + $0x40] sm:$0xf] }
 0x170   : > { %4831 = vrot.lane.b32.xlu1 %v8040_v38, %s7393_s26  ;;  %4829 = vrot.lane.b32.xlu0 %v8042_v39, %s7393_s26 }
 0x171   : > { %6763 = vmatprep.subr.msk.bf16.mxu1 %vm309_vm1, %v3225_v33  ;;  %6762 = vmatmul.mubr.msk.bf16.vlgmr.msra.gmra.mrb[4].mxu0 %vm305_vm2, %v6756_v23 }
 0x172   : > { %3377 = vmatpush1.bf16.msra.mxu1 %v3248_v34  ;;  %v3432_v35 = vpop.permute.xlu1 %3431  ;;  %v3430_v36 = vpop.permute.xlu0 %3429  ;;  %3513 = vmatprep.mubr.bf16.mxu0 %v7373_v0 }
 0x173   : > { %v3446_v37 = vsel %vm3445_vm15, %v3428_v30, %v3430_v36  ;;  %v3447_v40 = vsel %vm3445_vm15, %v3430_v36, %v3432_v35 }
 0x174   : > { %4835 = vrot.lane.b32.xlu1 %v8055_v46, %s7393_s26  ;;  %4833 = vrot.lane.b32.xlu0 %v8057_v47, %s7393_s26  ;;  %v3458_v41 = vsel %vm309_vm1, %v3446_v37, 0 }
 0x175   : > { %6766 = vmatprep.subr.msk.bf16.mxu0 %vm309_vm1, %v3447_v40  ;;  %6764 = vmatmul.mubr.msk.bf16.vlgmr.msra.gmra.mrb[4].mxu1 %vm305_vm2, %v6756_v23 }
 0x176   : > { %3482 = vmatpush1.bf16.msra.mxu0 %v3458_v41  ;;  %v3436_v42 = vpop.permute.xlu1 %3435  ;;  %v3434_v43 = vpop.permute.xlu0 %3433  ;;  %3554 = vmatprep.mubr.bf16.mxu1 %v7373_v0 }
 0x177   : > { %v3448_v45 = vsel %vm3445_vm15, %v3432_v35, %v3434_v43  ;;  %v3449_v48 = vsel %vm3445_vm15, %v3434_v43, %v3436_v42 }
 0x178   : > { %4839 = vrot.lane.b32.xlu1 %v8071_v53, %s7393_s26  ;;  %4837 = vrot.lane.b32.xlu0 %v8073_v54, %s7393_s26  ;;  %v3464_v49 = vsel %vm309_vm1, %v3448_v45, 0 }
 0x179   : > { %6768 = vmatprep.subr.msk.bf16.mxu1 %vm309_vm1, %v3449_v48  ;;  %6767 = vmatmul.mubr.msk.bf16.vlgmr.msra.gmra.mrb[0].mxu0 %vm305_vm2, %v6765_v44 }
 0x17a   : > { %3523 = vmatpush1.bf16.msra.mxu1 %v3464_v49  ;;  %v3440_v13 = vpop.permute.xlu1 %3439  ;;  %v3438_v50 = vpop.permute.xlu0 %3437  ;;  %3595 = vmatprep.mubr.bf16.mxu0 %v7373_v0 }
 0x17b   : > { %v3450_v51 = vsel %vm3445_vm15, %v3436_v42, %v3438_v50  ;;  %v3451_v52 = vsel %vm3445_vm15, %v3438_v50, %v3440_v13 }
 0x17c   : > { %5053 = vrot.lane.b32.xlu1 %v8027_v31, %s7394_s29  ;;  %5051 = vrot.lane.b32.xlu0 %v8012_v8, %s7394_s29  ;;  %v3470_v55 = vsel %vm309_vm1, %v3450_v51, 0 }
 0x17d   : > { %6770 = vmatprep.subr.msk.bf16.mxu0 %vm309_vm1, %v3451_v52  ;;  %6769 = vmatmul.mubr.msk.bf16.vlgmr.msra.gmra.mrb[0].mxu1 %vm305_vm2, %v6765_v44 }
 0x17e   : > { %3564 = vmatpush1.bf16.msra.mxu0 %v3470_v55  ;;  %v3444_v56 = vpop.permute.xlu1 %3443  ;;  %v3442_v57 = vpop.permute.xlu0 %3441  ;;  %3636 = vmatprep.mubr.bf16.mxu1 %v7373_v0 }
 0x17f   : > { %v3452_v58 = vsel %vm3445_vm15, %v3440_v13, %v3442_v57  ;;  %v3453_v59 = vsel %vm3445_vm15, %v3442_v57, %v3444_v56 }
 0x180   : > { %5057 = vrot.lane.b32.xlu1 %v8042_v39, %s7394_s29  ;;  %5055 = vrot.lane.b32.xlu0 %v8025_v12, %s7394_s29  ;;  %v3476_v60 = vsel %vm309_vm1, %v3452_v58, 0 }
 0x181   : > { %6772 = vmatprep.subr.msk.bf16.mxu1 %vm309_vm1, %v3453_v59  ;;  %6771 = vmatmul.mubr.msk.bf16.vlgmr.msra.gmra.mrb[4].mxu0 %vm305_vm2, %v6765_v44 }
 0x182   : > { %3605 = vmatpush1.bf16.msra.mxu1 %v3476_v60  ;;  %v3658_v61 = vpop.permute.xlu1 %3657  ;;  %v3656_v62 = vpop.permute.xlu0 %3655  ;;  %3741 = vmatprep.mubr.bf16.mxu0 %v7373_v0 }
 0x183   : > { %v3674_v63 = vsel %vm305_vm2, %v3656_v62, %v3658_v61 }
 0x184   : > { %5061 = vrot.lane.b32.xlu1 %v8057_v47, %s7394_s29  ;;  %5059 = vrot.lane.b32.xlu0 %v8040_v38, %s7394_s29  ;;  %v3686_v10 = vsel %vm309_vm1, %v3674_v63, 0 }
 0x185   : > { %6773 = vmatmul.mubr.msk.bf16.vlgmr.msra.gmra.mrb[4].mxu1 %vm305_vm2, %v6765_v44 }
 0x186   : > { %v3662_v1 = vpop.permute.xlu1 %3661  ;;  %v3660_v2 = vpop.permute.xlu0 %3659  ;;  %3782 = vmatprep.mubr.bf16.mxu1 %v7373_v0 }
 0x187   : > { %v3675_v7 = vsel %vm305_vm2, %v3658_v61, %v3660_v2  ;;  %v3676_v14 = vsel %vm305_vm2, %v3660_v2, %v3662_v1  ;;  %v6792_v61 = vld [vmem:[%s8653_s1 + $0x44] sm:$0xf] }
 0x188   : > { %5065 = vrot.lane.b32.xlu1 %v8073_v54, %s7394_s29  ;;  %5063 = vrot.lane.b32.xlu0 %v8055_v46, %s7394_s29  ;;  %v3692_v19 = vsel %vm309_vm1, %v3676_v14, 0 }
 0x189   : > { %6775 = vmatprep.subr.msk.bf16.mxu0 %vm309_vm1, %v3675_v7 }
 0x18a   : > { %3710 = vmatpush1.bf16.msra.mxu0 %v3686_v10  ;;  %v3666_v15 = vpop.permute.xlu1 %3665  ;;  %v3664_v16 = vpop.permute.xlu0 %3663 }
 0x18b   : > { %v3677_v18 = vsel %vm305_vm2, %v3662_v1, %v3664_v16  ;;  %v3678_v20 = vsel %vm305_vm2, %v3664_v16, %v3666_v15 }
 0x18c   : > { %5279 = vrot.lane.b32.xlu1 %v8012_v8, %s7395_s7  ;;  %5067 = vrot.lane.b32.xlu0 %v8071_v53, %s7394_s29  ;;  %v3698_v22 = vsel %vm309_vm1, %v3678_v20, 0 }
 0x18d   : > { %6777 = vmatprep.subr.msk.bf16.mxu1 %vm309_vm1, %v3677_v18  ;;  %6776 = vmatmul.mubr.msk.bf16.vlgmr.msra.gmra.mrb[0].mxu0 %vm305_vm2, %v6774_v17 }
 0x18e   : > { %3751 = vmatpush1.bf16.msra.mxu1 %v3692_v19  ;;  %v3670_v21 = vpop.permute.xlu1 %3669  ;;  %v3668_v4 = vpop.permute.xlu0 %3667  ;;  %3823 = vmatprep.mubr.bf16.mxu0 %v7373_v0 }
 0x18f   : > { %v3679_v6 = vsel %vm305_vm2, %v3666_v15, %v3668_v4  ;;  %v3680_v3 = vsel %vm305_vm2, %v3668_v4, %v3670_v21 }
 0x190   : > { %5283 = vrot.lane.b32.xlu1 %v8025_v12, %s7395_s7  ;;  %5281 = vrot.lane.b32.xlu0 %v8027_v31, %s7395_s7  ;;  %v3704_v25 = vsel %vm309_vm1, %v3680_v3, 0 }
 0x191   : > { %6779 = vmatprep.subr.msk.bf16.mxu0 %vm309_vm1, %v3679_v6  ;;  %6778 = vmatmul.mubr.msk.bf16.vlgmr.msra.gmra.mrb[0].mxu1 %vm305_vm2, %v6774_v17 }
 0x192   : > { %3792 = vmatpush1.bf16.msra.mxu0 %v3698_v22  ;;  %v3884_v5 = vpop.permute.xlu1 %3883  ;;  %v3672_v23 = vpop.permute.xlu0 %3671  ;;  %3864 = vmatprep.mubr.bf16.mxu1 %v7373_v0 }
 0x193   : > { %v3681_v24 = vsel %vm305_vm2, %v3670_v21, %v3672_v23  ;;  %v6801_v23 = vld [vmem:[%s8653_s1 + $0x48] sm:$0xf] }
 0x194   : > { %5287 = vrot.lane.b32.xlu1 %v8040_v38, %s7395_s7  ;;  %5285 = vrot.lane.b32.xlu0 %v8042_v39, %s7395_s7 }
 0x195   : > { %6781 = vmatprep.subr.msk.bf16.mxu1 %vm309_vm1, %v3681_v24  ;;  %6780 = vmatmul.mubr.msk.bf16.vlgmr.msra.gmra.mrb[4].mxu0 %vm305_vm2, %v6774_v17 }
 0x196   : > { %3833 = vmatpush1.bf16.msra.mxu1 %v3704_v25  ;;  %v3888_v9 = vpop.permute.xlu1 %3887  ;;  %v3886_v26 = vpop.permute.xlu0 %3885  ;;  %3969 = vmatprep.mubr.bf16.mxu0 %v7373_v0 }
 0x197   : > { %v3902_v27 = vsel %vm3901_vm0, %v3884_v5, %v3886_v26  ;;  %v3903_v28 = vsel %vm3901_vm0, %v3886_v26, %v3888_v9 }
 0x198   : > { %5291 = vrot.lane.b32.xlu1 %v8055_v46, %s7395_s7  ;;  %5289 = vrot.lane.b32.xlu0 %v8057_v47, %s7395_s7  ;;  %v3914_v29 = vsel %vm309_vm1, %v3902_v27, 0 }
 0x199   : > { %6784 = vmatprep.subr.msk.bf16.mxu0 %vm309_vm1, %v3903_v28  ;;  %6782 = vmatmul.mubr.msk.bf16.vlgmr.msra.gmra.mrb[4].mxu1 %vm305_vm2, %v6774_v17 }
 0x19a   : > { %3938 = vmatpush1.bf16.msra.mxu0 %v3914_v29  ;;  %v3892_v11 = vpop.permute.xlu1 %3891  ;;  %v3890_v30 = vpop.permute.xlu0 %3889  ;;  %4010 = vmatprep.mubr.bf16.mxu1 %v7373_v0 }
 0x19b   : > { %v3904_v33 = vsel %vm3901_vm0, %v3888_v9, %v3890_v30  ;;  %v3905_v34 = vsel %vm3901_vm0, %v3890_v30, %v3892_v11 }
 0x19c   : > { %v3920_v35 = vsel %vm309_vm1, %v3904_v33, 0  ;;  %5295 = vrot.lane.b32.xlu1 %v8071_v53, %s7395_s7  ;;  %5293 = vrot.lane.b32.xlu0 %v8073_v54, %s7395_s7 }
 0x19d   : > { %6786 = vmatprep.subr.msk.bf16.mxu1 %vm309_vm1, %v3905_v34  ;;  %6785 = vmatmul.mubr.msk.bf16.vlgmr.msra.gmra.mrb[0].mxu0 %vm305_vm2, %v6783_v32 }
 0x19e   : > { %3979 = vmatpush1.bf16.msra.mxu1 %v3920_v35  ;;  %v3896_v36 = vpop.permute.xlu1 %3895  ;;  %v3894_v37 = vpop.permute.xlu0 %3893  ;;  %4051 = vmatprep.mubr.bf16.mxu0 %v7373_v0 }
 0x19f   : > { %v3906_v40 = vsel %vm3901_vm0, %v3892_v11, %v3894_v37  ;;  %v3907_v41 = vsel %vm3901_vm0, %v3894_v37, %v3896_v36 }
 0x1a0   : > { %v3926_v42 = vsel %vm309_vm1, %v3906_v40, 0  ;;  %5509 = vrot.lane.b32.xlu1 %v8027_v31, %s7396_s10  ;;  %5507 = vrot.lane.b32.xlu0 %v8012_v8, %s7396_s10 }
 0x1a1   : > { %6788 = vmatprep.subr.msk.bf16.mxu0 %vm309_vm1, %v3907_v41  ;;  %6787 = vmatmul.mubr.msk.bf16.vlgmr.msra.gmra.mrb[0].mxu1 %vm305_vm2, %v6783_v32 }
 0x1a2   : > { %4020 = vmatpush1.bf16.msra.mxu0 %v3926_v42  ;;  %v3900_v43 = vpop.permute.xlu1 %3899  ;;  %v3898_v44 = vpop.permute.xlu0 %3897  ;;  %4092 = vmatprep.mubr.bf16.mxu1 %v7373_v0 }
 0x1a3   : > { %v3908_v45 = vsel %vm3901_vm0, %v3896_v36, %v3898_v44  ;;  %v3909_v48 = vsel %vm3901_vm0, %v3898_v44, %v3900_v43 }
 0x1a4   : > { %v3932_v49 = vsel %vm309_vm1, %v3908_v45, 0  ;;  %5513 = vrot.lane.b32.xlu1 %v8042_v39, %s7396_s10  ;;  %5511 = vrot.lane.b32.xlu0 %v8025_v12, %s7396_s10 }
 0x1a5   : > { %6790 = vmatprep.subr.msk.bf16.mxu1 %vm309_vm1, %v3909_v48  ;;  %6789 = vmatmul.mubr.msk.bf16.vlgmr.msra.gmra.mrb[4].mxu0 %vm305_vm2, %v6783_v32 }
 0x1a6   : > { %4061 = vmatpush1.bf16.msra.mxu1 %v3932_v49  ;;  %v4114_v13 = vpop.permute.xlu1 %4113  ;;  %v4112_v50 = vpop.permute.xlu0 %4111  ;;  %4197 = vmatprep.mubr.bf16.mxu0 %v7373_v0 }
 0x1a7   : > { %v4130_v51 = vsel %vm4129_vm3, %v4112_v50, %v4114_v13 }
 0x1a8   : > { %5517 = vrot.lane.b32.xlu1 %v8057_v47, %s7396_s10  ;;  %5515 = vrot.lane.b32.xlu0 %v8040_v38, %s7396_s10  ;;  %v4142_v57 = vsel %vm309_vm1, %v4130_v51, 0 }
 0x1a9   : > { %6791 = vmatmul.mubr.msk.bf16.vlgmr.msra.gmra.mrb[4].mxu1 %vm305_vm2, %v6783_v32 }
 0x1aa   : > { %v4118_v52 = vpop.permute.xlu1 %4117  ;;  %v4116_v55 = vpop.permute.xlu0 %4115  ;;  %4238 = vmatprep.mubr.bf16.mxu1 %v7373_v0 }
 0x1ab   : > { %v4131_v56 = vsel %vm4129_vm3, %v4114_v13, %v4116_v55  ;;  %v4132_v58 = vsel %vm4129_vm3, %v4116_v55, %v4118_v52  ;;  %v6819_v13 = vld [vmem:[%s8653_s1 + $0x4c] sm:$0xf] }
 0x1ac   : > { %5521 = vrot.lane.b32.xlu1 %v8073_v54, %s7396_s10  ;;  %5519 = vrot.lane.b32.xlu0 %v8055_v46, %s7396_s10  ;;  %v4148_v63 = vsel %vm309_vm1, %v4132_v58, 0 }
 0x1ad   : > { %6793 = vmatprep.subr.msk.bf16.mxu0 %vm309_vm1, %v4131_v56 }
 0x1ae   : > { %4166 = vmatpush1.bf16.msra.mxu0 %v4142_v57  ;;  %v4122_v59 = vpop.permute.xlu1 %4121  ;;  %v4120_v60 = vpop.permute.xlu0 %4119 }
 0x1af   : > { %v4133_v62 = vsel %vm4129_vm3, %v4118_v52, %v4120_v60  ;;  %v4134_v1 = vsel %vm4129_vm3, %v4120_v60, %v4122_v59 }
 0x1b0   : > { %5735 = vrot.lane.b32.xlu1 %v8012_v8, %s7397_s13  ;;  %5523 = vrot.lane.b32.xlu0 %v8071_v53, %s7396_s10  ;;  %v4154_v14 = vsel %vm309_vm1, %v4134_v1, 0 }
 0x1b1   : > { %6795 = vmatprep.subr.msk.bf16.mxu1 %vm309_vm1, %v4133_v62  ;;  %6794 = vmatmul.mubr.msk.bf16.vlgmr.msra.gmra.mrb[0].mxu0 %vm305_vm2, %v6792_v61 }
 0x1b2   : > { %4207 = vmatpush1.bf16.msra.mxu1 %v4148_v63  ;;  %v4126_v2 = vpop.permute.xlu1 %4125  ;;  %v4124_v7 = vpop.permute.xlu0 %4123  ;;  %4279 = vmatprep.mubr.bf16.mxu0 %v7373_v0 }
 0x1b3   : > { %v4135_v10 = vsel %vm4129_vm3, %v4122_v59, %v4124_v7  ;;  %v4136_v15 = vsel %vm4129_vm3, %v4124_v7, %v4126_v2  ;;  %v6828_v7 = vld [vmem:[%s8653_s1 + $0x50] sm:$0xf] }
 0x1b4   : > { %5739 = vrot.lane.b32.xlu1 %v8025_v12, %s7397_s13  ;;  %5737 = vrot.lane.b32.xlu0 %v8027_v31, %s7397_s13  ;;  %v4160_v19 = vsel %vm309_vm1, %v4136_v15, 0 }
 0x1b5   : > { %6797 = vmatprep.subr.msk.bf16.mxu0 %vm309_vm1, %v4135_v10  ;;  %6796 = vmatmul.mubr.msk.bf16.vlgmr.msra.gmra.mrb[0].mxu1 %vm305_vm2, %v6792_v61 }
 0x1b6   : > { %4248 = vmatpush1.bf16.msra.mxu0 %v4154_v14  ;;  %v4368_v16 = vpop.permute.xlu1 %4367  ;;  %v4128_v17 = vpop.permute.xlu0 %4127  ;;  %4320 = vmatprep.mubr.bf16.mxu1 %v7373_v0 }
 0x1b7   : > { %v4137_v18 = vsel %vm4129_vm3, %v4126_v2, %v4128_v17 }
 0x1b8   : > { %5743 = vrot.lane.b32.xlu1 %v8040_v38, %s7397_s13  ;;  %5741 = vrot.lane.b32.xlu0 %v8042_v39, %s7397_s13 }
 0x1b9   : > { %6799 = vmatprep.subr.msk.bf16.mxu1 %vm309_vm1, %v4137_v18  ;;  %6798 = vmatmul.mubr.msk.bf16.vlgmr.msra.gmra.mrb[4].mxu0 %vm305_vm2, %v6792_v61 }
 0x1ba   : > { %4289 = vmatpush1.bf16.msra.mxu1 %v4160_v19  ;;  %v4372_v20 = vpop.permute.xlu1 %4371  ;;  %v4370_v21 = vpop.permute.xlu0 %4369  ;;  %4453 = vmatprep.mubr.bf16.mxu0 %v7373_v0 }
 0x1bb   : > { %v4386_v4 = vsel %vm4385_vm4, %v4368_v16, %v4370_v21  ;;  %v4387_v6 = vsel %vm4385_vm4, %v4370_v21, %v4372_v20 }
 0x1bc   : > { %v4398_v22 = vsel %vm309_vm1, %v4386_v4, 0  ;;  %5747 = vrot.lane.b32.xlu1 %v8055_v46, %s7397_s13  ;;  %5745 = vrot.lane.b32.xlu0 %v8057_v47, %s7397_s13 }
 0x1bd   : > { %6811 = vmatprep.subr.msk.bf16.mxu0 %vm309_vm1, %v4387_v6  ;;  %6800 = vmatmul.mubr.msk.bf16.vlgmr.msra.gmra.mrb[4].mxu1 %vm305_vm2, %v6792_v61 }
 0x1be   : > { %4422 = vmatpush1.bf16.msra.mxu0 %v4398_v22  ;;  %v4376_v3 = vpop.permute.xlu1 %4375  ;;  %v4374_v5 = vpop.permute.xlu0 %4373  ;;  %4494 = vmatprep.mubr.bf16.mxu1 %v7373_v0 }
 0x1bf   : > { %v4388_v24 = vsel %vm4385_vm4, %v4372_v20, %v4374_v5  ;;  %v4389_v25 = vsel %vm4385_vm4, %v4374_v5, %v4376_v3 }
 0x1c0   : > { %v4404_v9 = vsel %vm309_vm1, %v4388_v24, 0  ;;  %5751 = vrot.lane.b32.xlu1 %v8071_v53, %s7397_s13  ;;  %5749 = vrot.lane.b32.xlu0 %v8073_v54, %s7397_s13  ;;  %s6893_s13 = sshll.u32 %s8659_s19, 6 }
 0x1c1   : > { %6813 = vmatprep.subr.msk.bf16.mxu1 %vm309_vm1, %v4389_v25  ;;  %6812 = vmatmul.mubr.msk.bf16.vlgmr.msra.gmra.mrb[0].mxu0 %vm305_vm2, %v6801_v23 }
 0x1c2   : > { %4463 = vmatpush1.bf16.msra.mxu1 %v4404_v9  ;;  %v4380_v26 = vpop.permute.xlu1 %4379  ;;  %v4378_v27 = vpop.permute.xlu0 %4377  ;;  %4535 = vmatprep.mubr.bf16.mxu0 %v7373_v0  ;;  %v6837_v9 = vld [vmem:[%s8653_s1 + $0x54] sm:$0xf] }
 0x1c3   : > { %v4390_v28 = vsel %vm4385_vm4, %v4376_v3, %v4378_v27  ;;  %v4391_v29 = vsel %vm4385_vm4, %v4378_v27, %v4380_v26 }
 0x1c4   : > { %v4410_v11 = vsel %vm309_vm1, %v4390_v28, 0  ;;  %5965 = vrot.lane.b32.xlu1 %v8027_v31, %s7398_s16  ;;  %5963 = vrot.lane.b32.xlu0 %v8012_v8, %s7398_s16 }
 0x1c5   : > { %6815 = vmatprep.subr.msk.bf16.mxu0 %vm309_vm1, %v4391_v29  ;;  %6814 = vmatmul.mubr.msk.bf16.vlgmr.msra.gmra.mrb[0].mxu1 %vm305_vm2, %v6801_v23 }
 0x1c6   : > { %4504 = vmatpush1.bf16.msra.mxu0 %v4410_v11  ;;  %v4384_v30 = vpop.permute.xlu1 %4383  ;;  %v4382_v32 = vpop.permute.xlu0 %4381  ;;  %4576 = vmatprep.mubr.bf16.mxu1 %v7373_v0 }
 0x1c7   : > { %v4392_v33 = vsel %vm4385_vm4, %v4380_v26, %v4382_v32  ;;  %v4393_v34 = vsel %vm4385_vm4, %v4382_v32, %v4384_v30 }
 0x1c8   : > { %v4416_v35 = vsel %vm309_vm1, %v4392_v33, 0  ;;  %5969 = vrot.lane.b32.xlu1 %v8042_v39, %s7398_s16  ;;  %5967 = vrot.lane.b32.xlu0 %v8025_v12, %s7398_s16 }
 0x1c9   : > { %6817 = vmatprep.subr.msk.bf16.mxu1 %vm309_vm1, %v4393_v34  ;;  %6816 = vmatmul.mubr.msk.bf16.vlgmr.msra.gmra.mrb[4].mxu0 %vm305_vm2, %v6801_v23 }
 0x1ca   : > { %4545 = vmatpush1.bf16.msra.mxu1 %v4416_v35  ;;  %v4598_v36 = vpop.permute.xlu1 %4597  ;;  %v4596_v37 = vpop.permute.xlu0 %4595  ;;  %4681 = vmatprep.mubr.bf16.mxu0 %v7373_v0 }
 0x1cb   : > { %v4614_v40 = vsel %vm4613_vm5, %v4596_v37, %v4598_v36 }
 0x1cc   : > { %5973 = vrot.lane.b32.xlu1 %v8057_v47, %s7398_s16  ;;  %5971 = vrot.lane.b32.xlu0 %v8040_v38, %s7398_s16  ;;  %v4626_v44 = vsel %vm309_vm1, %v4614_v40, 0 }
 0x1cd   : > { %6818 = vmatmul.mubr.msk.bf16.vlgmr.msra.gmra.mrb[4].mxu1 %vm305_vm2, %v6801_v23 }
 0x1ce   : > { %v4602_v41 = vpop.permute.xlu1 %4601  ;;  %v4600_v42 = vpop.permute.xlu0 %4599  ;;  %4722 = vmatprep.mubr.bf16.mxu1 %v7373_v0 }
 0x1cf   : > { %v4615_v43 = vsel %vm4613_vm5, %v4598_v36, %v4600_v42  ;;  %v4616_v45 = vsel %vm4613_vm5, %v4600_v42, %v4602_v41 }
 0x1d0   : > { %5977 = vrot.lane.b32.xlu1 %v8073_v54, %s7398_s16  ;;  %5975 = vrot.lane.b32.xlu0 %v8055_v46, %s7398_s16  ;;  %v4632_v51 = vsel %vm309_vm1, %v4616_v45, 0 }
 0x1d1   : > { %6820 = vmatprep.subr.msk.bf16.mxu0 %vm309_vm1, %v4615_v43 }
 0x1d2   : > { %4650 = vmatpush1.bf16.msra.mxu0 %v4626_v44  ;;  %v4606_v48 = vpop.permute.xlu1 %4605  ;;  %v4604_v49 = vpop.permute.xlu0 %4603 }
 0x1d3   : > { %v4617_v50 = vsel %vm4613_vm5, %v4602_v41, %v4604_v49  ;;  %v4618_v52 = vsel %vm4613_vm5, %v4604_v49, %v4606_v48  ;;  %v6846_v49 = vld [vmem:[%s8653_s1 + $0x58] sm:$0xf] }
 0x1d4   : > { %6191 = vrot.lane.b32.xlu1 %v8012_v8, %s7399_s21  ;;  %5979 = vrot.lane.b32.xlu0 %v8071_v53, %s7398_s16  ;;  %v4638_v8 = vsel %vm309_vm1, %v4618_v52, 0  ;;  %s8632_s16 = scalar_lea.vmem %s8655_s3, %s6893_s13 }
 0x1d5   : > { %6822 = vmatprep.subr.msk.bf16.mxu1 %vm309_vm1, %v4617_v50  ;;  %6821 = vmatmul.mubr.msk.bf16.vlgmr.msra.gmra.mrb[0].mxu0 %vm305_vm2, %v6819_v13 }
 0x1d6   : > { %4691 = vmatpush1.bf16.msra.mxu1 %v4632_v51  ;;  %v4610_v55 = vpop.permute.xlu1 %4609  ;;  %v4608_v56 = vpop.permute.xlu0 %4607  ;;  %4763 = vmatprep.mubr.bf16.mxu0 %v7373_v0 }
 0x1d7   : > { %v4619_v57 = vsel %vm4613_vm5, %v4606_v48, %v4608_v56  ;;  %v4620_v58 = vsel %vm4613_vm5, %v4608_v56, %v4610_v55 }
 0x1d8   : > { %6195 = vrot.lane.b32.xlu1 %v8025_v12, %s7399_s21  ;;  %6193 = vrot.lane.b32.xlu0 %v8027_v31, %s7399_s21  ;;  %v4644_v12 = vsel %vm309_vm1, %v4620_v58, 0 }
 0x1d9   : > { %6824 = vmatprep.subr.msk.bf16.mxu0 %vm309_vm1, %v4619_v57  ;;  %6823 = vmatmul.mubr.msk.bf16.vlgmr.msra.gmra.mrb[0].mxu1 %vm305_vm2, %v6819_v13 }
 0x1da   : > { %4732 = vmatpush1.bf16.msra.mxu0 %v4638_v8  ;;  %v4824_v59 = vpop.permute.xlu1 %4823  ;;  %v4612_v60 = vpop.permute.xlu0 %4611  ;;  %4804 = vmatprep.mubr.bf16.mxu1 %v7373_v0 }
 0x1db   : > { %v4621_v61 = vsel %vm4613_vm5, %v4610_v55, %v4612_v60 }
 0x1dc   : > { %6199 = vrot.lane.b32.xlu1 %v8040_v38, %s7399_s21  ;;  %6197 = vrot.lane.b32.xlu0 %v8042_v39, %s7399_s21 }
 0x1dd   : > { %6826 = vmatprep.subr.msk.bf16.mxu1 %vm309_vm1, %v4621_v61  ;;  %6825 = vmatmul.mubr.msk.bf16.vlgmr.msra.gmra.mrb[4].mxu0 %vm305_vm2, %v6819_v13 }
 0x1de   : > { %4773 = vmatpush1.bf16.msra.mxu1 %v4644_v12  ;;  %v4828_v31 = vpop.permute.xlu1 %4827  ;;  %v4826_v62 = vpop.permute.xlu0 %4825  ;;  %4909 = vmatprep.mubr.bf16.mxu0 %v7373_v0 }
 0x1df   : > { %v4842_v63 = vsel %vm4841_vm6, %v4824_v59, %v4826_v62  ;;  %v4843_v1 = vsel %vm4841_vm6, %v4826_v62, %v4828_v31 }
 0x1e0   : > { %v4854_v38 = vsel %vm309_vm1, %v4842_v63, 0  ;;  %6203 = vrot.lane.b32.xlu1 %v8055_v46, %s7399_s21  ;;  %6201 = vrot.lane.b32.xlu0 %v8057_v47, %s7399_s21 }
 0x1e1   : > { %6829 = vmatprep.subr.msk.bf16.mxu0 %vm309_vm1, %v4843_v1  ;;  %6827 = vmatmul.mubr.msk.bf16.vlgmr.msra.gmra.mrb[4].mxu1 %vm305_vm2, %v6819_v13 }
 0x1e2   : > { %4878 = vmatpush1.bf16.msra.mxu0 %v4854_v38  ;;  %v4832_v39 = vpop.permute.xlu1 %4831  ;;  %v4830_v2 = vpop.permute.xlu0 %4829  ;;  %4950 = vmatprep.mubr.bf16.mxu1 %v7373_v0 }
 0x1e3   : > { %v4844_v10 = vsel %vm4841_vm6, %v4828_v31, %v4830_v2  ;;  %v4845_v46 = vsel %vm4841_vm6, %v4830_v2, %v4832_v39 }
 0x1e4   : > { %v4860_v14 = vsel %vm309_vm1, %v4844_v10, 0  ;;  %6207 = vrot.lane.b32.xlu1 %v8071_v53, %s7399_s21  ;;  %6205 = vrot.lane.b32.xlu0 %v8073_v54, %s7399_s21 }
 0x1e5   : > { %6831 = vmatprep.subr.msk.bf16.mxu1 %vm309_vm1, %v4845_v46  ;;  %6830 = vmatmul.mubr.msk.bf16.vlgmr.msra.gmra.mrb[0].mxu0 %vm305_vm2, %v6828_v7 }
 0x1e6   : > { %4919 = vmatpush1.bf16.msra.mxu1 %v4860_v14  ;;  %v4836_v47 = vpop.permute.xlu1 %4835  ;;  %v4834_v15 = vpop.permute.xlu0 %4833  ;;  %4991 = vmatprep.mubr.bf16.mxu0 %v7373_v0  ;;  %v6855_v14 = vld [vmem:[%s8653_s1 + $0x5c] sm:$0xf] }
 0x1e7   : > { %v4846_v16 = vsel %vm4841_vm6, %v4832_v39, %v4834_v15  ;;  %v4847_v17 = vsel %vm4841_vm6, %v4834_v15, %v4836_v47 }
 0x1e8   : > { %v4866_v18 = vsel %vm309_vm1, %v4846_v16, 0  ;;  %6833 = vmatprep.subr.msk.bf16.mxu0 %vm309_vm1, %v4847_v17 }
 0x1e9   : > { %4960 = vmatpush1.bf16.msra.mxu0 %v4866_v18  ;;  %6832 = vmatmul.mubr.msk.bf16.vlgmr.msra.gmra.mrb[0].mxu1 %vm305_vm2, %v6828_v7 }
 0x1ea   : > { %v4840_v53 = vpop.permute.xlu1 %4839  ;;  %v4838_v54 = vpop.permute.xlu0 %4837  ;;  %5032 = vmatprep.mubr.bf16.mxu1 %v7373_v0 }
 0x1eb   : > { %v4848_v19 = vsel %vm4841_vm6, %v4836_v47, %v4838_v54  ;;  %v4849_v20 = vsel %vm4841_vm6, %v4838_v54, %v4840_v53 }
 0x1ec   : > { %v4872_v21 = vsel %vm309_vm1, %v4848_v19, 0  ;;  %6835 = vmatprep.subr.msk.bf16.mxu1 %vm309_vm1, %v4849_v20 }
 0x1ed   : > { %5001 = vmatpush1.bf16.msra.mxu1 %v4872_v21  ;;  %6834 = vmatmul.mubr.msk.bf16.vlgmr.msra.gmra.mrb[4].mxu0 %vm305_vm2, %v6828_v7 }
 0x1ee   : > { %v5054_v4 = vpop.permute.xlu1 %5053  ;;  %v5052_v6 = vpop.permute.xlu0 %5051  ;;  %5137 = vmatprep.mubr.bf16.mxu0 %v7373_v0 }
 0x1ef   : > { %v5070_v22 = vsel %vm5069_vm7, %v5052_v6, %v5054_v4 }
 0x1f0   : > { %v5082_v24 = vsel %vm309_vm1, %v5070_v22, 0 }
 0x1f1   : > { %6836 = vmatmul.mubr.msk.bf16.vlgmr.msra.gmra.mrb[4].mxu1 %vm305_vm2, %v6828_v7 }
 0x1f2   : > { %v5058_v3 = vpop.permute.xlu1 %5057  ;;  %v5056_v5 = vpop.permute.xlu0 %5055  ;;  %5178 = vmatprep.mubr.bf16.mxu1 %v7373_v0 }
 0x1f3   : > { %v5071_v23 = vsel %vm5069_vm7, %v5054_v4, %v5056_v5  ;;  %v5072_v25 = vsel %vm5069_vm7, %v5056_v5, %v5058_v3 }
 0x1f4   : > { %6838 = vmatprep.subr.msk.bf16.mxu0 %vm309_vm1, %v5071_v23  ;;  %v5088_v29 = vsel %vm309_vm1, %v5072_v25, 0 }
 0x1f5   : > { %5106 = vmatpush1.bf16.msra.mxu0 %v5082_v24 }
 0x1f6   : > { %v5062_v26 = vpop.permute.xlu1 %5061  ;;  %v5060_v27 = vpop.permute.xlu0 %5059 }
 0x1f7   : > { %v5073_v28 = vsel %vm5069_vm7, %v5058_v3, %v5060_v27  ;;  %v5074_v11 = vsel %vm5069_vm7, %v5060_v27, %v5062_v26 }
 0x1f8   : > { %6840 = vmatprep.subr.msk.bf16.mxu1 %vm309_vm1, %v5073_v28  ;;  %6839 = vmatmul.mubr.msk.bf16.vlgmr.msra.gmra.mrb[0].mxu0 %vm305_vm2, %v6837_v9  ;;  %v5094_v34 = vsel %vm309_vm1, %v5074_v11, 0 }
 0x1f9   : > { %5147 = vmatpush1.bf16.msra.mxu1 %v5088_v29  ;;  %5219 = vmatprep.mubr.bf16.mxu0 %v7373_v0 }
 0x1fa   : > { %v5066_v30 = vpop.permute.xlu1 %5065  ;;  %v5064_v32 = vpop.permute.xlu0 %5063 }
 0x1fb   : > { %v5075_v33 = vsel %vm5069_vm7, %v5062_v26, %v5064_v32  ;;  %v5076_v35 = vsel %vm5069_vm7, %v5064_v32, %v5066_v30  ;;  %v6864_v26 = vld [vmem:[%s8653_s1 + $0x60] sm:$0xf] }
 0x1fc   : > { %6842 = vmatprep.subr.msk.bf16.mxu0 %vm309_vm1, %v5075_v33  ;;  %6841 = vmatmul.mubr.msk.bf16.vlgmr.msra.gmra.mrb[0].mxu1 %vm305_vm2, %v6837_v9  ;;  %v5100_v41 = vsel %vm309_vm1, %v5076_v35, 0 }
 0x1fd   : > { %5188 = vmatpush1.bf16.msra.mxu0 %v5094_v34  ;;  %5260 = vmatprep.mubr.bf16.mxu1 %v7373_v0 }
 0x1fe   : > { %v5280_v36 = vpop.permute.xlu1 %5279  ;;  %v5068_v37 = vpop.permute.xlu0 %5067 }
 0x1ff   : > { %v5077_v40 = vsel %vm5069_vm7, %v5066_v30, %v5068_v37 }
 0x200   : > { %6844 = vmatprep.subr.msk.bf16.mxu1 %vm309_vm1, %v5077_v40  ;;  %6843 = vmatmul.mubr.msk.bf16.vlgmr.msra.gmra.mrb[4].mxu0 %vm305_vm2, %v6837_v9 }
 0x201   : > { %5229 = vmatpush1.bf16.msra.mxu1 %v5100_v41  ;;  %5365 = vmatprep.mubr.bf16.mxu0 %v7373_v0 }
 0x202   : > { %v5284_v42 = vpop.permute.xlu1 %5283  ;;  %v5282_v43 = vpop.permute.xlu0 %5281 }
 0x203   : > { %v5298_v44 = vsel %vm5297_vm8, %v5280_v36, %v5282_v43  ;;  %v5299_v45 = vsel %vm5297_vm8, %v5282_v43, %v5284_v42 }
 0x204   : > { %v5310_v48 = vsel %vm309_vm1, %v5298_v44, 0  ;;  %6847 = vmatprep.subr.msk.bf16.mxu0 %vm309_vm1, %v5299_v45  ;;  %6845 = vmatmul.mubr.msk.bf16.vlgmr.msra.gmra.mrb[4].mxu1 %vm305_vm2, %v6837_v9 }
 0x205   : > { %5334 = vmatpush1.bf16.msra.mxu0 %v5310_v48  ;;  %5406 = vmatprep.mubr.bf16.mxu1 %v7373_v0 }
 0x206   : > { %v5288_v13 = vpop.permute.xlu1 %5287  ;;  %v5286_v50 = vpop.permute.xlu0 %5285 }
 0x207   : > { %v5300_v51 = vsel %vm5297_vm8, %v5284_v42, %v5286_v50  ;;  %v5301_v52 = vsel %vm5297_vm8, %v5286_v50, %v5288_v13 }
 0x208   : > { %v5316_v55 = vsel %vm309_vm1, %v5300_v51, 0  ;;  %6849 = vmatprep.subr.msk.bf16.mxu1 %vm309_vm1, %v5301_v52  ;;  %6848 = vmatmul.mubr.msk.bf16.vlgmr.msra.gmra.mrb[0].mxu0 %vm305_vm2, %v6846_v49 }
 0x209   : > { %5375 = vmatpush1.bf16.msra.mxu1 %v5316_v55  ;;  %5447 = vmatprep.mubr.bf16.mxu0 %v7373_v0  ;;  %v6873_v55 = vld [vmem:[%s8653_s1 + $0x64] sm:$0xf] }
 0x20a   : > { %v5292_v56 = vpop.permute.xlu1 %5291  ;;  %v5290_v57 = vpop.permute.xlu0 %5289 }
 0x20b   : > { %v5302_v8 = vsel %vm5297_vm8, %v5288_v13, %v5290_v57  ;;  %v5303_v58 = vsel %vm5297_vm8, %v5290_v57, %v5292_v56 }
 0x20c   : > { %v5322_v59 = vsel %vm309_vm1, %v5302_v8, 0  ;;  %6851 = vmatprep.subr.msk.bf16.mxu0 %vm309_vm1, %v5303_v58  ;;  %6850 = vmatmul.mubr.msk.bf16.vlgmr.msra.gmra.mrb[0].mxu1 %vm305_vm2, %v6846_v49 }
 0x20d   : > { %5416 = vmatpush1.bf16.msra.mxu0 %v5322_v59  ;;  %5488 = vmatprep.mubr.bf16.mxu1 %v7373_v0 }
 0x20e   : > { %v5296_v60 = vpop.permute.xlu1 %5295  ;;  %v5294_v61 = vpop.permute.xlu0 %5293 }
 0x20f   : > { %v5304_v12 = vsel %vm5297_vm8, %v5292_v56, %v5294_v61  ;;  %v5305_v31 = vsel %vm5297_vm8, %v5294_v61, %v5296_v60 }
 0x210   : > { %v5328_v62 = vsel %vm309_vm1, %v5304_v12, 0  ;;  %6853 = vmatprep.subr.msk.bf16.mxu1 %vm309_vm1, %v5305_v31  ;;  %6852 = vmatmul.mubr.msk.bf16.vlgmr.msra.gmra.mrb[4].mxu0 %vm305_vm2, %v6846_v49 }
 0x211   : > { %5457 = vmatpush1.bf16.msra.mxu1 %v5328_v62  ;;  %5593 = vmatprep.mubr.bf16.mxu0 %v7373_v0 }
 0x212   : > { %v5510_v63 = vpop.permute.xlu1 %5509  ;;  %v5508_v1 = vpop.permute.xlu0 %5507 }
 0x213   : > { %v5526_v38 = vsel %vm5525_vm9, %v5508_v1, %v5510_v63 }
 0x214   : > { %6854 = vmatmul.mubr.msk.bf16.vlgmr.msra.gmra.mrb[4].mxu1 %vm305_vm2, %v6846_v49  ;;  %v5538_v10 = vsel %vm309_vm1, %v5526_v38, 0 }
 0x215   : > { %5634 = vmatprep.mubr.bf16.mxu1 %v7373_v0 }
 0x216   : > { %v5514_v39 = vpop.permute.xlu1 %5513  ;;  %v5512_v2 = vpop.permute.xlu0 %5511 }
 0x217   : > { %v5527_v7 = vsel %vm5525_vm9, %v5510_v63, %v5512_v2  ;;  %v5528_v46 = vsel %vm5525_vm9, %v5512_v2, %v5514_v39 }
 0x218   : > { %6856 = vmatprep.subr.msk.bf16.mxu0 %vm309_vm1, %v5527_v7  ;;  %v5544_v17 = vsel %vm309_vm1, %v5528_v46, 0 }
 0x219   : > { %5562 = vmatpush1.bf16.msra.mxu0 %v5538_v10 }
 0x21a   : > { %v5518_v47 = vpop.permute.xlu1 %5517  ;;  %v5516_v15 = vpop.permute.xlu0 %5515 }
 0x21b   : > { %v5529_v16 = vsel %vm5525_vm9, %v5514_v39, %v5516_v15  ;;  %v5530_v18 = vsel %vm5525_vm9, %v5516_v15, %v5518_v47 }
 0x21c   : > { %6858 = vmatprep.subr.msk.bf16.mxu1 %vm309_vm1, %v5529_v16  ;;  %6857 = vmatmul.mubr.msk.bf16.vlgmr.msra.gmra.mrb[0].mxu0 %vm305_vm2, %v6855_v14  ;;  %v5550_v20 = vsel %vm309_vm1, %v5530_v18, 0 }
 0x21d   : > { %5603 = vmatpush1.bf16.msra.mxu1 %v5544_v17  ;;  %5675 = vmatprep.mubr.bf16.mxu0 %v7373_v0 }
 0x21e   : > { %v5522_v53 = vpop.permute.xlu1 %5521  ;;  %v5520_v54 = vpop.permute.xlu0 %5519 }
 0x21f   : > { %v5531_v19 = vsel %vm5525_vm9, %v5518_v47, %v5520_v54  ;;  %v5532_v21 = vsel %vm5525_vm9, %v5520_v54, %v5522_v53  ;;  %v6882_v47 = vld [vmem:[%s8653_s1 + $0x68] sm:$0xf] }
 0x220   : > { %6860 = vmatprep.subr.msk.bf16.mxu0 %vm309_vm1, %v5531_v19  ;;  %6859 = vmatmul.mubr.msk.bf16.vlgmr.msra.gmra.mrb[0].mxu1 %vm305_vm2, %v6855_v14  ;;  %v5556_v3 = vsel %vm309_vm1, %v5532_v21, 0 }
 0x221   : > { %5644 = vmatpush1.bf16.msra.mxu0 %v5550_v20  ;;  %5716 = vmatprep.mubr.bf16.mxu1 %v7373_v0 }
 0x222   : > { %v5736_v4 = vpop.permute.xlu1 %5735  ;;  %v5524_v6 = vpop.permute.xlu0 %5523 }
 0x223   : > { %v5533_v22 = vsel %vm5525_vm9, %v5522_v53, %v5524_v6 }
 0x224   : > { %6862 = vmatprep.subr.msk.bf16.mxu1 %vm309_vm1, %v5533_v22  ;;  %6861 = vmatmul.mubr.msk.bf16.vlgmr.msra.gmra.mrb[4].mxu0 %vm305_vm2, %v6855_v14 }
 0x225   : > { %5685 = vmatpush1.bf16.msra.mxu1 %v5556_v3  ;;  %5821 = vmatprep.mubr.bf16.mxu0 %v7373_v0 }
 0x226   : > { %v5740_v5 = vpop.permute.xlu1 %5739  ;;  %v5738_v23 = vpop.permute.xlu0 %5737 }
 0x227   : > { %v5754_v24 = vsel %vm5753_vm10, %v5736_v4, %v5738_v23  ;;  %v5755_v25 = vsel %vm5753_vm10, %v5738_v23, %v5740_v5 }
 0x228   : > { %v5766_v9 = vsel %vm309_vm1, %v5754_v24, 0  ;;  %6865 = vmatprep.subr.msk.bf16.mxu0 %vm309_vm1, %v5755_v25  ;;  %6863 = vmatmul.mubr.msk.bf16.vlgmr.msra.gmra.mrb[4].mxu1 %vm305_vm2, %v6855_v14  ;;  %v6427_v24 = vlaneseq }
 0x229   : > { %5790 = vmatpush1.bf16.msra.mxu0 %v5766_v9  ;;  %5862 = vmatprep.mubr.bf16.mxu1 %v7373_v0 }
 0x22a   : > { %v5744_v27 = vpop.permute.xlu1 %5743  ;;  %v5742_v28 = vpop.permute.xlu0 %5741  ;;  %v6428_v25 = vshrl.u32 %v6427_v24, 7 }
 0x22b   : > { %v5756_v29 = vsel %vm5753_vm10, %v5740_v5, %v5742_v28  ;;  %v5757_v11 = vsel %vm5753_vm10, %v5742_v28, %v5744_v27 }
 0x22c   : > { %v5772_v30 = vsel %vm309_vm1, %v5756_v29, 0  ;;  %6867 = vmatprep.subr.msk.bf16.mxu1 %vm309_vm1, %v5757_v11  ;;  %6866 = vmatmul.mubr.msk.bf16.vlgmr.msra.gmra.mrb[0].mxu0 %vm305_vm2, %v6864_v26  ;;  %v6429_v9 = vsub.s32 0, %v6428_v25  ;;  %v6437_v28 = vsub.s32 2, %v6428_v25  ;;  %v6441_v11 = vsub.s32 3, %v6428_v25 }
 0x22d   : > { %5831 = vmatpush1.bf16.msra.mxu1 %v5772_v30  ;;  %5903 = vmatprep.mubr.bf16.mxu0 %v7373_v0 }
 0x22e   : > { %v5748_v32 = vpop.permute.xlu1 %5747  ;;  %v5746_v33 = vpop.permute.xlu0 %5745 }
 0x22f   : > { %v5758_v34 = vsel %vm5753_vm10, %v5744_v27, %v5746_v33  ;;  %v5759_v35 = vsel %vm5753_vm10, %v5746_v33, %v5748_v32 }
 0x230   : > { %v5778_v36 = vsel %vm309_vm1, %v5758_v34, 0  ;;  %6869 = vmatprep.subr.msk.bf16.mxu0 %vm309_vm1, %v5759_v35  ;;  %6868 = vmatmul.mubr.msk.bf16.vlgmr.msra.gmra.mrb[0].mxu1 %vm305_vm2, %v6864_v26  ;;  %v6445_v35 = vsub.s32 4, %v6428_v25 }
 0x231   : > { %5872 = vmatpush1.bf16.msra.mxu0 %v5778_v36  ;;  %5944 = vmatprep.mubr.bf16.mxu1 %v7373_v0 }
 0x232   : > { %v5752_v37 = vpop.permute.xlu1 %5751  ;;  %v5750_v40 = vpop.permute.xlu0 %5749 }
 0x233   : > { %v5760_v41 = vsel %vm5753_vm10, %v5748_v32, %v5750_v40  ;;  %v5761_v42 = vsel %vm5753_vm10, %v5750_v40, %v5752_v37 }
 0x234   : > { %v5784_v43 = vsel %vm309_vm1, %v5760_v41, 0  ;;  %6871 = vmatprep.subr.msk.bf16.mxu1 %vm309_vm1, %v5761_v42  ;;  %6870 = vmatmul.mubr.msk.bf16.vlgmr.msra.gmra.mrb[4].mxu0 %vm305_vm2, %v6864_v26  ;;  %v6449_v41 = vsub.s32 5, %v6428_v25 }
 0x235   : > { %5913 = vmatpush1.bf16.msra.mxu1 %v5784_v43  ;;  %6049 = vmatprep.mubr.bf16.mxu0 %v7373_v0 }
 0x236   : > { %v5966_v44 = vpop.permute.xlu1 %5965  ;;  %v5964_v45 = vpop.permute.xlu0 %5963 }
 0x237   : > { %v5982_v48 = vsel %vm5981_vm11, %v5964_v45, %v5966_v44 }
 0x238   : > { %6872 = vmatmul.mubr.msk.bf16.vlgmr.msra.gmra.mrb[4].mxu1 %vm305_vm2, %v6864_v26  ;;  %v5994_v51 = vsel %vm309_vm1, %v5982_v48, 0  ;;  %v6433_v26 = vsub.s32 1, %v6428_v25 }
 0x239   : > { %6090 = vmatprep.mubr.bf16.mxu1 %v7373_v0 }
 0x23a   : > { %v5970_v49 = vpop.permute.xlu1 %5969  ;;  %v5968_v13 = vpop.permute.xlu0 %5967 }
 0x23b   : > { %v5983_v50 = vsel %vm5981_vm11, %v5966_v44, %v5968_v13  ;;  %v5984_v52 = vsel %vm5981_vm11, %v5968_v13, %v5970_v49 }
 0x23c   : > { %6874 = vmatprep.subr.msk.bf16.mxu0 %vm309_vm1, %v5983_v50  ;;  %v6000_v58 = vsel %vm309_vm1, %v5984_v52, 0 }
 0x23d   : > { %6018 = vmatpush1.bf16.msra.mxu0 %v5994_v51  ;;  %v6453_v51 = vsub.s32 6, %v6428_v25 }
 0x23e   : > { %v5974_v56 = vpop.permute.xlu1 %5973  ;;  %v5972_v57 = vpop.permute.xlu0 %5971 }
 0x23f   : > { %v5985_v8 = vsel %vm5981_vm11, %v5970_v49, %v5972_v57  ;;  %v5986_v59 = vsel %vm5981_vm11, %v5972_v57, %v5974_v56 }
 0x240   : > { %6875 = vmatmul.mubr.msk.bf16.vlgmr.msra.gmra.mrb[0].mxu0 %vm305_vm2, %v6873_v55  ;;  %6876 = vmatprep.subr.msk.bf16.mxu1 %vm309_vm1, %v5985_v8  ;;  %v6006_v31 = vsel %vm309_vm1, %v5986_v59, 0  ;;  %v6457_v8 = vsub.s32 7, %v6428_v25 }
 0x241   : > { %6059 = vmatpush1.bf16.msra.mxu1 %v6000_v58  ;;  %6131 = vmatprep.mubr.bf16.mxu0 %v7373_v0 }
 0x242   : > { %v5978_v60 = vpop.permute.xlu1 %5977  ;;  %v5976_v61 = vpop.permute.xlu0 %5975 }
 0x243   : > { %v5987_v12 = vsel %vm5981_vm11, %v5974_v56, %v5976_v61  ;;  %v5988_v62 = vsel %vm5981_vm11, %v5976_v61, %v5978_v60 }
 0x244   : > { %6877 = vmatmul.mubr.msk.bf16.vlgmr.msra.gmra.mrb[0].mxu1 %vm305_vm2, %v6873_v55  ;;  %6878 = vmatprep.subr.msk.bf16.mxu0 %vm309_vm1, %v5987_v12  ;;  %v6012_v39 = vsel %vm309_vm1, %v5988_v62, 0 }
 0x245   : > { %6100 = vmatpush1.bf16.msra.mxu0 %v6006_v31  ;;  %6172 = vmatprep.mubr.bf16.mxu1 %v7373_v0 }
 0x246   : > { %v6192_v63 = vpop.permute.xlu1 %6191  ;;  %v5980_v1 = vpop.permute.xlu0 %5979 }
 0x247   : > { %v5989_v38 = vsel %vm5981_vm11, %v5978_v60, %v5980_v1 }
 0x248   : > { %6879 = vmatmul.mubr.msk.bf16.vlgmr.msra.gmra.mrb[4].mxu0 %vm305_vm2, %v6873_v55  ;;  %6880 = vmatprep.subr.msk.bf16.mxu1 %vm309_vm1, %v5989_v38 }
 0x249   : > { %6141 = vmatpush1.bf16.msra.mxu1 %v6012_v39  ;;  %6277 = vmatprep.mubr.bf16.mxu0 %v7373_v0 }
 0x24a   : > { %v6196_v2 = vpop.permute.xlu1 %6195  ;;  %v6194_v7 = vpop.permute.xlu0 %6193 }
 0x24b   : > { %v6210_v10 = vsel %vm6209_vm12, %v6192_v63, %v6194_v7  ;;  %v6211_v46 = vsel %vm6209_vm12, %v6194_v7, %v6196_v2 }
 0x24c   : > { %v6222_v14 = vsel %vm309_vm1, %v6210_v10, 0  ;;  %6881 = vmatmul.mubr.msk.bf16.vlgmr.msra.gmra.mrb[4].mxu1 %vm305_vm2, %v6873_v55  ;;  %6883 = vmatprep.subr.msk.bf16.mxu0 %vm309_vm1, %v6211_v46 }
 0x24d   : > { %6246 = vmatpush1.bf16.msra.mxu0 %v6222_v14  ;;  %6318 = vmatprep.mubr.bf16.mxu1 %v7373_v0 }
 0x24e   : > { %v6200_v15 = vpop.permute.xlu1 %6199  ;;  %v6198_v16 = vpop.permute.xlu0 %6197 }
 0x24f   : > { %v6212_v17 = vsel %vm6209_vm12, %v6196_v2, %v6198_v16  ;;  %v6213_v18 = vsel %vm6209_vm12, %v6198_v16, %v6200_v15 }
 0x250   : > { %v6228_v53 = vsel %vm309_vm1, %v6212_v17, 0  ;;  %6884 = vmatmul.mubr.msk.bf16.vlgmr.msra.gmra.mrb[0].mxu0 %vm305_vm2, %v6882_v47  ;;  %6885 = vmatprep.subr.msk.bf16.mxu1 %vm309_vm1, %v6213_v18 }
 0x251   : > { %6287 = vmatpush1.bf16.msra.mxu1 %v6228_v53  ;;  %6359 = vmatprep.mubr.bf16.mxu0 %v7373_v0 }
 0x252   : > { %v6204_v54 = vpop.permute.xlu1 %6203  ;;  %v6202_v19 = vpop.permute.xlu0 %6201 }
 0x253   : > { %v6214_v20 = vsel %vm6209_vm12, %v6200_v15, %v6202_v19  ;;  %v6215_v21 = vsel %vm6209_vm12, %v6202_v19, %v6204_v54 }
 0x254   : > { %v6234_v4 = vsel %vm309_vm1, %v6214_v20, 0  ;;  %6886 = vmatmul.mubr.msk.bf16.vlgmr.msra.gmra.mrb[0].mxu1 %vm305_vm2, %v6882_v47  ;;  %6887 = vmatprep.subr.msk.bf16.mxu0 %vm309_vm1, %v6215_v21 }
 0x255   : > { %6328 = vmatpush1.bf16.msra.mxu0 %v6234_v4  ;;  %6400 = vmatprep.mubr.bf16.mxu1 %v7373_v0  ;;  %v6425_v0 = vld [vmem:[%s8654_s2] sm:$0xff] }
 0x256   : > { %v6208_v6 = vpop.permute.xlu1 %6207  ;;  %v6206_v22 = vpop.permute.xlu0 %6205  ;;  %v6430_v27 = vrot.slane %v6425_v0, %v6429_v9  ;;  %v6434_v29 = vrot.slane %v6425_v0, %v6433_v26  ;;  %v6438_v34 = vrot.slane %v6425_v0, %v6437_v28  ;;  %v6442_v40 = vrot.slane %v6425_v0, %v6441_v11 }
 0x257   : > { %v6216_v3 = vsel %vm6209_vm12, %v6204_v54, %v6206_v22  ;;  %v6217_v5 = vsel %vm6209_vm12, %v6206_v22, %v6208_v6  ;;  %v6446_v50 = vrot.slane %v6425_v0, %v6445_v35  ;;  %v6450_v57 = vrot.slane %v6425_v0, %v6449_v41 }
 0x258   : > { %v6240_v23 = vsel %vm309_vm1, %v6216_v3, 0  ;;  %6888 = vmatmul.mubr.msk.bf16.vlgmr.msra.gmra.mrb[4].mxu0 %vm305_vm2, %v6882_v47  ;;  %6889 = vmatprep.subr.msk.bf16.mxu1 %vm309_vm1, %v6217_v5  ;;  %v6454_v38 = vrot.slane %v6425_v0, %v6453_v51  ;;  %v6458_v7 = vrot.slane %v6425_v0, %v6457_v8  ;;  %vm6484_vm1 = vcmask 7168  }
 0x259   : > { %6369 = vmatpush1.bf16.msra.mxu1 %v6240_v23 }
 0x25c   : > { %6890 = vmatmul.mubr.msk.bf16.vlgmr.msra.gmra.mrb[4].mxu1 %vm305_vm2, %v6882_v47 }
 0x323   : > { %v6279_v30 = vpop.f32.mrb[0].mxu0 }
 0x324   : > { %6417 = vst [vmem:[%s8632_s16] sm:$0xff] %v6279_v30  ;;  %v6467_v32 = vmul.f32 %v6430_v27, %v6279_v30  ;;  %v6281_v33 = vpop.f32.mrb[1].mxu0 }
 0x325   : > { %6418 = vst [vmem:[%s8632_s16 + $0x8] sm:$0xff] %v6281_v33  ;;  %v6468_v36 = vmul.f32 %v6434_v29, %v6281_v33  ;;  %v6283_v37 = vpop.f32.mrb[2].mxu0 }
 0x326   : > { %v6486_v42 = vmul.f32 %v6467_v32, %v6279_v30  ;;  %v6284_v43 = vpop.f32.mrb[3].mxu0 }
 0x327   : > { %v6475_v44 = vadd.f32 %v6468_v36, %v6467_v32  ;;  %v6487_v45 = vmul.f32 %v6468_v36, %v6281_v33  ;;  %v6320_v48 = vpop.f32.mrb[0].mxu1 }
 0x328   : > { %6419 = vst [vmem:[%s8632_s16 + $0x10] sm:$0xff] %v6320_v48  ;;  %v6469_v49 = vmul.f32 %v6438_v34, %v6320_v48  ;;  %v6322_v13 = vpop.f32.mrb[1].mxu1 }
 0x329   : > { %v6494_v52 = vadd.f32 %v6487_v45, %v6486_v42  ;;  %6420 = vst [vmem:[%s8632_s16 + $0x18] sm:$0xff] %v6322_v13  ;;  %v6470_v55 = vmul.f32 %v6442_v40, %v6322_v13  ;;  %v6324_v56 = vpop.f32.mrb[2].mxu1 }
 0x32a   : > { %v6476_v58 = vadd.f32 %v6475_v44, %v6469_v49  ;;  %v6488_v59 = vmul.f32 %v6469_v49, %v6320_v48  ;;  %v6325_v60 = vpop.f32.mrb[3].mxu1 }
 0x32b   : > { %v6489_v61 = vmul.f32 %v6470_v55, %v6322_v13  ;;  %v6361_v12 = vpop.f32.mrb[4].mxu0 }
 0x32c   : > { %v6495_v31 = vadd.f32 %v6494_v52, %v6488_v59  ;;  %v6477_v62 = vadd.f32 %v6476_v58, %v6470_v55  ;;  %6421 = vst [vmem:[%s8632_s16 + $0x20] sm:$0xff] %v6361_v12  ;;  %v6471_v63 = vmul.f32 %v6446_v50, %v6361_v12  ;;  %v6363_v1 = vpop.f32.mrb[5].mxu0 }
 0x32d   : > { %6422 = vst [vmem:[%s8632_s16 + $0x28] sm:$0xff] %v6363_v1  ;;  %v6472_v39 = vmul.f32 %v6450_v57, %v6363_v1  ;;  %v6365_v2 = vpop.f32.mrb[6].mxu0 }
 0x32e   : > { %v6496_v10 = vadd.f32 %v6495_v31, %v6489_v61  ;;  %v6478_v46 = vadd.f32 %v6477_v62, %v6471_v63  ;;  %v6490_v14 = vmul.f32 %v6471_v63, %v6361_v12  ;;  %v6366_v47 = vpop.f32.mrb[7].mxu0 }
 0x32f   : > { %v6491_v15 = vmul.f32 %v6472_v39, %v6363_v1  ;;  %v6402_v16 = vpop.f32.mrb[4].mxu1 }
 0x330   : > { %v6497_v17 = vadd.f32 %v6496_v10, %v6490_v14  ;;  %v6479_v18 = vadd.f32 %v6478_v46, %v6472_v39  ;;  %6423 = vst [vmem:[%s8632_s16 + $0x30] sm:$0xff] %v6402_v16  ;;  %v6473_v53 = vmul.f32 %v6454_v38, %v6402_v16  ;;  %v6404_v54 = vpop.f32.mrb[5].mxu1 }
 0x331   : > { %6424 = vst [vmem:[%s8632_s16 + $0x38] sm:$0xff] %v6404_v54  ;;  %v6474_v19 = vmul.f32 %v6458_v7, %v6404_v54  ;;  %v6406_v20 = vpop.f32.mrb[6].mxu1 }
 0x332   : > { %v6498_v21 = vadd.f32 %v6497_v17, %v6491_v15  ;;  %v6480_v4 = vadd.f32 %v6479_v18, %v6473_v53  ;;  %v6492_v6 = vmul.f32 %v6473_v53, %v6402_v16  ;;  %v6407_v22 = vpop.f32.mrb[7].mxu1 }
 0x333   : > { %v6493_v3 = vmul.f32 %v6474_v19, %v6404_v54 }
 0x334   : > { %v6499_v5 = vadd.f32 %v6498_v21, %v6492_v6  ;;  %v6481_v23 = vadd.f32 %v6480_v4, %v6474_v19 }
 0x336   : > { %6482 = vadd.xlane.f32.xlu0 %v6481_v23  ;;  %v6500_v24 = vadd.f32 %v6499_v5, %v6493_v3 }
 0x338   : > { %6501 = vadd.xlane.f32.xlu1 %v6500_v24 }
 0x3c3   : > { %v6483_v25 = vpop.xlane.xlu0 %6482 }
 0x3c4   : > { %6485 = vst.msk [vmem:[%s241_s22] sm:$0xff] %vm6484_vm1, %v6483_v25 }
 0x3c5   : > { %v6502_v9 = vpop.xlane.xlu1 %6501 }
 0x3c6   : > { %6503 = vst.msk [vmem:[%s245_s25] sm:$0xff] %vm6484_vm1, %v6502_v9 }
 0x3c7 PF: > { %s16_s18 = sadd.s32 1, %s7371_s18  }
 0x3c8   : > { %p13_p4 = scmp.ge.s32.totalorder %s16_s18, 4  }
 0x3ca   :  { %15 = sbr.rel (!%p13_p4) target bundleno = 1 (0x1), region = 112 }

</bundles_post_ra>
